<compile_context>
chip_gen: v7x
topology: tpu7x:2x2x1
jax: 0.10.0
libtpu: 0.0.40
codegen_flags: <defaults>
</compile_context>

<pallas_src>
import jax
import jax.numpy as jnp
from jax.experimental import pallas as pl
from jax.experimental.pallas import tpu as pltpu

CHAR_EMBED = 50   # self.char_embed_size
KERNEL_K = 5      # canonical a5 CNN kernel size
DROPRATE = 0.3    # TODO(synk): dropout applied as identity (eval mode); no RNG mask here.


def _round_up(x, m):
    return ((x + m - 1) // m) * m


def _char_cnn_highway_kernel(tok_ref, tw_ref, bc_ref, whw_ref, bhw_ref, o_ref):
    """One tile of words, fully fused (gather + conv + pool + highway).

    tok_ref : (TN, L)             int32  char ids for this tile of words
    tw_ref  : (K, V_pad, E_pad)   bf16   per-tap tables  T[t] = char_table @ conv_w[t]
    bc_ref  : (1, E_pad)          f32    conv bias (zeros in padded columns)
    whw_ref : (E_pad, 2*E_pad)    bf16   [proj | gate] highway weights (zero padded)
    bhw_ref : (1, 2*E_pad)        f32    [proj | gate] highway biases
    o_ref   : (TN, E_pad)         f32    word embeddings out (lane-dense)
    """
    tile, L = tok_ref.shape
    K, v_pad, e_pad = tw_ref.shape
    l_out = L - K + 1

    # Lane-iota hoisted out of the loops (JAX does not CSE broadcasts).
    iota = jax.lax.broadcasted_iota(jnp.int32, (tile, v_pad), 1)

    def onehot(l):
        # (tile, 1) token column, lane-broadcast + compare -> (tile, V_pad) bf16.
        ids = tok_ref[:, l:l + 1]
        return jnp.where(ids == iota, 1.0, 0.0).astype(jnp.bfloat16)

    # Conv1d realized as K gathers-via-one-hot-matmul per output position,
    # folded into a running max (no big f32 intermediate, minimal live set).
    m = None
    for p in range(l_out):
        a = jnp.dot(onehot(p), tw_ref[0], preferred_element_type=jnp.float32)
        for t in range(1, K):
            a = a + jnp.dot(onehot(p + t), tw_ref[t],
                            preferred_element_type=jnp.float32)
        m = a if m is None else jnp.maximum(m, a)

    # Bias + ReLU deferred past the max-pool (per-channel bias + monotone ReLU
    # commute with max) -> (tile, E_pad) instead of (tile*l_out, E_pad) work.
    pooled = jnp.maximum(m + bc_ref[...], 0.0)

    # Highway: one fused matmul producing [proj | gate] (lane-dense 2*E_pad).
    hw = jnp.dot(pooled.astype(whw_ref.dtype), whw_ref[...],
                 preferred_element_type=jnp.float32) + bhw_ref[...]
    proj = jnp.maximum(hw[:, :e_pad], 0.0)
    gate = jax.nn.sigmoid(hw[:, e_pad:])
    o_ref[...] = (gate * proj + (1.0 - gate) * pooled).astype(o_ref.dtype)


def pack_model_embedding_params(char_table, conv_w, conv_b,
                                w_proj, b_proj, w_gate, b_gate):
    """One-time parameter packing (hoisted out of the per-call path).

    char_table : (V, C) f32        conv_w : (K, C, E) f32 (tap-major)
    Highway weights stored as (E, E) with x @ W convention.
    """
    K, C, E = conv_w.shape
    V = char_table.shape[0]
    assert K == KERNEL_K and C == CHAR_EMBED
    V_pad = _round_up(V, 128)
    E_pad = _round_up(E, 128)

    # Enforce nn.Embedding(padding_idx=0) semantics: row 0 of the table is 0.
    tbl = char_table.astype(jnp.float32).at[0].set(0.0)

    # Per-tap transformed tables: T[t] = table @ conv_w[t]  -> (K, V, E),
    # so conv[n, p, :] = sum_t T[t][tok[n, p+t], :]  (exact reassociation).
    T = jnp.einsum('vc,kce->kve', tbl, conv_w.astype(jnp.float32))
    T = jnp.pad(T, ((0, 0), (0, V_pad - V), (0, E_pad - E))).astype(jnp.bfloat16)

    bc = jnp.pad(conv_b.reshape(1, E).astype(jnp.float32),
                 ((0, 0), (0, E_pad - E)))
    whw = jnp.zeros((E_pad, 2 * E_pad), jnp.bfloat16)
    whw = whw.at[:E, :E].set(w_proj.astype(jnp.bfloat16))
    whw = whw.at[:E, E_pad:E_pad + E].set(w_gate.astype(jnp.bfloat16))
    bhw = jnp.zeros((1, 2 * E_pad), jnp.float32)
    bhw = bhw.at[0, :E].set(b_proj.reshape(-1).astype(jnp.float32))
    bhw = bhw.at[0, E_pad:E_pad + E].set(b_gate.reshape(-1).astype(jnp.float32))
    return dict(T=T, bc=bc, whw=whw, bhw=bhw, E=E, K=K)


def model_embeddings_forward(tokens, packed, *, tile_n=512):
    """tokens: (S, B, L) int32.  packed: output of pack_model_embedding_params.
    Returns (S, B, E) float32."""
    S, B, L = tokens.shape
    T, bc, whw, bhw = packed["T"], packed["bc"], packed["whw"], packed["bhw"]
    K, V_pad, E_pad = T.shape
    E = packed["E"]
    assert L >= K, "max_word_length must be >= conv kernel size"
    N = S * B

    # Word-tile sizing: big tiles amortize per-step overhead; keep >=2 grid
    # steps when possible so both v7x TensorCores are used on the parallel axis.
    tile = max(8, _round_up(min(tile_n, N), 8))
    if _round_up(N, tile) == tile and N > 8:
        tile = max(8, _round_up(pl.cdiv(N, 2), 8))
    N_pad = _round_up(N, tile)

    # Only the int32 token ids go to HBM (padded rows use token 0 -> zero rows
    # of the per-tap tables; they are sliced off below).
    tok = jnp.pad(tokens.reshape(N, L).astype(jnp.int32), ((0, N_pad - N), (0, 0)))

    grid = (N_pad // tile,)
    out = pl.pallas_call(
        _char_cnn_highway_kernel,
        out_shape=jax.ShapeDtypeStruct((N_pad, E_pad), jnp.float32),
        grid_spec=pltpu.PrefetchScalarGridSpec(
            num_scalar_prefetch=0,
            grid=grid,
            in_specs=[
                pl.BlockSpec((tile, L), lambda i: (i, 0)),
                pl.BlockSpec((K, V_pad, E_pad), lambda i: (0, 0, 0)),
                pl.BlockSpec((1, E_pad), lambda i: (0, 0)),
                pl.BlockSpec((E_pad, 2 * E_pad), lambda i: (0, 0)),
                pl.BlockSpec((1, 2 * E_pad), lambda i: (0, 0)),
            ],
            out_specs=pl.BlockSpec((tile, E_pad), lambda i: (i, 0)),
        ),
        compiler_params=pltpu.CompilerParams(
            dimension_semantics=("parallel",)),
    )(tok, T, bc, whw, bhw)

    # Dropout(0.3) is identity in eval mode; strip row/col padding.
    # (If the consumer tolerates the padded (N_pad, E_pad) layout, return `out`
    #  directly to avoid this extra HBM copy.)
    return out[:N, :E].reshape(S, B, E)


def _reference(tokens, char_table, conv_w, conv_b, w_proj, b_proj, w_gate, b_gate):
    """Pure-JAX reference following the PyTorch module order (bf16 operand rounding)."""
    S, B, L = tokens.shape
    K, C, E = conv_w.shape
    N = S * B
    l_out = L - K + 1
    q = lambda a: a.astype(jnp.bfloat16).astype(jnp.float32)   # bf16 operand rounding
    tbl = char_table.astype(jnp.float32).at[0].set(0.0)         # padding_idx=0
    x = jnp.take(tbl, tokens.reshape(-1), axis=0).reshape(N, L, C)
    wc = q(conv_w).reshape(K * C, E)
    convs = []
    for t in range(l_out):
        win = x[:, t:t + K, :].reshape(N, K * C)
        convs.append(jnp.maximum(win @ wc + conv_b.reshape(1, E), 0.0))
    pooled = jnp.max(jnp.stack(convs, axis=1), axis=1)
    pooled_q = q(pooled)
    proj = jnp.maximum(pooled_q @ q(w_proj) + b_proj.reshape(1, E), 0.0)
    gate = jax.nn.sigmoid(pooled_q @ q(w_gate) + b_gate.reshape(1, E))
    return (gate * proj + (1.0 - gate) * pooled).reshape(S, B, E)


if __name__ == "__main__":
    # Small, deterministic configuration.
    sentence_length = 8
    batch_size = 16
    max_word_length = 12
    word_embed_size = 64
    char_vocab_size = 30

    key = jax.random.PRNGKey(0)
    ks = jax.random.split(key, 8)

    # Parameters (deterministic synthetic init; shapes match nn.Module __init__).
    char_table = 0.1 * jax.random.normal(
        ks[0], (char_vocab_size, CHAR_EMBED), dtype=jnp.float32)
    char_table = char_table.at[0].set(0.0)  # padding_idx=0 row is zeros

    # Conv1d weight in PyTorch is (E, C, K); stored here tap-major as (K, C, E).
    conv_w = 0.1 * jax.random.normal(
        ks[1], (KERNEL_K, CHAR_EMBED, word_embed_size), dtype=jnp.float32)
    conv_b = 0.1 * jax.random.normal(ks[2], (word_embed_size,), dtype=jnp.float32)

    # Highway Linear weights are (E, E) in PyTorch (out, in); stored transposed
    # so the kernel computes x @ W.
    w_proj = 0.1 * jax.random.normal(ks[3], (word_embed_size, word_embed_size), dtype=jnp.float32)
    b_proj = 0.1 * jax.random.normal(ks[4], (word_embed_size,), dtype=jnp.float32)
    w_gate = 0.1 * jax.random.normal(ks[5], (word_embed_size, word_embed_size), dtype=jnp.float32)
    b_gate = 0.1 * jax.random.normal(ks[6], (word_embed_size,), dtype=jnp.float32)

    tokens = jax.random.randint(
        ks[7], (sentence_length, batch_size, max_word_length),
        minval=0, maxval=char_vocab_size, dtype=jnp.int32)

    # One-time parameter packing (static weights), then the fused forward.
    packed = pack_model_embedding_params(
        char_table, conv_w, conv_b, w_proj, b_proj, w_gate, b_gate)
    out = model_embeddings_forward(tokens, packed)
    out = jax.block_until_ready(out)

    ref = _reference(
        tokens, char_table, conv_w, conv_b, w_proj, b_proj, w_gate, b_gate)
    assert out.shape == (sentence_length, batch_size, word_embed_size)
    assert jnp.allclose(out, ref, rtol=1e-2, atol=1e-2), "mismatch vs reference"

    print("KERNEL_OK")
</pallas_src>

<mosaic_0001>
module attributes {stable_mosaic.version = 11 : i64} {
  func.func @_char_cnn_highway_kernel(%arg0: i32, %arg1: memref<64x12xi32, #tpu.memory_space<vmem>>, %arg2: memref<5x128x128xbf16, #tpu.memory_space<vmem>>, %arg3: memref<1x128xf32, #tpu.memory_space<vmem>>, %arg4: memref<128x256xbf16, #tpu.memory_space<vmem>>, %arg5: memref<1x256xf32, #tpu.memory_space<vmem>>, %arg6: memref<64x128xf32, #tpu.memory_space<vmem>>) attributes {dimension_semantics = [#tpu.dimension_semantics<parallel>], iteration_bounds = array<i64: 2>, scalar_prefetch = 0 : i64, scratch_operands = 0 : i64, tpu.core_type = #tpu.core_type<tc>, window_params = [{transform_indices = @transform_0, window_bounds = array<i64: 64, 12>}, {pipeline_mode = #tpu.pipeline_mode<synchronous>, transform_indices = @transform_1, window_bounds = array<i64: 5, 128, 128>}, {pipeline_mode = #tpu.pipeline_mode<synchronous>, transform_indices = @transform_2, window_bounds = array<i64: 1, 128>}, {pipeline_mode = #tpu.pipeline_mode<synchronous>, transform_indices = @transform_3, window_bounds = array<i64: 128, 256>}, {pipeline_mode = #tpu.pipeline_mode<synchronous>, transform_indices = @transform_4, window_bounds = array<i64: 1, 256>}, {transform_indices = @transform_5, window_bounds = array<i64: 64, 128>}]} {
    %0 = tpu.iota {dimensions = array<i32: 1>} : vector<64x128xi32>
    %c0 = arith.constant 0 : index
    %c0_0 = arith.constant 0 : index
    %1 = vector.load %arg1[%c0, %c0_0] : memref<64x12xi32, #tpu.memory_space<vmem>>, vector<64x1xi32>
    %2 = vector.broadcast %1 : vector<64x1xi32> to vector<64x128xi32>
    %3 = arith.cmpi eq, %2, %0 : vector<64x128xi32>
    %cst = arith.constant 1.000000e+00 : f32
    %cst_1 = arith.constant 0.000000e+00 : f32
    %4 = vector.broadcast %cst : f32 to vector<64x128xf32>
    %5 = vector.broadcast %cst_1 : f32 to vector<64x128xf32>
    %6 = arith.select %3, %4, %5 : vector<64x128xi1>, vector<64x128xf32>
    %7 = arith.truncf %6 : vector<64x128xf32> to vector<64x128xbf16>
    %c0_2 = arith.constant 0 : index
    %c0_3 = arith.constant 0 : index
    %c0_4 = arith.constant 0 : index
    %8 = vector.load %arg2[%c0_2, %c0_3, %c0_4] : memref<5x128x128xbf16, #tpu.memory_space<vmem>>, vector<1x128x128xbf16>
    %9 = vector.shape_cast %8 : vector<1x128x128xbf16> to vector<128x128xbf16>
    %cst_5 = arith.constant dense<0.000000e+00> : vector<64x128xf32>
    %10 = tpu.matmul %7, %9, %cst_5 {dimension_numbers = #tpu.dot_dimension_numbers<[1], [0], [0], [1], [0, 0, 1, 1], [], []>} : vector<64x128xbf16>, vector<128x128xbf16>, vector<64x128xf32> -> vector<64x128xf32>
    %c0_6 = arith.constant 0 : index
    %c1 = arith.constant 1 : index
    %11 = vector.load %arg1[%c0_6, %c1] : memref<64x12xi32, #tpu.memory_space<vmem>>, vector<64x1xi32>
    %12 = vector.broadcast %11 : vector<64x1xi32> to vector<64x128xi32>
    %13 = arith.cmpi eq, %12, %0 : vector<64x128xi32>
    %cst_7 = arith.constant 1.000000e+00 : f32
    %cst_8 = arith.constant 0.000000e+00 : f32
    %14 = vector.broadcast %cst_7 : f32 to vector<64x128xf32>
    %15 = vector.broadcast %cst_8 : f32 to vector<64x128xf32>
    %16 = arith.select %13, %14, %15 : vector<64x128xi1>, vector<64x128xf32>
    %17 = arith.truncf %16 : vector<64x128xf32> to vector<64x128xbf16>
    %c1_9 = arith.constant 1 : index
    %c0_10 = arith.constant 0 : index
    %c0_11 = arith.constant 0 : index
    %18 = vector.load %arg2[%c1_9, %c0_10, %c0_11] : memref<5x128x128xbf16, #tpu.memory_space<vmem>>, vector<1x128x128xbf16>
    %19 = vector.shape_cast %18 : vector<1x128x128xbf16> to vector<128x128xbf16>
    %cst_12 = arith.constant dense<0.000000e+00> : vector<64x128xf32>
    %20 = tpu.matmul %17, %19, %cst_12 {dimension_numbers = #tpu.dot_dimension_numbers<[1], [0], [0], [1], [0, 0, 1, 1], [], []>} : vector<64x128xbf16>, vector<128x128xbf16>, vector<64x128xf32> -> vector<64x128xf32>
    %21 = arith.addf %10, %20 : vector<64x128xf32>
    %c0_13 = arith.constant 0 : index
    %c2 = arith.constant 2 : index
    %22 = vector.load %arg1[%c0_13, %c2] : memref<64x12xi32, #tpu.memory_space<vmem>>, vector<64x1xi32>
    %23 = vector.broadcast %22 : vector<64x1xi32> to vector<64x128xi32>
    %24 = arith.cmpi eq, %23, %0 : vector<64x128xi32>
    %cst_14 = arith.constant 1.000000e+00 : f32
    %cst_15 = arith.constant 0.000000e+00 : f32
    %25 = vector.broadcast %cst_14 : f32 to vector<64x128xf32>
    %26 = vector.broadcast %cst_15 : f32 to vector<64x128xf32>
    %27 = arith.select %24, %25, %26 : vector<64x128xi1>, vector<64x128xf32>
    %28 = arith.truncf %27 : vector<64x128xf32> to vector<64x128xbf16>
    %c2_16 = arith.constant 2 : index
    %c0_17 = arith.constant 0 : index
    %c0_18 = arith.constant 0 : index
    %29 = vector.load %arg2[%c2_16, %c0_17, %c0_18] : memref<5x128x128xbf16, #tpu.memory_space<vmem>>, vector<1x128x128xbf16>
    %30 = vector.shape_cast %29 : vector<1x128x128xbf16> to vector<128x128xbf16>
    %cst_19 = arith.constant dense<0.000000e+00> : vector<64x128xf32>
    %31 = tpu.matmul %28, %30, %cst_19 {dimension_numbers = #tpu.dot_dimension_numbers<[1], [0], [0], [1], [0, 0, 1, 1], [], []>} : vector<64x128xbf16>, vector<128x128xbf16>, vector<64x128xf32> -> vector<64x128xf32>
    %32 = arith.addf %21, %31 : vector<64x128xf32>
    %c0_20 = arith.constant 0 : index
    %c3 = arith.constant 3 : index
    %33 = vector.load %arg1[%c0_20, %c3] : memref<64x12xi32, #tpu.memory_space<vmem>>, vector<64x1xi32>
    %34 = vector.broadcast %33 : vector<64x1xi32> to vector<64x128xi32>
    %35 = arith.cmpi eq, %34, %0 : vector<64x128xi32>
    %cst_21 = arith.constant 1.000000e+00 : f32
    %cst_22 = arith.constant 0.000000e+00 : f32
    %36 = vector.broadcast %cst_21 : f32 to vector<64x128xf32>
    %37 = vector.broadcast %cst_22 : f32 to vector<64x128xf32>
    %38 = arith.select %35, %36, %37 : vector<64x128xi1>, vector<64x128xf32>
    %39 = arith.truncf %38 : vector<64x128xf32> to vector<64x128xbf16>
    %c3_23 = arith.constant 3 : index
    %c0_24 = arith.constant 0 : index
    %c0_25 = arith.constant 0 : index
    %40 = vector.load %arg2[%c3_23, %c0_24, %c0_25] : memref<5x128x128xbf16, #tpu.memory_space<vmem>>, vector<1x128x128xbf16>
    %41 = vector.shape_cast %40 : vector<1x128x128xbf16> to vector<128x128xbf16>
    %cst_26 = arith.constant dense<0.000000e+00> : vector<64x128xf32>
    %42 = tpu.matmul %39, %41, %cst_26 {dimension_numbers = #tpu.dot_dimension_numbers<[1], [0], [0], [1], [0, 0, 1, 1], [], []>} : vector<64x128xbf16>, vector<128x128xbf16>, vector<64x128xf32> -> vector<64x128xf32>
    %43 = arith.addf %32, %42 : vector<64x128xf32>
    %c0_27 = arith.constant 0 : index
    %c4 = arith.constant 4 : index
    %44 = vector.load %arg1[%c0_27, %c4] : memref<64x12xi32, #tpu.memory_space<vmem>>, vector<64x1xi32>
    %45 = vector.broadcast %44 : vector<64x1xi32> to vector<64x128xi32>
    %46 = arith.cmpi eq, %45, %0 : vector<64x128xi32>
    %cst_28 = arith.constant 1.000000e+00 : f32
    %cst_29 = arith.constant 0.000000e+00 : f32
    %47 = vector.broadcast %cst_28 : f32 to vector<64x128xf32>
    %48 = vector.broadcast %cst_29 : f32 to vector<64x128xf32>
    %49 = arith.select %46, %47, %48 : vector<64x128xi1>, vector<64x128xf32>
    %50 = arith.truncf %49 : vector<64x128xf32> to vector<64x128xbf16>
    %c4_30 = arith.constant 4 : index
    %c0_31 = arith.constant 0 : index
    %c0_32 = arith.constant 0 : index
    %51 = vector.load %arg2[%c4_30, %c0_31, %c0_32] : memref<5x128x128xbf16, #tpu.memory_space<vmem>>, vector<1x128x128xbf16>
    %52 = vector.shape_cast %51 : vector<1x128x128xbf16> to vector<128x128xbf16>
    %cst_33 = arith.constant dense<0.000000e+00> : vector<64x128xf32>
    %53 = tpu.matmul %50, %52, %cst_33 {dimension_numbers = #tpu.dot_dimension_numbers<[1], [0], [0], [1], [0, 0, 1, 1], [], []>} : vector<64x128xbf16>, vector<128x128xbf16>, vector<64x128xf32> -> vector<64x128xf32>
    %54 = arith.addf %43, %53 : vector<64x128xf32>
    %c0_34 = arith.constant 0 : index
    %c1_35 = arith.constant 1 : index
    %55 = vector.load %arg1[%c0_34, %c1_35] : memref<64x12xi32, #tpu.memory_space<vmem>>, vector<64x1xi32>
    %56 = vector.broadcast %55 : vector<64x1xi32> to vector<64x128xi32>
    %57 = arith.cmpi eq, %56, %0 : vector<64x128xi32>
    %cst_36 = arith.constant 1.000000e+00 : f32
    %cst_37 = arith.constant 0.000000e+00 : f32
    %58 = vector.broadcast %cst_36 : f32 to vector<64x128xf32>
    %59 = vector.broadcast %cst_37 : f32 to vector<64x128xf32>
    %60 = arith.select %57, %58, %59 : vector<64x128xi1>, vector<64x128xf32>
    %61 = arith.truncf %60 : vector<64x128xf32> to vector<64x128xbf16>
    %c0_38 = arith.constant 0 : index
    %c0_39 = arith.constant 0 : index
    %c0_40 = arith.constant 0 : index
    %62 = vector.load %arg2[%c0_38, %c0_39, %c0_40] : memref<5x128x128xbf16, #tpu.memory_space<vmem>>, vector<1x128x128xbf16>
    %63 = vector.shape_cast %62 : vector<1x128x128xbf16> to vector<128x128xbf16>
    %cst_41 = arith.constant dense<0.000000e+00> : vector<64x128xf32>
    %64 = tpu.matmul %61, %63, %cst_41 {dimension_numbers = #tpu.dot_dimension_numbers<[1], [0], [0], [1], [0, 0, 1, 1], [], []>} : vector<64x128xbf16>, vector<128x128xbf16>, vector<64x128xf32> -> vector<64x128xf32>
    %c0_42 = arith.constant 0 : index
    %c2_43 = arith.constant 2 : index
    %65 = vector.load %arg1[%c0_42, %c2_43] : memref<64x12xi32, #tpu.memory_space<vmem>>, vector<64x1xi32>
    %66 = vector.broadcast %65 : vector<64x1xi32> to vector<64x128xi32>
    %67 = arith.cmpi eq, %66, %0 : vector<64x128xi32>
    %cst_44 = arith.constant 1.000000e+00 : f32
    %cst_45 = arith.constant 0.000000e+00 : f32
    %68 = vector.broadcast %cst_44 : f32 to vector<64x128xf32>
    %69 = vector.broadcast %cst_45 : f32 to vector<64x128xf32>
    %70 = arith.select %67, %68, %69 : vector<64x128xi1>, vector<64x128xf32>
    %71 = arith.truncf %70 : vector<64x128xf32> to vector<64x128xbf16>
    %c1_46 = arith.constant 1 : index
    %c0_47 = arith.constant 0 : index
    %c0_48 = arith.constant 0 : index
    %72 = vector.load %arg2[%c1_46, %c0_47, %c0_48] : memref<5x128x128xbf16, #tpu.memory_space<vmem>>, vector<1x128x128xbf16>
    %73 = vector.shape_cast %72 : vector<1x128x128xbf16> to vector<128x128xbf16>
    %cst_49 = arith.constant dense<0.000000e+00> : vector<64x128xf32>
    %74 = tpu.matmul %71, %73, %cst_49 {dimension_numbers = #tpu.dot_dimension_numbers<[1], [0], [0], [1], [0, 0, 1, 1], [], []>} : vector<64x128xbf16>, vector<128x128xbf16>, vector<64x128xf32> -> vector<64x128xf32>
    %75 = arith.addf %64, %74 : vector<64x128xf32>
    %c0_50 = arith.constant 0 : index
    %c3_51 = arith.constant 3 : index
    %76 = vector.load %arg1[%c0_50, %c3_51] : memref<64x12xi32, #tpu.memory_space<vmem>>, vector<64x1xi32>
    %77 = vector.broadcast %76 : vector<64x1xi32> to vector<64x128xi32>
    %78 = arith.cmpi eq, %77, %0 : vector<64x128xi32>
    %cst_52 = arith.constant 1.000000e+00 : f32
    %cst_53 = arith.constant 0.000000e+00 : f32
    %79 = vector.broadcast %cst_52 : f32 to vector<64x128xf32>
    %80 = vector.broadcast %cst_53 : f32 to vector<64x128xf32>
    %81 = arith.select %78, %79, %80 : vector<64x128xi1>, vector<64x128xf32>
    %82 = arith.truncf %81 : vector<64x128xf32> to vector<64x128xbf16>
    %c2_54 = arith.constant 2 : index
    %c0_55 = arith.constant 0 : index
    %c0_56 = arith.constant 0 : index
    %83 = vector.load %arg2[%c2_54, %c0_55, %c0_56] : memref<5x128x128xbf16, #tpu.memory_space<vmem>>, vector<1x128x128xbf16>
    %84 = vector.shape_cast %83 : vector<1x128x128xbf16> to vector<128x128xbf16>
    %cst_57 = arith.constant dense<0.000000e+00> : vector<64x128xf32>
    %85 = tpu.matmul %82, %84, %cst_57 {dimension_numbers = #tpu.dot_dimension_numbers<[1], [0], [0], [1], [0, 0, 1, 1], [], []>} : vector<64x128xbf16>, vector<128x128xbf16>, vector<64x128xf32> -> vector<64x128xf32>
    %86 = arith.addf %75, %85 : vector<64x128xf32>
    %c0_58 = arith.constant 0 : index
    %c4_59 = arith.constant 4 : index
    %87 = vector.load %arg1[%c0_58, %c4_59] : memref<64x12xi32, #tpu.memory_space<vmem>>, vector<64x1xi32>
    %88 = vector.broadcast %87 : vector<64x1xi32> to vector<64x128xi32>
    %89 = arith.cmpi eq, %88, %0 : vector<64x128xi32>
    %cst_60 = arith.constant 1.000000e+00 : f32
    %cst_61 = arith.constant 0.000000e+00 : f32
    %90 = vector.broadcast %cst_60 : f32 to vector<64x128xf32>
    %91 = vector.broadcast %cst_61 : f32 to vector<64x128xf32>
    %92 = arith.select %89, %90, %91 : vector<64x128xi1>, vector<64x128xf32>
    %93 = arith.truncf %92 : vector<64x128xf32> to vector<64x128xbf16>
    %c3_62 = arith.constant 3 : index
    %c0_63 = arith.constant 0 : index
    %c0_64 = arith.constant 0 : index
    %94 = vector.load %arg2[%c3_62, %c0_63, %c0_64] : memref<5x128x128xbf16, #tpu.memory_space<vmem>>, vector<1x128x128xbf16>
    %95 = vector.shape_cast %94 : vector<1x128x128xbf16> to vector<128x128xbf16>
    %cst_65 = arith.constant dense<0.000000e+00> : vector<64x128xf32>
    %96 = tpu.matmul %93, %95, %cst_65 {dimension_numbers = #tpu.dot_dimension_numbers<[1], [0], [0], [1], [0, 0, 1, 1], [], []>} : vector<64x128xbf16>, vector<128x128xbf16>, vector<64x128xf32> -> vector<64x128xf32>
    %97 = arith.addf %86, %96 : vector<64x128xf32>
    %c0_66 = arith.constant 0 : index
    %c5 = arith.constant 5 : index
    %98 = vector.load %arg1[%c0_66, %c5] : memref<64x12xi32, #tpu.memory_space<vmem>>, vector<64x1xi32>
    %99 = vector.broadcast %98 : vector<64x1xi32> to vector<64x128xi32>
    %100 = arith.cmpi eq, %99, %0 : vector<64x128xi32>
    %cst_67 = arith.constant 1.000000e+00 : f32
    %cst_68 = arith.constant 0.000000e+00 : f32
    %101 = vector.broadcast %cst_67 : f32 to vector<64x128xf32>
    %102 = vector.broadcast %cst_68 : f32 to vector<64x128xf32>
    %103 = arith.select %100, %101, %102 : vector<64x128xi1>, vector<64x128xf32>
    %104 = arith.truncf %103 : vector<64x128xf32> to vector<64x128xbf16>
    %c4_69 = arith.constant 4 : index
    %c0_70 = arith.constant 0 : index
    %c0_71 = arith.constant 0 : index
    %105 = vector.load %arg2[%c4_69, %c0_70, %c0_71] : memref<5x128x128xbf16, #tpu.memory_space<vmem>>, vector<1x128x128xbf16>
    %106 = vector.shape_cast %105 : vector<1x128x128xbf16> to vector<128x128xbf16>
    %cst_72 = arith.constant dense<0.000000e+00> : vector<64x128xf32>
    %107 = tpu.matmul %104, %106, %cst_72 {dimension_numbers = #tpu.dot_dimension_numbers<[1], [0], [0], [1], [0, 0, 1, 1], [], []>} : vector<64x128xbf16>, vector<128x128xbf16>, vector<64x128xf32> -> vector<64x128xf32>
    %108 = arith.addf %97, %107 : vector<64x128xf32>
    %109 = arith.maximumf %54, %108 : vector<64x128xf32>
    %c0_73 = arith.constant 0 : index
    %c2_74 = arith.constant 2 : index
    %110 = vector.load %arg1[%c0_73, %c2_74] : memref<64x12xi32, #tpu.memory_space<vmem>>, vector<64x1xi32>
    %111 = vector.broadcast %110 : vector<64x1xi32> to vector<64x128xi32>
    %112 = arith.cmpi eq, %111, %0 : vector<64x128xi32>
    %cst_75 = arith.constant 1.000000e+00 : f32
    %cst_76 = arith.constant 0.000000e+00 : f32
    %113 = vector.broadcast %cst_75 : f32 to vector<64x128xf32>
    %114 = vector.broadcast %cst_76 : f32 to vector<64x128xf32>
    %115 = arith.select %112, %113, %114 : vector<64x128xi1>, vector<64x128xf32>
    %116 = arith.truncf %115 : vector<64x128xf32> to vector<64x128xbf16>
    %c0_77 = arith.constant 0 : index
    %c0_78 = arith.constant 0 : index
    %c0_79 = arith.constant 0 : index
    %117 = vector.load %arg2[%c0_77, %c0_78, %c0_79] : memref<5x128x128xbf16, #tpu.memory_space<vmem>>, vector<1x128x128xbf16>
    %118 = vector.shape_cast %117 : vector<1x128x128xbf16> to vector<128x128xbf16>
    %cst_80 = arith.constant dense<0.000000e+00> : vector<64x128xf32>
    %119 = tpu.matmul %116, %118, %cst_80 {dimension_numbers = #tpu.dot_dimension_numbers<[1], [0], [0], [1], [0, 0, 1, 1], [], []>} : vector<64x128xbf16>, vector<128x128xbf16>, vector<64x128xf32> -> vector<64x128xf32>
    %c0_81 = arith.constant 0 : index
    %c3_82 = arith.constant 3 : index
    %120 = vector.load %arg1[%c0_81, %c3_82] : memref<64x12xi32, #tpu.memory_space<vmem>>, vector<64x1xi32>
    %121 = vector.broadcast %120 : vector<64x1xi32> to vector<64x128xi32>
    %122 = arith.cmpi eq, %121, %0 : vector<64x128xi32>
    %cst_83 = arith.constant 1.000000e+00 : f32
    %cst_84 = arith.constant 0.000000e+00 : f32
    %123 = vector.broadcast %cst_83 : f32 to vector<64x128xf32>
    %124 = vector.broadcast %cst_84 : f32 to vector<64x128xf32>
    %125 = arith.select %122, %123, %124 : vector<64x128xi1>, vector<64x128xf32>
    %126 = arith.truncf %125 : vector<64x128xf32> to vector<64x128xbf16>
    %c1_85 = arith.constant 1 : index
    %c0_86 = arith.constant 0 : index
    %c0_87 = arith.constant 0 : index
    %127 = vector.load %arg2[%c1_85, %c0_86, %c0_87] : memref<5x128x128xbf16, #tpu.memory_space<vmem>>, vector<1x128x128xbf16>
    %128 = vector.shape_cast %127 : vector<1x128x128xbf16> to vector<128x128xbf16>
    %cst_88 = arith.constant dense<0.000000e+00> : vector<64x128xf32>
    %129 = tpu.matmul %126, %128, %cst_88 {dimension_numbers = #tpu.dot_dimension_numbers<[1], [0], [0], [1], [0, 0, 1, 1], [], []>} : vector<64x128xbf16>, vector<128x128xbf16>, vector<64x128xf32> -> vector<64x128xf32>
    %130 = arith.addf %119, %129 : vector<64x128xf32>
    %c0_89 = arith.constant 0 : index
    %c4_90 = arith.constant 4 : index
    %131 = vector.load %arg1[%c0_89, %c4_90] : memref<64x12xi32, #tpu.memory_space<vmem>>, vector<64x1xi32>
    %132 = vector.broadcast %131 : vector<64x1xi32> to vector<64x128xi32>
    %133 = arith.cmpi eq, %132, %0 : vector<64x128xi32>
    %cst_91 = arith.constant 1.000000e+00 : f32
    %cst_92 = arith.constant 0.000000e+00 : f32
    %134 = vector.broadcast %cst_91 : f32 to vector<64x128xf32>
    %135 = vector.broadcast %cst_92 : f32 to vector<64x128xf32>
    %136 = arith.select %133, %134, %135 : vector<64x128xi1>, vector<64x128xf32>
    %137 = arith.truncf %136 : vector<64x128xf32> to vector<64x128xbf16>
    %c2_93 = arith.constant 2 : index
    %c0_94 = arith.constant 0 : index
    %c0_95 = arith.constant 0 : index
    %138 = vector.load %arg2[%c2_93, %c0_94, %c0_95] : memref<5x128x128xbf16, #tpu.memory_space<vmem>>, vector<1x128x128xbf16>
    %139 = vector.shape_cast %138 : vector<1x128x128xbf16> to vector<128x128xbf16>
    %cst_96 = arith.constant dense<0.000000e+00> : vector<64x128xf32>
    %140 = tpu.matmul %137, %139, %cst_96 {dimension_numbers = #tpu.dot_dimension_numbers<[1], [0], [0], [1], [0, 0, 1, 1], [], []>} : vector<64x128xbf16>, vector<128x128xbf16>, vector<64x128xf32> -> vector<64x128xf32>
    %141 = arith.addf %130, %140 : vector<64x128xf32>
    %c0_97 = arith.constant 0 : index
    %c5_98 = arith.constant 5 : index
    %142 = vector.load %arg1[%c0_97, %c5_98] : memref<64x12xi32, #tpu.memory_space<vmem>>, vector<64x1xi32>
    %143 = vector.broadcast %142 : vector<64x1xi32> to vector<64x128xi32>
    %144 = arith.cmpi eq, %143, %0 : vector<64x128xi32>
    %cst_99 = arith.constant 1.000000e+00 : f32
    %cst_100 = arith.constant 0.000000e+00 : f32
    %145 = vector.broadcast %cst_99 : f32 to vector<64x128xf32>
    %146 = vector.broadcast %cst_100 : f32 to vector<64x128xf32>
    %147 = arith.select %144, %145, %146 : vector<64x128xi1>, vector<64x128xf32>
    %148 = arith.truncf %147 : vector<64x128xf32> to vector<64x128xbf16>
    %c3_101 = arith.constant 3 : index
    %c0_102 = arith.constant 0 : index
    %c0_103 = arith.constant 0 : index
    %149 = vector.load %arg2[%c3_101, %c0_102, %c0_103] : memref<5x128x128xbf16, #tpu.memory_space<vmem>>, vector<1x128x128xbf16>
    %150 = vector.shape_cast %149 : vector<1x128x128xbf16> to vector<128x128xbf16>
    %cst_104 = arith.constant dense<0.000000e+00> : vector<64x128xf32>
    %151 = tpu.matmul %148, %150, %cst_104 {dimension_numbers = #tpu.dot_dimension_numbers<[1], [0], [0], [1], [0, 0, 1, 1], [], []>} : vector<64x128xbf16>, vector<128x128xbf16>, vector<64x128xf32> -> vector<64x128xf32>
    %152 = arith.addf %141, %151 : vector<64x128xf32>
    %c0_105 = arith.constant 0 : index
    %c6 = arith.constant 6 : index
    %153 = vector.load %arg1[%c0_105, %c6] : memref<64x12xi32, #tpu.memory_space<vmem>>, vector<64x1xi32>
    %154 = vector.broadcast %153 : vector<64x1xi32> to vector<64x128xi32>
    %155 = arith.cmpi eq, %154, %0 : vector<64x128xi32>
    %cst_106 = arith.constant 1.000000e+00 : f32
    %cst_107 = arith.constant 0.000000e+00 : f32
    %156 = vector.broadcast %cst_106 : f32 to vector<64x128xf32>
    %157 = vector.broadcast %cst_107 : f32 to vector<64x128xf32>
    %158 = arith.select %155, %156, %157 : vector<64x128xi1>, vector<64x128xf32>
    %159 = arith.truncf %158 : vector<64x128xf32> to vector<64x128xbf16>
    %c4_108 = arith.constant 4 : index
    %c0_109 = arith.constant 0 : index
    %c0_110 = arith.constant 0 : index
    %160 = vector.load %arg2[%c4_108, %c0_109, %c0_110] : memref<5x128x128xbf16, #tpu.memory_space<vmem>>, vector<1x128x128xbf16>
    %161 = vector.shape_cast %160 : vector<1x128x128xbf16> to vector<128x128xbf16>
    %cst_111 = arith.constant dense<0.000000e+00> : vector<64x128xf32>
    %162 = tpu.matmul %159, %161, %cst_111 {dimension_numbers = #tpu.dot_dimension_numbers<[1], [0], [0], [1], [0, 0, 1, 1], [], []>} : vector<64x128xbf16>, vector<128x128xbf16>, vector<64x128xf32> -> vector<64x128xf32>
    %163 = arith.addf %152, %162 : vector<64x128xf32>
    %164 = arith.maximumf %109, %163 : vector<64x128xf32>
    %c0_112 = arith.constant 0 : index
    %c3_113 = arith.constant 3 : index
    %165 = vector.load %arg1[%c0_112, %c3_113] : memref<64x12xi32, #tpu.memory_space<vmem>>, vector<64x1xi32>
    %166 = vector.broadcast %165 : vector<64x1xi32> to vector<64x128xi32>
    %167 = arith.cmpi eq, %166, %0 : vector<64x128xi32>
    %cst_114 = arith.constant 1.000000e+00 : f32
    %cst_115 = arith.constant 0.000000e+00 : f32
    %168 = vector.broadcast %cst_114 : f32 to vector<64x128xf32>
    %169 = vector.broadcast %cst_115 : f32 to vector<64x128xf32>
    %170 = arith.select %167, %168, %169 : vector<64x128xi1>, vector<64x128xf32>
    %171 = arith.truncf %170 : vector<64x128xf32> to vector<64x128xbf16>
    %c0_116 = arith.constant 0 : index
    %c0_117 = arith.constant 0 : index
    %c0_118 = arith.constant 0 : index
    %172 = vector.load %arg2[%c0_116, %c0_117, %c0_118] : memref<5x128x128xbf16, #tpu.memory_space<vmem>>, vector<1x128x128xbf16>
    %173 = vector.shape_cast %172 : vector<1x128x128xbf16> to vector<128x128xbf16>
    %cst_119 = arith.constant dense<0.000000e+00> : vector<64x128xf32>
    %174 = tpu.matmul %171, %173, %cst_119 {dimension_numbers = #tpu.dot_dimension_numbers<[1], [0], [0], [1], [0, 0, 1, 1], [], []>} : vector<64x128xbf16>, vector<128x128xbf16>, vector<64x128xf32> -> vector<64x128xf32>
    %c0_120 = arith.constant 0 : index
    %c4_121 = arith.constant 4 : index
    %175 = vector.load %arg1[%c0_120, %c4_121] : memref<64x12xi32, #tpu.memory_space<vmem>>, vector<64x1xi32>
    %176 = vector.broadcast %175 : vector<64x1xi32> to vector<64x128xi32>
    %177 = arith.cmpi eq, %176, %0 : vector<64x128xi32>
    %cst_122 = arith.constant 1.000000e+00 : f32
    %cst_123 = arith.constant 0.000000e+00 : f32
    %178 = vector.broadcast %cst_122 : f32 to vector<64x128xf32>
    %179 = vector.broadcast %cst_123 : f32 to vector<64x128xf32>
    %180 = arith.select %177, %178, %179 : vector<64x128xi1>, vector<64x128xf32>
    %181 = arith.truncf %180 : vector<64x128xf32> to vector<64x128xbf16>
    %c1_124 = arith.constant 1 : index
    %c0_125 = arith.constant 0 : index
    %c0_126 = arith.constant 0 : index
    %182 = vector.load %arg2[%c1_124, %c0_125, %c0_126] : memref<5x128x128xbf16, #tpu.memory_space<vmem>>, vector<1x128x128xbf16>
    %183 = vector.shape_cast %182 : vector<1x128x128xbf16> to vector<128x128xbf16>
    %cst_127 = arith.constant dense<0.000000e+00> : vector<64x128xf32>
    %184 = tpu.matmul %181, %183, %cst_127 {dimension_numbers = #tpu.dot_dimension_numbers<[1], [0], [0], [1], [0, 0, 1, 1], [], []>} : vector<64x128xbf16>, vector<128x128xbf16>, vector<64x128xf32> -> vector<64x128xf32>
    %185 = arith.addf %174, %184 : vector<64x128xf32>
    %c0_128 = arith.constant 0 : index
    %c5_129 = arith.constant 5 : index
    %186 = vector.load %arg1[%c0_128, %c5_129] : memref<64x12xi32, #tpu.memory_space<vmem>>, vector<64x1xi32>
    %187 = vector.broadcast %186 : vector<64x1xi32> to vector<64x128xi32>
    %188 = arith.cmpi eq, %187, %0 : vector<64x128xi32>
    %cst_130 = arith.constant 1.000000e+00 : f32
    %cst_131 = arith.constant 0.000000e+00 : f32
    %189 = vector.broadcast %cst_130 : f32 to vector<64x128xf32>
    %190 = vector.broadcast %cst_131 : f32 to vector<64x128xf32>
    %191 = arith.select %188, %189, %190 : vector<64x128xi1>, vector<64x128xf32>
    %192 = arith.truncf %191 : vector<64x128xf32> to vector<64x128xbf16>
    %c2_132 = arith.constant 2 : index
    %c0_133 = arith.constant 0 : index
    %c0_134 = arith.constant 0 : index
    %193 = vector.load %arg2[%c2_132, %c0_133, %c0_134] : memref<5x128x128xbf16, #tpu.memory_space<vmem>>, vector<1x128x128xbf16>
    %194 = vector.shape_cast %193 : vector<1x128x128xbf16> to vector<128x128xbf16>
    %cst_135 = arith.constant dense<0.000000e+00> : vector<64x128xf32>
    %195 = tpu.matmul %192, %194, %cst_135 {dimension_numbers = #tpu.dot_dimension_numbers<[1], [0], [0], [1], [0, 0, 1, 1], [], []>} : vector<64x128xbf16>, vector<128x128xbf16>, vector<64x128xf32> -> vector<64x128xf32>
    %196 = arith.addf %185, %195 : vector<64x128xf32>
    %c0_136 = arith.constant 0 : index
    %c6_137 = arith.constant 6 : index
    %197 = vector.load %arg1[%c0_136, %c6_137] : memref<64x12xi32, #tpu.memory_space<vmem>>, vector<64x1xi32>
    %198 = vector.broadcast %197 : vector<64x1xi32> to vector<64x128xi32>
    %199 = arith.cmpi eq, %198, %0 : vector<64x128xi32>
    %cst_138 = arith.constant 1.000000e+00 : f32
    %cst_139 = arith.constant 0.000000e+00 : f32
    %200 = vector.broadcast %cst_138 : f32 to vector<64x128xf32>
    %201 = vector.broadcast %cst_139 : f32 to vector<64x128xf32>
    %202 = arith.select %199, %200, %201 : vector<64x128xi1>, vector<64x128xf32>
    %203 = arith.truncf %202 : vector<64x128xf32> to vector<64x128xbf16>
    %c3_140 = arith.constant 3 : index
    %c0_141 = arith.constant 0 : index
    %c0_142 = arith.constant 0 : index
    %204 = vector.load %arg2[%c3_140, %c0_141, %c0_142] : memref<5x128x128xbf16, #tpu.memory_space<vmem>>, vector<1x128x128xbf16>
    %205 = vector.shape_cast %204 : vector<1x128x128xbf16> to vector<128x128xbf16>
    %cst_143 = arith.constant dense<0.000000e+00> : vector<64x128xf32>
    %206 = tpu.matmul %203, %205, %cst_143 {dimension_numbers = #tpu.dot_dimension_numbers<[1], [0], [0], [1], [0, 0, 1, 1], [], []>} : vector<64x128xbf16>, vector<128x128xbf16>, vector<64x128xf32> -> vector<64x128xf32>
    %207 = arith.addf %196, %206 : vector<64x128xf32>
    %c0_144 = arith.constant 0 : index
    %c7 = arith.constant 7 : index
    %208 = vector.load %arg1[%c0_144, %c7] : memref<64x12xi32, #tpu.memory_space<vmem>>, vector<64x1xi32>
    %209 = vector.broadcast %208 : vector<64x1xi32> to vector<64x128xi32>
    %210 = arith.cmpi eq, %209, %0 : vector<64x128xi32>
    %cst_145 = arith.constant 1.000000e+00 : f32
    %cst_146 = arith.constant 0.000000e+00 : f32
    %211 = vector.broadcast %cst_145 : f32 to vector<64x128xf32>
    %212 = vector.broadcast %cst_146 : f32 to vector<64x128xf32>
    %213 = arith.select %210, %211, %212 : vector<64x128xi1>, vector<64x128xf32>
    %214 = arith.truncf %213 : vector<64x128xf32> to vector<64x128xbf16>
    %c4_147 = arith.constant 4 : index
    %c0_148 = arith.constant 0 : index
    %c0_149 = arith.constant 0 : index
    %215 = vector.load %arg2[%c4_147, %c0_148, %c0_149] : memref<5x128x128xbf16, #tpu.memory_space<vmem>>, vector<1x128x128xbf16>
    %216 = vector.shape_cast %215 : vector<1x128x128xbf16> to vector<128x128xbf16>
    %cst_150 = arith.constant dense<0.000000e+00> : vector<64x128xf32>
    %217 = tpu.matmul %214, %216, %cst_150 {dimension_numbers = #tpu.dot_dimension_numbers<[1], [0], [0], [1], [0, 0, 1, 1], [], []>} : vector<64x128xbf16>, vector<128x128xbf16>, vector<64x128xf32> -> vector<64x128xf32>
    %218 = arith.addf %207, %217 : vector<64x128xf32>
    %219 = arith.maximumf %164, %218 : vector<64x128xf32>
    %c0_151 = arith.constant 0 : index
    %c4_152 = arith.constant 4 : index
    %220 = vector.load %arg1[%c0_151, %c4_152] : memref<64x12xi32, #tpu.memory_space<vmem>>, vector<64x1xi32>
    %221 = vector.broadcast %220 : vector<64x1xi32> to vector<64x128xi32>
    %222 = arith.cmpi eq, %221, %0 : vector<64x128xi32>
    %cst_153 = arith.constant 1.000000e+00 : f32
    %cst_154 = arith.constant 0.000000e+00 : f32
    %223 = vector.broadcast %cst_153 : f32 to vector<64x128xf32>
    %224 = vector.broadcast %cst_154 : f32 to vector<64x128xf32>
    %225 = arith.select %222, %223, %224 : vector<64x128xi1>, vector<64x128xf32>
    %226 = arith.truncf %225 : vector<64x128xf32> to vector<64x128xbf16>
    %c0_155 = arith.constant 0 : index
    %c0_156 = arith.constant 0 : index
    %c0_157 = arith.constant 0 : index
    %227 = vector.load %arg2[%c0_155, %c0_156, %c0_157] : memref<5x128x128xbf16, #tpu.memory_space<vmem>>, vector<1x128x128xbf16>
    %228 = vector.shape_cast %227 : vector<1x128x128xbf16> to vector<128x128xbf16>
    %cst_158 = arith.constant dense<0.000000e+00> : vector<64x128xf32>
    %229 = tpu.matmul %226, %228, %cst_158 {dimension_numbers = #tpu.dot_dimension_numbers<[1], [0], [0], [1], [0, 0, 1, 1], [], []>} : vector<64x128xbf16>, vector<128x128xbf16>, vector<64x128xf32> -> vector<64x128xf32>
    %c0_159 = arith.constant 0 : index
    %c5_160 = arith.constant 5 : index
    %230 = vector.load %arg1[%c0_159, %c5_160] : memref<64x12xi32, #tpu.memory_space<vmem>>, vector<64x1xi32>
    %231 = vector.broadcast %230 : vector<64x1xi32> to vector<64x128xi32>
    %232 = arith.cmpi eq, %231, %0 : vector<64x128xi32>
    %cst_161 = arith.constant 1.000000e+00 : f32
    %cst_162 = arith.constant 0.000000e+00 : f32
    %233 = vector.broadcast %cst_161 : f32 to vector<64x128xf32>
    %234 = vector.broadcast %cst_162 : f32 to vector<64x128xf32>
    %235 = arith.select %232, %233, %234 : vector<64x128xi1>, vector<64x128xf32>
    %236 = arith.truncf %235 : vector<64x128xf32> to vector<64x128xbf16>
    %c1_163 = arith.constant 1 : index
    %c0_164 = arith.constant 0 : index
    %c0_165 = arith.constant 0 : index
    %237 = vector.load %arg2[%c1_163, %c0_164, %c0_165] : memref<5x128x128xbf16, #tpu.memory_space<vmem>>, vector<1x128x128xbf16>
    %238 = vector.shape_cast %237 : vector<1x128x128xbf16> to vector<128x128xbf16>
    %cst_166 = arith.constant dense<0.000000e+00> : vector<64x128xf32>
    %239 = tpu.matmul %236, %238, %cst_166 {dimension_numbers = #tpu.dot_dimension_numbers<[1], [0], [0], [1], [0, 0, 1, 1], [], []>} : vector<64x128xbf16>, vector<128x128xbf16>, vector<64x128xf32> -> vector<64x128xf32>
    %240 = arith.addf %229, %239 : vector<64x128xf32>
    %c0_167 = arith.constant 0 : index
    %c6_168 = arith.constant 6 : index
    %241 = vector.load %arg1[%c0_167, %c6_168] : memref<64x12xi32, #tpu.memory_space<vmem>>, vector<64x1xi32>
    %242 = vector.broadcast %241 : vector<64x1xi32> to vector<64x128xi32>
    %243 = arith.cmpi eq, %242, %0 : vector<64x128xi32>
    %cst_169 = arith.constant 1.000000e+00 : f32
    %cst_170 = arith.constant 0.000000e+00 : f32
    %244 = vector.broadcast %cst_169 : f32 to vector<64x128xf32>
    %245 = vector.broadcast %cst_170 : f32 to vector<64x128xf32>
    %246 = arith.select %243, %244, %245 : vector<64x128xi1>, vector<64x128xf32>
    %247 = arith.truncf %246 : vector<64x128xf32> to vector<64x128xbf16>
    %c2_171 = arith.constant 2 : index
    %c0_172 = arith.constant 0 : index
    %c0_173 = arith.constant 0 : index
    %248 = vector.load %arg2[%c2_171, %c0_172, %c0_173] : memref<5x128x128xbf16, #tpu.memory_space<vmem>>, vector<1x128x128xbf16>
    %249 = vector.shape_cast %248 : vector<1x128x128xbf16> to vector<128x128xbf16>
    %cst_174 = arith.constant dense<0.000000e+00> : vector<64x128xf32>
    %250 = tpu.matmul %247, %249, %cst_174 {dimension_numbers = #tpu.dot_dimension_numbers<[1], [0], [0], [1], [0, 0, 1, 1], [], []>} : vector<64x128xbf16>, vector<128x128xbf16>, vector<64x128xf32> -> vector<64x128xf32>
    %251 = arith.addf %240, %250 : vector<64x128xf32>
    %c0_175 = arith.constant 0 : index
    %c7_176 = arith.constant 7 : index
    %252 = vector.load %arg1[%c0_175, %c7_176] : memref<64x12xi32, #tpu.memory_space<vmem>>, vector<64x1xi32>
    %253 = vector.broadcast %252 : vector<64x1xi32> to vector<64x128xi32>
    %254 = arith.cmpi eq, %253, %0 : vector<64x128xi32>
    %cst_177 = arith.constant 1.000000e+00 : f32
    %cst_178 = arith.constant 0.000000e+00 : f32
    %255 = vector.broadcast %cst_177 : f32 to vector<64x128xf32>
    %256 = vector.broadcast %cst_178 : f32 to vector<64x128xf32>
    %257 = arith.select %254, %255, %256 : vector<64x128xi1>, vector<64x128xf32>
    %258 = arith.truncf %257 : vector<64x128xf32> to vector<64x128xbf16>
    %c3_179 = arith.constant 3 : index
    %c0_180 = arith.constant 0 : index
    %c0_181 = arith.constant 0 : index
    %259 = vector.load %arg2[%c3_179, %c0_180, %c0_181] : memref<5x128x128xbf16, #tpu.memory_space<vmem>>, vector<1x128x128xbf16>
    %260 = vector.shape_cast %259 : vector<1x128x128xbf16> to vector<128x128xbf16>
    %cst_182 = arith.constant dense<0.000000e+00> : vector<64x128xf32>
    %261 = tpu.matmul %258, %260, %cst_182 {dimension_numbers = #tpu.dot_dimension_numbers<[1], [0], [0], [1], [0, 0, 1, 1], [], []>} : vector<64x128xbf16>, vector<128x128xbf16>, vector<64x128xf32> -> vector<64x128xf32>
    %262 = arith.addf %251, %261 : vector<64x128xf32>
    %c0_183 = arith.constant 0 : index
    %c8 = arith.constant 8 : index
    %263 = vector.load %arg1[%c0_183, %c8] : memref<64x12xi32, #tpu.memory_space<vmem>>, vector<64x1xi32>
    %264 = vector.broadcast %263 : vector<64x1xi32> to vector<64x128xi32>
    %265 = arith.cmpi eq, %264, %0 : vector<64x128xi32>
    %cst_184 = arith.constant 1.000000e+00 : f32
    %cst_185 = arith.constant 0.000000e+00 : f32
    %266 = vector.broadcast %cst_184 : f32 to vector<64x128xf32>
    %267 = vector.broadcast %cst_185 : f32 to vector<64x128xf32>
    %268 = arith.select %265, %266, %267 : vector<64x128xi1>, vector<64x128xf32>
    %269 = arith.truncf %268 : vector<64x128xf32> to vector<64x128xbf16>
    %c4_186 = arith.constant 4 : index
    %c0_187 = arith.constant 0 : index
    %c0_188 = arith.constant 0 : index
    %270 = vector.load %arg2[%c4_186, %c0_187, %c0_188] : memref<5x128x128xbf16, #tpu.memory_space<vmem>>, vector<1x128x128xbf16>
    %271 = vector.shape_cast %270 : vector<1x128x128xbf16> to vector<128x128xbf16>
    %cst_189 = arith.constant dense<0.000000e+00> : vector<64x128xf32>
    %272 = tpu.matmul %269, %271, %cst_189 {dimension_numbers = #tpu.dot_dimension_numbers<[1], [0], [0], [1], [0, 0, 1, 1], [], []>} : vector<64x128xbf16>, vector<128x128xbf16>, vector<64x128xf32> -> vector<64x128xf32>
    %273 = arith.addf %262, %272 : vector<64x128xf32>
    %274 = arith.maximumf %219, %273 : vector<64x128xf32>
    %c0_190 = arith.constant 0 : index
    %c5_191 = arith.constant 5 : index
    %275 = vector.load %arg1[%c0_190, %c5_191] : memref<64x12xi32, #tpu.memory_space<vmem>>, vector<64x1xi32>
    %276 = vector.broadcast %275 : vector<64x1xi32> to vector<64x128xi32>
    %277 = arith.cmpi eq, %276, %0 : vector<64x128xi32>
    %cst_192 = arith.constant 1.000000e+00 : f32
    %cst_193 = arith.constant 0.000000e+00 : f32
    %278 = vector.broadcast %cst_192 : f32 to vector<64x128xf32>
    %279 = vector.broadcast %cst_193 : f32 to vector<64x128xf32>
    %280 = arith.select %277, %278, %279 : vector<64x128xi1>, vector<64x128xf32>
    %281 = arith.truncf %280 : vector<64x128xf32> to vector<64x128xbf16>
    %c0_194 = arith.constant 0 : index
    %c0_195 = arith.constant 0 : index
    %c0_196 = arith.constant 0 : index
    %282 = vector.load %arg2[%c0_194, %c0_195, %c0_196] : memref<5x128x128xbf16, #tpu.memory_space<vmem>>, vector<1x128x128xbf16>
    %283 = vector.shape_cast %282 : vector<1x128x128xbf16> to vector<128x128xbf16>
    %cst_197 = arith.constant dense<0.000000e+00> : vector<64x128xf32>
    %284 = tpu.matmul %281, %283, %cst_197 {dimension_numbers = #tpu.dot_dimension_numbers<[1], [0], [0], [1], [0, 0, 1, 1], [], []>} : vector<64x128xbf16>, vector<128x128xbf16>, vector<64x128xf32> -> vector<64x128xf32>
    %c0_198 = arith.constant 0 : index
    %c6_199 = arith.constant 6 : index
    %285 = vector.load %arg1[%c0_198, %c6_199] : memref<64x12xi32, #tpu.memory_space<vmem>>, vector<64x1xi32>
    %286 = vector.broadcast %285 : vector<64x1xi32> to vector<64x128xi32>
    %287 = arith.cmpi eq, %286, %0 : vector<64x128xi32>
    %cst_200 = arith.constant 1.000000e+00 : f32
    %cst_201 = arith.constant 0.000000e+00 : f32
    %288 = vector.broadcast %cst_200 : f32 to vector<64x128xf32>
    %289 = vector.broadcast %cst_201 : f32 to vector<64x128xf32>
    %290 = arith.select %287, %288, %289 : vector<64x128xi1>, vector<64x128xf32>
    %291 = arith.truncf %290 : vector<64x128xf32> to vector<64x128xbf16>
    %c1_202 = arith.constant 1 : index
    %c0_203 = arith.constant 0 : index
    %c0_204 = arith.constant 0 : index
    %292 = vector.load %arg2[%c1_202, %c0_203, %c0_204] : memref<5x128x128xbf16, #tpu.memory_space<vmem>>, vector<1x128x128xbf16>
    %293 = vector.shape_cast %292 : vector<1x128x128xbf16> to vector<128x128xbf16>
    %cst_205 = arith.constant dense<0.000000e+00> : vector<64x128xf32>
    %294 = tpu.matmul %291, %293, %cst_205 {dimension_numbers = #tpu.dot_dimension_numbers<[1], [0], [0], [1], [0, 0, 1, 1], [], []>} : vector<64x128xbf16>, vector<128x128xbf16>, vector<64x128xf32> -> vector<64x128xf32>
    %295 = arith.addf %284, %294 : vector<64x128xf32>
    %c0_206 = arith.constant 0 : index
    %c7_207 = arith.constant 7 : index
    %296 = vector.load %arg1[%c0_206, %c7_207] : memref<64x12xi32, #tpu.memory_space<vmem>>, vector<64x1xi32>
    %297 = vector.broadcast %296 : vector<64x1xi32> to vector<64x128xi32>
    %298 = arith.cmpi eq, %297, %0 : vector<64x128xi32>
    %cst_208 = arith.constant 1.000000e+00 : f32
    %cst_209 = arith.constant 0.000000e+00 : f32
    %299 = vector.broadcast %cst_208 : f32 to vector<64x128xf32>
    %300 = vector.broadcast %cst_209 : f32 to vector<64x128xf32>
    %301 = arith.select %298, %299, %300 : vector<64x128xi1>, vector<64x128xf32>
    %302 = arith.truncf %301 : vector<64x128xf32> to vector<64x128xbf16>
    %c2_210 = arith.constant 2 : index
    %c0_211 = arith.constant 0 : index
    %c0_212 = arith.constant 0 : index
    %303 = vector.load %arg2[%c2_210, %c0_211, %c0_212] : memref<5x128x128xbf16, #tpu.memory_space<vmem>>, vector<1x128x128xbf16>
    %304 = vector.shape_cast %303 : vector<1x128x128xbf16> to vector<128x128xbf16>
    %cst_213 = arith.constant dense<0.000000e+00> : vector<64x128xf32>
    %305 = tpu.matmul %302, %304, %cst_213 {dimension_numbers = #tpu.dot_dimension_numbers<[1], [0], [0], [1], [0, 0, 1, 1], [], []>} : vector<64x128xbf16>, vector<128x128xbf16>, vector<64x128xf32> -> vector<64x128xf32>
    %306 = arith.addf %295, %305 : vector<64x128xf32>
    %c0_214 = arith.constant 0 : index
    %c8_215 = arith.constant 8 : index
    %307 = vector.load %arg1[%c0_214, %c8_215] : memref<64x12xi32, #tpu.memory_space<vmem>>, vector<64x1xi32>
    %308 = vector.broadcast %307 : vector<64x1xi32> to vector<64x128xi32>
    %309 = arith.cmpi eq, %308, %0 : vector<64x128xi32>
    %cst_216 = arith.constant 1.000000e+00 : f32
    %cst_217 = arith.constant 0.000000e+00 : f32
    %310 = vector.broadcast %cst_216 : f32 to vector<64x128xf32>
    %311 = vector.broadcast %cst_217 : f32 to vector<64x128xf32>
    %312 = arith.select %309, %310, %311 : vector<64x128xi1>, vector<64x128xf32>
    %313 = arith.truncf %312 : vector<64x128xf32> to vector<64x128xbf16>
    %c3_218 = arith.constant 3 : index
    %c0_219 = arith.constant 0 : index
    %c0_220 = arith.constant 0 : index
    %314 = vector.load %arg2[%c3_218, %c0_219, %c0_220] : memref<5x128x128xbf16, #tpu.memory_space<vmem>>, vector<1x128x128xbf16>
    %315 = vector.shape_cast %314 : vector<1x128x128xbf16> to vector<128x128xbf16>
    %cst_221 = arith.constant dense<0.000000e+00> : vector<64x128xf32>
    %316 = tpu.matmul %313, %315, %cst_221 {dimension_numbers = #tpu.dot_dimension_numbers<[1], [0], [0], [1], [0, 0, 1, 1], [], []>} : vector<64x128xbf16>, vector<128x128xbf16>, vector<64x128xf32> -> vector<64x128xf32>
    %317 = arith.addf %306, %316 : vector<64x128xf32>
    %c0_222 = arith.constant 0 : index
    %c9 = arith.constant 9 : index
    %318 = vector.load %arg1[%c0_222, %c9] : memref<64x12xi32, #tpu.memory_space<vmem>>, vector<64x1xi32>
    %319 = vector.broadcast %318 : vector<64x1xi32> to vector<64x128xi32>
    %320 = arith.cmpi eq, %319, %0 : vector<64x128xi32>
    %cst_223 = arith.constant 1.000000e+00 : f32
    %cst_224 = arith.constant 0.000000e+00 : f32
    %321 = vector.broadcast %cst_223 : f32 to vector<64x128xf32>
    %322 = vector.broadcast %cst_224 : f32 to vector<64x128xf32>
    %323 = arith.select %320, %321, %322 : vector<64x128xi1>, vector<64x128xf32>
    %324 = arith.truncf %323 : vector<64x128xf32> to vector<64x128xbf16>
    %c4_225 = arith.constant 4 : index
    %c0_226 = arith.constant 0 : index
    %c0_227 = arith.constant 0 : index
    %325 = vector.load %arg2[%c4_225, %c0_226, %c0_227] : memref<5x128x128xbf16, #tpu.memory_space<vmem>>, vector<1x128x128xbf16>
    %326 = vector.shape_cast %325 : vector<1x128x128xbf16> to vector<128x128xbf16>
    %cst_228 = arith.constant dense<0.000000e+00> : vector<64x128xf32>
    %327 = tpu.matmul %324, %326, %cst_228 {dimension_numbers = #tpu.dot_dimension_numbers<[1], [0], [0], [1], [0, 0, 1, 1], [], []>} : vector<64x128xbf16>, vector<128x128xbf16>, vector<64x128xf32> -> vector<64x128xf32>
    %328 = arith.addf %317, %327 : vector<64x128xf32>
    %329 = arith.maximumf %274, %328 : vector<64x128xf32>
    %c0_229 = arith.constant 0 : index
    %c6_230 = arith.constant 6 : index
    %330 = vector.load %arg1[%c0_229, %c6_230] : memref<64x12xi32, #tpu.memory_space<vmem>>, vector<64x1xi32>
    %331 = vector.broadcast %330 : vector<64x1xi32> to vector<64x128xi32>
    %332 = arith.cmpi eq, %331, %0 : vector<64x128xi32>
    %cst_231 = arith.constant 1.000000e+00 : f32
    %cst_232 = arith.constant 0.000000e+00 : f32
    %333 = vector.broadcast %cst_231 : f32 to vector<64x128xf32>
    %334 = vector.broadcast %cst_232 : f32 to vector<64x128xf32>
    %335 = arith.select %332, %333, %334 : vector<64x128xi1>, vector<64x128xf32>
    %336 = arith.truncf %335 : vector<64x128xf32> to vector<64x128xbf16>
    %c0_233 = arith.constant 0 : index
    %c0_234 = arith.constant 0 : index
    %c0_235 = arith.constant 0 : index
    %337 = vector.load %arg2[%c0_233, %c0_234, %c0_235] : memref<5x128x128xbf16, #tpu.memory_space<vmem>>, vector<1x128x128xbf16>
    %338 = vector.shape_cast %337 : vector<1x128x128xbf16> to vector<128x128xbf16>
    %cst_236 = arith.constant dense<0.000000e+00> : vector<64x128xf32>
    %339 = tpu.matmul %336, %338, %cst_236 {dimension_numbers = #tpu.dot_dimension_numbers<[1], [0], [0], [1], [0, 0, 1, 1], [], []>} : vector<64x128xbf16>, vector<128x128xbf16>, vector<64x128xf32> -> vector<64x128xf32>
    %c0_237 = arith.constant 0 : index
    %c7_238 = arith.constant 7 : index
    %340 = vector.load %arg1[%c0_237, %c7_238] : memref<64x12xi32, #tpu.memory_space<vmem>>, vector<64x1xi32>
    %341 = vector.broadcast %340 : vector<64x1xi32> to vector<64x128xi32>
    %342 = arith.cmpi eq, %341, %0 : vector<64x128xi32>
    %cst_239 = arith.constant 1.000000e+00 : f32
    %cst_240 = arith.constant 0.000000e+00 : f32
    %343 = vector.broadcast %cst_239 : f32 to vector<64x128xf32>
    %344 = vector.broadcast %cst_240 : f32 to vector<64x128xf32>
    %345 = arith.select %342, %343, %344 : vector<64x128xi1>, vector<64x128xf32>
    %346 = arith.truncf %345 : vector<64x128xf32> to vector<64x128xbf16>
    %c1_241 = arith.constant 1 : index
    %c0_242 = arith.constant 0 : index
    %c0_243 = arith.constant 0 : index
    %347 = vector.load %arg2[%c1_241, %c0_242, %c0_243] : memref<5x128x128xbf16, #tpu.memory_space<vmem>>, vector<1x128x128xbf16>
    %348 = vector.shape_cast %347 : vector<1x128x128xbf16> to vector<128x128xbf16>
    %cst_244 = arith.constant dense<0.000000e+00> : vector<64x128xf32>
    %349 = tpu.matmul %346, %348, %cst_244 {dimension_numbers = #tpu.dot_dimension_numbers<[1], [0], [0], [1], [0, 0, 1, 1], [], []>} : vector<64x128xbf16>, vector<128x128xbf16>, vector<64x128xf32> -> vector<64x128xf32>
    %350 = arith.addf %339, %349 : vector<64x128xf32>
    %c0_245 = arith.constant 0 : index
    %c8_246 = arith.constant 8 : index
    %351 = vector.load %arg1[%c0_245, %c8_246] : memref<64x12xi32, #tpu.memory_space<vmem>>, vector<64x1xi32>
    %352 = vector.broadcast %351 : vector<64x1xi32> to vector<64x128xi32>
    %353 = arith.cmpi eq, %352, %0 : vector<64x128xi32>
    %cst_247 = arith.constant 1.000000e+00 : f32
    %cst_248 = arith.constant 0.000000e+00 : f32
    %354 = vector.broadcast %cst_247 : f32 to vector<64x128xf32>
    %355 = vector.broadcast %cst_248 : f32 to vector<64x128xf32>
    %356 = arith.select %353, %354, %355 : vector<64x128xi1>, vector<64x128xf32>
    %357 = arith.truncf %356 : vector<64x128xf32> to vector<64x128xbf16>
    %c2_249 = arith.constant 2 : index
    %c0_250 = arith.constant 0 : index
    %c0_251 = arith.constant 0 : index
    %358 = vector.load %arg2[%c2_249, %c0_250, %c0_251] : memref<5x128x128xbf16, #tpu.memory_space<vmem>>, vector<1x128x128xbf16>
    %359 = vector.shape_cast %358 : vector<1x128x128xbf16> to vector<128x128xbf16>
    %cst_252 = arith.constant dense<0.000000e+00> : vector<64x128xf32>
    %360 = tpu.matmul %357, %359, %cst_252 {dimension_numbers = #tpu.dot_dimension_numbers<[1], [0], [0], [1], [0, 0, 1, 1], [], []>} : vector<64x128xbf16>, vector<128x128xbf16>, vector<64x128xf32> -> vector<64x128xf32>
    %361 = arith.addf %350, %360 : vector<64x128xf32>
    %c0_253 = arith.constant 0 : index
    %c9_254 = arith.constant 9 : index
    %362 = vector.load %arg1[%c0_253, %c9_254] : memref<64x12xi32, #tpu.memory_space<vmem>>, vector<64x1xi32>
    %363 = vector.broadcast %362 : vector<64x1xi32> to vector<64x128xi32>
    %364 = arith.cmpi eq, %363, %0 : vector<64x128xi32>
    %cst_255 = arith.constant 1.000000e+00 : f32
    %cst_256 = arith.constant 0.000000e+00 : f32
    %365 = vector.broadcast %cst_255 : f32 to vector<64x128xf32>
    %366 = vector.broadcast %cst_256 : f32 to vector<64x128xf32>
    %367 = arith.select %364, %365, %366 : vector<64x128xi1>, vector<64x128xf32>
    %368 = arith.truncf %367 : vector<64x128xf32> to vector<64x128xbf16>
    %c3_257 = arith.constant 3 : index
    %c0_258 = arith.constant 0 : index
    %c0_259 = arith.constant 0 : index
    %369 = vector.load %arg2[%c3_257, %c0_258, %c0_259] : memref<5x128x128xbf16, #tpu.memory_space<vmem>>, vector<1x128x128xbf16>
    %370 = vector.shape_cast %369 : vector<1x128x128xbf16> to vector<128x128xbf16>
    %cst_260 = arith.constant dense<0.000000e+00> : vector<64x128xf32>
    %371 = tpu.matmul %368, %370, %cst_260 {dimension_numbers = #tpu.dot_dimension_numbers<[1], [0], [0], [1], [0, 0, 1, 1], [], []>} : vector<64x128xbf16>, vector<128x128xbf16>, vector<64x128xf32> -> vector<64x128xf32>
    %372 = arith.addf %361, %371 : vector<64x128xf32>
    %c0_261 = arith.constant 0 : index
    %c10 = arith.constant 10 : index
    %373 = vector.load %arg1[%c0_261, %c10] : memref<64x12xi32, #tpu.memory_space<vmem>>, vector<64x1xi32>
    %374 = vector.broadcast %373 : vector<64x1xi32> to vector<64x128xi32>
    %375 = arith.cmpi eq, %374, %0 : vector<64x128xi32>
    %cst_262 = arith.constant 1.000000e+00 : f32
    %cst_263 = arith.constant 0.000000e+00 : f32
    %376 = vector.broadcast %cst_262 : f32 to vector<64x128xf32>
    %377 = vector.broadcast %cst_263 : f32 to vector<64x128xf32>
    %378 = arith.select %375, %376, %377 : vector<64x128xi1>, vector<64x128xf32>
    %379 = arith.truncf %378 : vector<64x128xf32> to vector<64x128xbf16>
    %c4_264 = arith.constant 4 : index
    %c0_265 = arith.constant 0 : index
    %c0_266 = arith.constant 0 : index
    %380 = vector.load %arg2[%c4_264, %c0_265, %c0_266] : memref<5x128x128xbf16, #tpu.memory_space<vmem>>, vector<1x128x128xbf16>
    %381 = vector.shape_cast %380 : vector<1x128x128xbf16> to vector<128x128xbf16>
    %cst_267 = arith.constant dense<0.000000e+00> : vector<64x128xf32>
    %382 = tpu.matmul %379, %381, %cst_267 {dimension_numbers = #tpu.dot_dimension_numbers<[1], [0], [0], [1], [0, 0, 1, 1], [], []>} : vector<64x128xbf16>, vector<128x128xbf16>, vector<64x128xf32> -> vector<64x128xf32>
    %383 = arith.addf %372, %382 : vector<64x128xf32>
    %384 = arith.maximumf %329, %383 : vector<64x128xf32>
    %c0_268 = arith.constant 0 : index
    %c7_269 = arith.constant 7 : index
    %385 = vector.load %arg1[%c0_268, %c7_269] : memref<64x12xi32, #tpu.memory_space<vmem>>, vector<64x1xi32>
    %386 = vector.broadcast %385 : vector<64x1xi32> to vector<64x128xi32>
    %387 = arith.cmpi eq, %386, %0 : vector<64x128xi32>
    %cst_270 = arith.constant 1.000000e+00 : f32
    %cst_271 = arith.constant 0.000000e+00 : f32
    %388 = vector.broadcast %cst_270 : f32 to vector<64x128xf32>
    %389 = vector.broadcast %cst_271 : f32 to vector<64x128xf32>
    %390 = arith.select %387, %388, %389 : vector<64x128xi1>, vector<64x128xf32>
    %391 = arith.truncf %390 : vector<64x128xf32> to vector<64x128xbf16>
    %c0_272 = arith.constant 0 : index
    %c0_273 = arith.constant 0 : index
    %c0_274 = arith.constant 0 : index
    %392 = vector.load %arg2[%c0_272, %c0_273, %c0_274] : memref<5x128x128xbf16, #tpu.memory_space<vmem>>, vector<1x128x128xbf16>
    %393 = vector.shape_cast %392 : vector<1x128x128xbf16> to vector<128x128xbf16>
    %cst_275 = arith.constant dense<0.000000e+00> : vector<64x128xf32>
    %394 = tpu.matmul %391, %393, %cst_275 {dimension_numbers = #tpu.dot_dimension_numbers<[1], [0], [0], [1], [0, 0, 1, 1], [], []>} : vector<64x128xbf16>, vector<128x128xbf16>, vector<64x128xf32> -> vector<64x128xf32>
    %c0_276 = arith.constant 0 : index
    %c8_277 = arith.constant 8 : index
    %395 = vector.load %arg1[%c0_276, %c8_277] : memref<64x12xi32, #tpu.memory_space<vmem>>, vector<64x1xi32>
    %396 = vector.broadcast %395 : vector<64x1xi32> to vector<64x128xi32>
    %397 = arith.cmpi eq, %396, %0 : vector<64x128xi32>
    %cst_278 = arith.constant 1.000000e+00 : f32
    %cst_279 = arith.constant 0.000000e+00 : f32
    %398 = vector.broadcast %cst_278 : f32 to vector<64x128xf32>
    %399 = vector.broadcast %cst_279 : f32 to vector<64x128xf32>
    %400 = arith.select %397, %398, %399 : vector<64x128xi1>, vector<64x128xf32>
    %401 = arith.truncf %400 : vector<64x128xf32> to vector<64x128xbf16>
    %c1_280 = arith.constant 1 : index
    %c0_281 = arith.constant 0 : index
    %c0_282 = arith.constant 0 : index
    %402 = vector.load %arg2[%c1_280, %c0_281, %c0_282] : memref<5x128x128xbf16, #tpu.memory_space<vmem>>, vector<1x128x128xbf16>
    %403 = vector.shape_cast %402 : vector<1x128x128xbf16> to vector<128x128xbf16>
    %cst_283 = arith.constant dense<0.000000e+00> : vector<64x128xf32>
    %404 = tpu.matmul %401, %403, %cst_283 {dimension_numbers = #tpu.dot_dimension_numbers<[1], [0], [0], [1], [0, 0, 1, 1], [], []>} : vector<64x128xbf16>, vector<128x128xbf16>, vector<64x128xf32> -> vector<64x128xf32>
    %405 = arith.addf %394, %404 : vector<64x128xf32>
    %c0_284 = arith.constant 0 : index
    %c9_285 = arith.constant 9 : index
    %406 = vector.load %arg1[%c0_284, %c9_285] : memref<64x12xi32, #tpu.memory_space<vmem>>, vector<64x1xi32>
    %407 = vector.broadcast %406 : vector<64x1xi32> to vector<64x128xi32>
    %408 = arith.cmpi eq, %407, %0 : vector<64x128xi32>
    %cst_286 = arith.constant 1.000000e+00 : f32
    %cst_287 = arith.constant 0.000000e+00 : f32
    %409 = vector.broadcast %cst_286 : f32 to vector<64x128xf32>
    %410 = vector.broadcast %cst_287 : f32 to vector<64x128xf32>
    %411 = arith.select %408, %409, %410 : vector<64x128xi1>, vector<64x128xf32>
    %412 = arith.truncf %411 : vector<64x128xf32> to vector<64x128xbf16>
    %c2_288 = arith.constant 2 : index
    %c0_289 = arith.constant 0 : index
    %c0_290 = arith.constant 0 : index
    %413 = vector.load %arg2[%c2_288, %c0_289, %c0_290] : memref<5x128x128xbf16, #tpu.memory_space<vmem>>, vector<1x128x128xbf16>
    %414 = vector.shape_cast %413 : vector<1x128x128xbf16> to vector<128x128xbf16>
    %cst_291 = arith.constant dense<0.000000e+00> : vector<64x128xf32>
    %415 = tpu.matmul %412, %414, %cst_291 {dimension_numbers = #tpu.dot_dimension_numbers<[1], [0], [0], [1], [0, 0, 1, 1], [], []>} : vector<64x128xbf16>, vector<128x128xbf16>, vector<64x128xf32> -> vector<64x128xf32>
    %416 = arith.addf %405, %415 : vector<64x128xf32>
    %c0_292 = arith.constant 0 : index
    %c10_293 = arith.constant 10 : index
    %417 = vector.load %arg1[%c0_292, %c10_293] : memref<64x12xi32, #tpu.memory_space<vmem>>, vector<64x1xi32>
    %418 = vector.broadcast %417 : vector<64x1xi32> to vector<64x128xi32>
    %419 = arith.cmpi eq, %418, %0 : vector<64x128xi32>
    %cst_294 = arith.constant 1.000000e+00 : f32
    %cst_295 = arith.constant 0.000000e+00 : f32
    %420 = vector.broadcast %cst_294 : f32 to vector<64x128xf32>
    %421 = vector.broadcast %cst_295 : f32 to vector<64x128xf32>
    %422 = arith.select %419, %420, %421 : vector<64x128xi1>, vector<64x128xf32>
    %423 = arith.truncf %422 : vector<64x128xf32> to vector<64x128xbf16>
    %c3_296 = arith.constant 3 : index
    %c0_297 = arith.constant 0 : index
    %c0_298 = arith.constant 0 : index
    %424 = vector.load %arg2[%c3_296, %c0_297, %c0_298] : memref<5x128x128xbf16, #tpu.memory_space<vmem>>, vector<1x128x128xbf16>
    %425 = vector.shape_cast %424 : vector<1x128x128xbf16> to vector<128x128xbf16>
    %cst_299 = arith.constant dense<0.000000e+00> : vector<64x128xf32>
    %426 = tpu.matmul %423, %425, %cst_299 {dimension_numbers = #tpu.dot_dimension_numbers<[1], [0], [0], [1], [0, 0, 1, 1], [], []>} : vector<64x128xbf16>, vector<128x128xbf16>, vector<64x128xf32> -> vector<64x128xf32>
    %427 = arith.addf %416, %426 : vector<64x128xf32>
    %c0_300 = arith.constant 0 : index
    %c11 = arith.constant 11 : index
    %428 = vector.load %arg1[%c0_300, %c11] : memref<64x12xi32, #tpu.memory_space<vmem>>, vector<64x1xi32>
    %429 = vector.broadcast %428 : vector<64x1xi32> to vector<64x128xi32>
    %430 = arith.cmpi eq, %429, %0 : vector<64x128xi32>
    %cst_301 = arith.constant 1.000000e+00 : f32
    %cst_302 = arith.constant 0.000000e+00 : f32
    %431 = vector.broadcast %cst_301 : f32 to vector<64x128xf32>
    %432 = vector.broadcast %cst_302 : f32 to vector<64x128xf32>
    %433 = arith.select %430, %431, %432 : vector<64x128xi1>, vector<64x128xf32>
    %434 = arith.truncf %433 : vector<64x128xf32> to vector<64x128xbf16>
    %c4_303 = arith.constant 4 : index
    %c0_304 = arith.constant 0 : index
    %c0_305 = arith.constant 0 : index
    %435 = vector.load %arg2[%c4_303, %c0_304, %c0_305] : memref<5x128x128xbf16, #tpu.memory_space<vmem>>, vector<1x128x128xbf16>
    %436 = vector.shape_cast %435 : vector<1x128x128xbf16> to vector<128x128xbf16>
    %cst_306 = arith.constant dense<0.000000e+00> : vector<64x128xf32>
    %437 = tpu.matmul %434, %436, %cst_306 {dimension_numbers = #tpu.dot_dimension_numbers<[1], [0], [0], [1], [0, 0, 1, 1], [], []>} : vector<64x128xbf16>, vector<128x128xbf16>, vector<64x128xf32> -> vector<64x128xf32>
    %438 = arith.addf %427, %437 : vector<64x128xf32>
    %439 = arith.maximumf %384, %438 : vector<64x128xf32>
    %c0_307 = arith.constant 0 : index
    %c0_308 = arith.constant 0 : index
    %440 = vector.load %arg3[%c0_307, %c0_308] : memref<1x128xf32, #tpu.memory_space<vmem>>, vector<1x128xf32>
    %441 = vector.broadcast %440 : vector<1x128xf32> to vector<64x128xf32>
    %442 = arith.addf %439, %441 : vector<64x128xf32>
    %cst_309 = arith.constant 0.000000e+00 : f32
    %443 = vector.broadcast %cst_309 : f32 to vector<64x128xf32>
    %444 = arith.maximumf %442, %443 : vector<64x128xf32>
    %445 = arith.truncf %444 : vector<64x128xf32> to vector<64x128xbf16>
    %c0_310 = arith.constant 0 : index
    %c0_311 = arith.constant 0 : index
    %446 = vector.load %arg4[%c0_310, %c0_311] : memref<128x256xbf16, #tpu.memory_space<vmem>>, vector<128x256xbf16>
    %cst_312 = arith.constant dense<0.000000e+00> : vector<64x256xf32>
    %447 = tpu.matmul %445, %446, %cst_312 {dimension_numbers = #tpu.dot_dimension_numbers<[1], [0], [0], [1], [0, 0, 1, 1], [], []>} : vector<64x128xbf16>, vector<128x256xbf16>, vector<64x256xf32> -> vector<64x256xf32>
    %c0_313 = arith.constant 0 : index
    %c0_314 = arith.constant 0 : index
    %448 = vector.load %arg5[%c0_313, %c0_314] : memref<1x256xf32, #tpu.memory_space<vmem>>, vector<1x256xf32>
    %449 = vector.broadcast %448 : vector<1x256xf32> to vector<64x256xf32>
    %450 = arith.addf %447, %449 : vector<64x256xf32>
    %451 = vector.extract_strided_slice %450 {offsets = [0, 0], sizes = [64, 128], strides = [1, 1]} : vector<64x256xf32> to vector<64x128xf32>
    %cst_315 = arith.constant 0.000000e+00 : f32
    %452 = vector.broadcast %cst_315 : f32 to vector<64x128xf32>
    %453 = arith.maximumf %451, %452 : vector<64x128xf32>
    %454 = vector.extract_strided_slice %450 {offsets = [0, 128], sizes = [64, 128], strides = [1, 1]} : vector<64x256xf32> to vector<64x128xf32>
    %455 = arith.negf %454 : vector<64x128xf32>
    %456 = math.exp %455 : vector<64x128xf32>
    %cst_316 = arith.constant 1.000000e+00 : f32
    %457 = vector.broadcast %cst_316 : f32 to vector<64x128xf32>
    %458 = arith.addf %457, %456 : vector<64x128xf32>
    %459 = arith.divf %457, %458 : vector<64x128xf32>
    %460 = arith.mulf %459, %453 : vector<64x128xf32>
    %cst_317 = arith.constant 1.000000e+00 : f32
    %461 = vector.broadcast %cst_317 : f32 to vector<64x128xf32>
    %462 = arith.subf %461, %459 : vector<64x128xf32>
    %463 = arith.mulf %462, %444 : vector<64x128xf32>
    %464 = arith.addf %460, %463 : vector<64x128xf32>
    %c0_318 = arith.constant 0 : index
    %c0_319 = arith.constant 0 : index
    %465 = vector.load %arg6[%c0_318, %c0_319] : memref<64x128xf32, #tpu.memory_space<vmem>>, vector<64x128xf32>
    tpu.vector_store %arg6[%c0_318, %c0_319], %464 {strides = array<i32>} : memref<64x128xf32, #tpu.memory_space<vmem>>, vector<64x128xf32>,
    return
  }
  func.func @transform_0(%arg0: i32) -> (i32, i32) {
    %c0_i32 = arith.constant 0 : i32
    %c0_i32_0 = arith.constant 0 : i32
    return %arg0, %c0_i32 : i32, i32
  }
  func.func @transform_1(%arg0: i32) -> (i32, i32, i32) {
    %c0_i32 = arith.constant 0 : i32
    %c0_i32_0 = arith.constant 0 : i32
    %c0_i32_1 = arith.constant 0 : i32
    %c0_i32_2 = arith.constant 0 : i32
    return %c0_i32, %c0_i32_0, %c0_i32_1 : i32, i32, i32
  }
  func.func @transform_2(%arg0: i32) -> (i32, i32) {
    %c0_i32 = arith.constant 0 : i32
    %c0_i32_0 = arith.constant 0 : i32
    %c0_i32_1 = arith.constant 0 : i32
    return %c0_i32, %c0_i32_0 : i32, i32
  }
  func.func @transform_3(%arg0: i32) -> (i32, i32) {
    %c0_i32 = arith.constant 0 : i32
    %c0_i32_0 = arith.constant 0 : i32
    %c0_i32_1 = arith.constant 0 : i32
    return %c0_i32, %c0_i32_0 : i32, i32
  }
  func.func @transform_4(%arg0: i32) -> (i32, i32) {
    %c0_i32 = arith.constant 0 : i32
    %c0_i32_0 = arith.constant 0 : i32
    %c0_i32_1 = arith.constant 0 : i32
    return %c0_i32, %c0_i32_0 : i32, i32
  }
  func.func @transform_5(%arg0: i32) -> (i32, i32) {
    %c0_i32 = arith.constant 0 : i32
    %c0_i32_0 = arith.constant 0 : i32
    return %arg0, %c0_i32 : i32, i32
  }
}

</mosaic_0001>

<bundles_post_ra>
// kernel: tpu_custom_call.1
= control target key start
LH: loop header
LB: loop body
LE: loop exit
PB: predicated region body
PF: predicated region fallthrough
CT: control target
= control target key end

     0   :  { %10 = vsyncpa [#allocation3], 0  ;;  %s8905_s0 = inlined_call_operand.vmem [shape: s32[128,12], index: 0, kind: input, shape index: {}]   ;;  %s8906_s1 = inlined_call_operand.hbm [shape: bf16[5,128,128], index: 1, kind: input, shape index: {}]   ;;  %s8907_s2 = inlined_call_operand.vmem [shape: f32[1,128], index: 2, kind: input, shape index: {}]   ;;  %s8908_s3 = inlined_call_operand.vmem [shape: bf16[128,256], index: 3, kind: input, shape index: {}]   ;;  %s8909_s4 = inlined_call_operand.vmem [shape: f32[1,256], index: 4, kind: input, shape index: {}]   ;;  %s8910_s5 = inlined_call_operand.hbm [shape: f32[128,128], index: 5, kind: output, shape index: {}]  }
   0x1   :  { %11 = vsyncpa [#allocation4], 0 }
   0x2   :  { %13 = vsyncpa [#allocation4 + $0x1], 0  ;;  %s6833_s18 = smov 0   ;;  %s6835_s19 = smov 0  }
   0x3   :  { %s6837_s20 = smov 0   ;;  %s6839_s21 = smov 0  }
   0x4 LB: > { %s6854_s22 = sadd.s32 4294967295, %s6782_s21   ;;  %s4344_s23 = sadd.s32 4294967294, %s6782_s21   ;;  %s6782_s21 = sphi %s6839_s21, %s9089_s21   ;;  %s6778_s20 = sphi %s6837_s20, %s9088_s20   ;;  %s6774_s19 = sphi %s6835_s19, %s9087_s19   ;;  %s6770_s18 = sphi %s6833_s18, %s9086_s18  }
   0x5   : > { %s6858_s24 = sadd.s32 1, %s6782_s21   ;;  %s136_s25 = sadd.s32 1, %s6778_s20 }
   0x6   : > { %s133_s26 = ssub.s32 %s6782_s21, %s6858_s24  ;;  %p146_p0 = scmp.ne.s32.totalorder %s6778_s20, %s6774_s19 }
   0x7   : > { %p134_p1 = scmp.eq.s32.totalorder %s133_s26, 0  ;;  %p147_p2 = scmp.eq.s32.totalorder %s6854_s22, 1 }
   0x8   : > { %p152_p3 = scmp.ne.s32.totalorder %s6774_s19, %s6770_s18  ;;  %p153_p4 = scmp.eq.s32.totalorder %s4344_s23, 1 }
   0x9   : > { %s6869_s27 = scalar_select %p134_p1, %s6778_s20, %s136_s25  }
   0xa   : > { %p6871_p5 = por %p147_p2, %p146_p0  ;;  %p6875_p6 = por %p153_p4, %p152_p3 }
   0xb   : > { %p4345_p7 = scmp.ge.s32.totalorder %s6782_s21, 1  ;;  %p160_p8 = scmp.lt.s32.totalorder %s6782_s21, 3 }
   0xc   : > { %s8955_s28 = scalar_select %p6871_p5, 1, 0 }
   0xd   : > { %s8956_s29 = scalar_select %p6875_p6, 1, 0 }
   0xe   : > { %p8911_p9 = scmp.eq.s32.totalorder %s6854_s22, 0  ;;  %p6882_p10 = pnand %p4345_p7, %p160_p8 }
   0xf   : > { %s6784_s6 = smov [#allocation2]   ;;  %s6688_s11 = scalar_lea.hbm %s8906_s1, 5120 }
  0x10   : > { %s8957_s30 = scalar_select %p6882_p10, 1, 0 }
  0x11   : > { %s172_s7 = sshll.u32 %s6784_s6, 4  ;;  %p6446_p11 = pneg %p6882_p10  ;;  %s173_s7 = int_to_ptr.vmem [resolvable:$true] %s172_s7 }
  0x12   : > { %p6689_p13 = scmp.ne.s32.totalorder %s8906_s1, %s6688_s11  ;;  %p6695_p3 = scmp.lt.u32.totalorder %s6688_s11, %s8906_s1 }
  0x13   : > { %p6890_p12 = pnand %p8911_p9, %p6446_p11 }
  0x15   : > { %p6690_p0 = pneg %p6890_p12 }
  0x17   : > { %p6691_p1 = pnand %p6690_p0, %p6689_p13 }
  0x19   : > { %p6692_p2 = pneg %p6691_p1 }
  0x1b   : > { %p6697_p4 = pnand %p6695_p3, %p6692_p2 }
  0x1d   : > { %6700 = shalt.err (!%p6697_p4)
}
  0x1e   : > { %s6701_s16 = scalar_lea.vmem %s173_s7, 5120  ;;  %p6709_p9 = scmp.lt.s32.totalorder %s173_s7, %s173_s7 }
  0x1f   : > { %p6702_p7 = scmp.ne.s32.totalorder %s173_s7, %s6701_s16  ;;  %p6710_p6 = scmp.lt.s32.totalorder %s6701_s16, %s6701_s16 }
  0x21   : > { %p6704_p8 = pnand %p6702_p7, %p6690_p0  ;;  %p6711_p5 = por %p6710_p6, %p6709_p9 }
  0x23   : > { %p6705_p11 = pneg %p6704_p8 }
  0x25   : > { %p6712_p10 = pnand %p6711_p5, %p6705_p11 }
  0x27   : > { %6715 = shalt.err (!%p6712_p10)
}
  0x28   : > { %s6785_s17 = smov 64   ;;  %s6786_s23 = smov 4  }
  0x29   : > { %6449 = dma.hbm_to_vmem [thread:$0]  (!%p6890_p12), %s8906_s1, 5120, %s173_s7, [#allocation3], %s6785_s17, %s6785_s17, %s6786_s23  }
  0x2a   : > { %p8959_p13 = scmp.ne.s32.totalorder %s8957_s30, 0 }
  0x2c   : > { %206 = sbr.rel (%p8959_p13) target bundleno = 1348 (0x544), region = 40 }
  0x33   : > { %p8960_p1 = scmp.eq.s32.totalorder %s6854_s22, 0 }
  0x35   : > { %6761 = dma.done.wait (%p8960_p1), [#allocation3], 5120   ;;  %p8961_p0 = pmov %p8960_p1 }
  0x36   : > { %s4351_s6 = sshll.u32 %s6854_s22, 3  ;;  %v6787_v0 = vmov 1   ;;  %v6936_v5 = vld [vmem:[#allocation2 + $0x40] sm:$0xff]   ;;  %v6938_v6 = vld [vmem:[#allocation2 + $0x48] sm:$0xff]   ;;  %v6954_v10 = vld [vmem:[#allocation2 + $0x50] sm:$0xff]   ;;  %v6788_v16 = vmov 2   ;;  %v8918_v31 = vlaneseq }
  0x37   : > { %6763 = vsyncadd (%p8961_p0), [#allocation3], 4294962176  ;;  %6508 = vset.pattern.permute.xlu1 %v6787_v0  ;;  %6507 = vset.pattern.permute.xlu0 %v6787_v0  ;;  %p235_p5 = scmp.lt.s32.totalorder %s4351_s6, 15  ;;  %v6961_v12 = vld [vmem:[#allocation2 + $0x58] sm:$0xff]   ;;  %v6964_v13 = vld [vmem:[#allocation2] sm:$0xff]   ;;  %v8919_v24 = vmov 0  }
  0x38   : > { %5224 = vmatprep.subr.bf16.mxu1 %v6936_v5  ;;  %v6969_v14 = vld [vmem:[#allocation2 + $0x60] sm:$0xff]   ;;  %5248 = vmatprep.subr.bf16.mxu0 %v6964_v13  ;;  %v6975_v15 = vld [vmem:[#allocation2 + $0x8] sm:$0xff]   ;;  %v6983_v18 = vld [vmem:[#allocation2 + $0x10] sm:$0xff]   ;;  %v6790_v28 = vmov 3   ;;  %v6791_v29 = vmov 4   ;;  %v6792_v30 = vmov 5  }
  0x39   : > { %s9091_s6 = smov (!%p235_p5, %s4351_s6), 15  ;;  %5225 = vmatpush3.bf16.msra.mxu1 %v6936_v5  ;;  %5249 = vmatpush3.bf16.msra.mxu0 %v6964_v13  ;;  %v6979_v17 = vld [vmem:[#allocation2 + $0x68] sm:$0xff]   ;;  %v6990_v19 = vld [vmem:[#allocation2 + $0x70] sm:$0xff]   ;;  %v6993_v20 = vld [vmem:[#allocation2 + $0x18] sm:$0xff]   ;;  %v7065_v34 = vand.u32 127, %v8918_v31  ;;  %v6794_v46 = vmov 6  }
  0x3a   : > { %s4352_s8 = sshll.u32 %s9091_s6, 3  ;;  %5226 = vmatprep.subr.bf16.mxu1 %v6938_v6  ;;  %5250 = vmatprep.subr.bf16.mxu0 %v6975_v15  ;;  %v7000_v21 = vld [vmem:[#allocation2 + $0x78] sm:$0xff]   ;;  %v7003_v22 = vld [vmem:[#allocation2 + $0x20] sm:$0xff]   ;;  %v7011_v23 = vld [vmem:[#allocation2 + $0x28] sm:$0xff]   ;;  %v8921_v39 = vmov 1.0|1.0  }
  0x3b   : > { %s6920_s7 = scalar_lea.vmem %s8905_s0, %s4352_s8  ;;  %v7020_v25 = vld [vmem:[#allocation2 + $0x30] sm:$0xff]   ;;  %v7029_v26 = vld [vmem:[#allocation2 + $0x38] sm:$0xff]   ;;  %v7035_v27 = vld [vmem:[#allocation2 + $0x80] sm:$0xff]   ;;  %v6797_v61 = vmov 9   ;;  %s231_s14 = sand.u32 1, %s6774_s19  }
  0x3c   : > { %v6923_v1 = vld [vmem:[%s6920_s7 + $0x10] sm:$0xff]  ;;  %v6926_v2 = vld [vmem:[%s6920_s7] sm:$0xff]  ;;  %v6931_v3 = vld [vmem:[%s6920_s7 + $0x18] sm:$0xff]  ;;  %s4350_s15 = sshll.u32 %s231_s14, 6  ;;  %s4743_s17 = sshll.u32 %s6854_s22, 10 }
  0x3d   : > { %319 = vperm.xlu1 %6508, %v6923_v1   ;;  %313 = vperm.xlu0 %6507, %v6926_v2   ;;  %v6934_v4 = vld [vmem:[%s6920_s7 + $0x8] sm:$0xff]  ;;  %v6946_v8 = vld [vmem:[%s6920_s7 + $0x20] sm:$0xff]  ;;  %v6951_v9 = vld [vmem:[%s6920_s7 + $0x38] sm:$0xff]  ;;  %s8823_s16 = scalar_lea.vmem [#allocation5], %s4350_s15  ;;  %s8856_s6 = scalar_lea.hbm %s8910_s5, %s4743_s17 }
  0x3e   : > { %v6943_v7 = vld [vmem:[%s6920_s7 + $0x28] sm:$0xff]  ;;  %v6959_v11 = vld [vmem:[%s6920_s7 + $0x30] sm:$0xff]  ;;  %5227 = vmatpush3.bf16.msra.mxu1 %v6938_v6  ;;  %5251 = vmatpush3.bf16.msra.mxu0 %v6975_v15  ;;  %v7578_v49 = vld [vmem:[%s6920_s7 + $0x18] sm:$0xff]  ;;  %s4270_s23 = sshll.u32 %s8823_s16, 4  ;;  %s8864_s22 = scalar_lea.sflag [#allocation4], %s231_s14  ;;  %s8858_s23 = int_to_ptr.vmem [resolvable:$true] %s4270_s23 }
  0x3f   : > { %5228 = vmatprep.subr.bf16.mxu1 %v6954_v10  ;;  %5252 = vmatprep.subr.bf16.mxu0 %v6983_v18  ;;  %v7161_v63 = vld [vmem:[#allocation2 + $0x88] sm:$0xff]   ;;  %v7597_v31 = vld [vmem:[#allocation2 + $0x70] sm:$0xff]   ;;  %v7653_v59 = vld [vmem:[#allocation2 + $0x20] sm:$0xff]   ;;  %s6716_s8 = scalar_lea.vmem %s8858_s23, 1024  ;;  %p9084_p9 = scmp.ne.s32.totalorder %s8955_s28, 0 }
  0x40   : > { %p6717_p6 = scmp.ne.s32.totalorder %s8858_s23, %s6716_s8  ;;  %s6800_s9 = smov [#allocation5]  }
  0x41   : > { %322 = vperm.xlu1 %6508, %v6931_v3   ;;  %316 = vperm.xlu0 %6507, %v6934_v4   ;;  %s6720_s10 = sshll.u32 %s6800_s9, 4  ;;  %s6721_s10 = int_to_ptr.vmem [resolvable:$false] %s6720_s10 }
  0x42   : > { %5229 = vmatpush3.bf16.msra.mxu1 %v6954_v10  ;;  %5253 = vmatpush3.bf16.msra.mxu0 %v6983_v18  ;;  %p6718_p10 = pnand %p6717_p6, %p9084_p9  ;;  %p6723_p2 = scmp.lt.s32.totalorder %s8858_s23, %s6721_s10 }
  0x43   : > { %5230 = vmatprep.subr.bf16.mxu1 %v6961_v12  ;;  %5254 = vmatprep.subr.bf16.mxu0 %v6993_v20 }
  0x44   : > { %p6719_p12 = pneg %p6718_p10 }
  0x45   : > { %328 = vperm.xlu1 %6508, %v6943_v7   ;;  %325 = vperm.xlu0 %6507, %v6946_v8  }
  0x46   : > { %5231 = vmatpush3.bf16.msra.mxu1 %v6961_v12  ;;  %5255 = vmatpush3.bf16.msra.mxu0 %v6993_v20 }
  0x47   : > { %5232 = vmatprep.subr.bf16.mxu1 %v6969_v14  ;;  %5256 = vmatprep.subr.bf16.mxu0 %v7003_v22 }
  0x49   : > { %334 = vperm.xlu1 %6508, %v6951_v9   ;;  %331 = vperm.xlu0 %6507, %v6959_v11  }
  0x4a   : > { %5233 = vmatpush3.bf16.msra.mxu1 %v6969_v14  ;;  %5257 = vmatpush3.bf16.msra.mxu0 %v7003_v22 }
  0x4b   : > { %5234 = vmatprep.subr.bf16.mxu1 %v6979_v17  ;;  %5258 = vmatprep.subr.bf16.mxu0 %v7011_v23 }
  0x4d   : > { %6510 = vset.pattern.permute.xlu1 %v6788_v16  ;;  %6509 = vset.pattern.permute.xlu0 %v6788_v16  ;;  %v8976_v16 = vmov 0 }
  0x4e   : > { %603 = vperm.xlu1 %6510, %v6934_v4   ;;  %600 = vperm.xlu0 %6509, %v6926_v2  }
  0x4f   : > { %5235 = vmatpush3.bf16.msra.mxu1 %v6979_v17  ;;  %5259 = vmatpush3.bf16.msra.mxu0 %v7011_v23 }
  0x50   : > { %5236 = vmatprep.subr.bf16.mxu1 %v6990_v19  ;;  %5260 = vmatprep.subr.bf16.mxu0 %v7020_v25 }
  0x52   : > { %606 = vperm.xlu1 %6510, %v6923_v1   ;;  %609 = vperm.xlu0 %6509, %v6931_v3  }
  0x53   : > { %5237 = vmatpush3.bf16.msra.mxu1 %v6990_v19  ;;  %5261 = vmatpush3.bf16.msra.mxu0 %v7020_v25 }
  0x54   : > { %5238 = vmatprep.subr.bf16.mxu1 %v7000_v21  ;;  %5262 = vmatprep.subr.bf16.mxu0 %v7029_v26 }
  0x56   : > { %612 = vperm.xlu1 %6510, %v6946_v8   ;;  %615 = vperm.xlu0 %6509, %v6943_v7  }
  0x57   : > { %5239 = vmatpush3.bf16.msra.mxu1 %v7000_v21  ;;  %5263 = vmatpush3.bf16.msra.mxu0 %v7029_v26 }
  0x58   : > { %5344 = vmatprep.subr.bf16.mxu1 %v6936_v5  ;;  %5272 = vmatprep.subr.bf16.mxu0 %v7035_v27 }
  0x5a   : > { %618 = vperm.xlu1 %6510, %v6959_v11   ;;  %621 = vperm.xlu0 %6509, %v6951_v9  }
  0x5e   : > { %6511 = vset.pattern.permute.xlu1 %v8919_v24  ;;  %6512 = vset.pattern.permute.xlu0 %v8919_v24  ;;  %v7667_v24 = vld [vmem:[#allocation2 + $0x28] sm:$0xff]  }
  0x5f   : > { %253 = vperm.xlu1 %6511, %v6926_v2   ;;  %256 = vperm.xlu0 %6512, %v6934_v4  }
  0x63   : > { %259 = vperm.xlu1 %6511, %v6923_v1   ;;  %265 = vperm.xlu0 %6512, %v6946_v8  }
  0x67   : > { %262 = vperm.xlu1 %6511, %v6931_v3   ;;  %271 = vperm.xlu0 %6512, %v6959_v11  }
  0x6b   : > { %268 = vperm.xlu1 %6511, %v6943_v7   ;;  %6513 = vset.pattern.permute.xlu0 %v6790_v28 }
  0x6c   : > { %782 = vperm.xlu0 %6513, %v6926_v2  }
  0x6f   : > { %274 = vperm.xlu1 %6511, %v6951_v9  }
  0x70   : > { %791 = vperm.xlu0 %6513, %v6931_v3  }
  0x73   : > { %6514 = vset.pattern.permute.xlu1 %v6790_v28  ;;  %v7176_v28 = vld [vmem:[#allocation2 + $0x90] sm:$0xff]  }
  0x74   : > { %785 = vperm.xlu1 %6514, %v6934_v4   ;;  %797 = vperm.xlu0 %6513, %v6943_v7  }
  0x78   : > { %788 = vperm.xlu1 %6514, %v6923_v1   ;;  %803 = vperm.xlu0 %6513, %v6951_v9  }
  0x7c   : > { %794 = vperm.xlu1 %6514, %v6946_v8   ;;  %6516 = vset.pattern.permute.xlu0 %v6791_v29 }
  0x7d   : > { %967 = vperm.xlu0 %6516, %v6934_v4  }
  0x80   : > { %800 = vperm.xlu1 %6514, %v6959_v11  }
  0x81   : > { %976 = vperm.xlu0 %6516, %v6946_v8  }
  0x84   : > { %6515 = vset.pattern.permute.xlu1 %v6791_v29  ;;  %v7191_v29 = vld [vmem:[#allocation2 + $0x98] sm:$0xff]  }
  0x85   : > { %964 = vperm.xlu1 %6515, %v6926_v2   ;;  %982 = vperm.xlu0 %6516, %v6959_v11  }
  0x89   : > { %970 = vperm.xlu1 %6515, %v6923_v1   ;;  %6517 = vset.pattern.permute.xlu0 %v6792_v30 }
  0x8a   : > { %1422 = vperm.xlu0 %6517, %v6926_v2  }
  0x8d   : > { %973 = vperm.xlu1 %6515, %v6931_v3  }
  0x8e   : > { %1431 = vperm.xlu0 %6517, %v6931_v3  }
  0x91   : > { %979 = vperm.xlu1 %6515, %v6943_v7  }
  0x92   : > { %1437 = vperm.xlu0 %6517, %v6943_v7  }
  0x95   : > { %985 = vperm.xlu1 %6515, %v6951_v9  }
  0x96   : > { %1443 = vperm.xlu0 %6517, %v6951_v9  }
  0x99   : > { %6518 = vset.pattern.permute.xlu1 %v6792_v30  ;;  %v7201_v30 = vld [vmem:[#allocation2 + $0xa0] sm:$0xff]  }
  0x9a   : > { %1425 = vperm.xlu1 %6518, %v6934_v4   ;;  %6520 = vset.pattern.permute.xlu0 %v6794_v46 }
  0x9b   : > { %1826 = vperm.xlu0 %6520, %v6934_v4  }
  0x9e   : > { %1428 = vperm.xlu1 %6518, %v6923_v1  }
  0x9f   : > { %1835 = vperm.xlu0 %6520, %v6946_v8  }
  0xa2   : > { %1434 = vperm.xlu1 %6518, %v6946_v8  }
  0xa3   : > { %1841 = vperm.xlu0 %6520, %v6959_v11  }
  0xa6   : > { %1440 = vperm.xlu1 %6518, %v6959_v11  }
  0xaa   : > { %6519 = vset.pattern.permute.xlu1 %v6794_v46 }
  0xab   : > { %1823 = vperm.xlu1 %6519, %v6926_v2  }
  0xaf   : > { %1829 = vperm.xlu1 %6519, %v6923_v1  }
  0xb3   : > { %1832 = vperm.xlu1 %6519, %v6931_v3  }
  0xb7   : > { %1838 = vperm.xlu1 %6519, %v6943_v7  }
  0xbb   : > { %1844 = vperm.xlu1 %6519, %v6951_v9  }
  0xbc   : > { %v320_v32 = vpop.permute.xlu1 %319  ;;  %v314_v33 = vpop.permute.xlu0 %313 }
  0xbd   : > { %vm338_vm0 = vcmp.eq.s32.totalorder %v320_v32, %v7065_v34  ;;  %vm336_vm3 = vcmp.eq.s32.totalorder %v314_v33, %v7065_v34  ;;  %v6795_v32 = vmov 7   ;;  %v7209_v33 = vld [vmem:[#allocation2 + $0xa8] sm:$0xff]  }
  0xbe   : > { %6521 = vset.pattern.permute.xlu0 %v6795_v32 }
  0xbf   : > { %6522 = vset.pattern.permute.xlu1 %v6795_v32  ;;  %2224 = vperm.xlu0 %6521, %v6926_v2   ;;  %v7217_v2 = vld [vmem:[#allocation2 + $0xb0] sm:$0xff]  }
  0xc0   : > { %v323_v35 = vpop.permute.xlu1 %322  ;;  %v317_v36 = vpop.permute.xlu0 %316  ;;  %2227 = vperm.xlu1 %6522, %v6934_v4  }
  0xc1   : > { %vm339_vm1 = vcmp.eq.s32.totalorder %v323_v35, %v7065_v34  ;;  %vm337_vm2 = vcmp.eq.s32.totalorder %v317_v36, %v7065_v34  ;;  %v7275_v35 = vld [vmem:[#allocation2 + $0xd8] sm:$0xff]   ;;  %v7284_v36 = vld [vmem:[#allocation2 + $0xe0] sm:$0xff]  }
  0xc2   : > { %vm7071_vm4 = vmpackc.low %vm339_vm1, %vm338_vm0 }
  0xc3   : > { %vm7075_vm5 = vmpackc.low %vm337_vm2, %vm336_vm3  ;;  %2233 = vperm.xlu0 %6521, %v6931_v3   ;;  %v7233_v3 = vld [vmem:[#allocation2 + $0xc0] sm:$0xff]  }
  0xc4   : > { %5240 = vmatprep.mubr.msk.bf16.mxu1 %vm7075_vm5, %v8921_v39  ;;  %v329_v40 = vpop.permute.xlu1 %328  ;;  %v326_v41 = vpop.permute.xlu0 %325  ;;  %2230 = vperm.xlu1 %6522, %v6923_v1   ;;  %v7225_v1 = vld [vmem:[#allocation2 + $0xb8] sm:$0xff]  }
  0xc5   : > { %vm341_vm6 = vcmp.eq.s32.totalorder %v329_v40, %v7065_v34  ;;  %5241 = vmatmul.mubr.msk.bf16.vlgmr.msra.gmra.mrb[0].mxu1 %vm7071_vm4, %v8921_v39  ;;  %vm340_vm7 = vcmp.eq.s32.totalorder %v326_v41, %v7065_v34  ;;  %v7293_v40 = vld [vmem:[#allocation2 + $0xe8] sm:$0xff]   ;;  %v7299_v41 = vld [vmem:[#allocation2 + $0xf0] sm:$0xff]  }
  0xc6   : > { %5345 = vmatpush3.bf16.msra.mxu1 %v6936_v5  ;;  %vm7088_vm8 = vmpackc.low %vm341_vm6, %vm340_vm7 }
  0xc7   : > { %5244 = vmatprep.mubr.msk.bf16.mxu1 %vm7088_vm8, %v8921_v39  ;;  %5346 = vmatprep.subr.bf16.mxu1 %v6938_v6 }
  0xc8   : > { %v335_v43 = vpop.permute.xlu1 %334  ;;  %v332_v44 = vpop.permute.xlu0 %331  ;;  %2236 = vperm.xlu1 %6522, %v6946_v8   ;;  %2239 = vperm.xlu0 %6521, %v6943_v7   ;;  %v7245_v8 = vld [vmem:[#allocation2 + $0xc8] sm:$0xff]  }
  0xc9   : > { %vm343_vm9 = vcmp.eq.s32.totalorder %v335_v43, %v7065_v34  ;;  %vm342_vm10 = vcmp.eq.s32.totalorder %v332_v44, %v7065_v34  ;;  %v7305_v44 = vld [vmem:[#allocation2 + $0xf8] sm:$0xff]  }
  0xca   : > { %5347 = vmatpush3.bf16.msra.mxu1 %v6938_v6  ;;  %vm7099_vm11 = vmpackc.low %vm343_vm9, %vm342_vm10 }
  0xcb   : > { %5348 = vmatprep.subr.bf16.mxu1 %v6954_v10 }
  0xcc   : > { %2242 = vperm.xlu1 %6522, %v6959_v11   ;;  %2245 = vperm.xlu0 %6521, %v6951_v9   ;;  %v8978_v9 = vmov 0  ;;  %v7263_v11 = vld [vmem:[#allocation2 + $0xd0] sm:$0xff]  }
  0xcd   : > { %5245 = vmatmul.mubr.msk.bf16.gmra.mrb[4].mxu1 %vm7099_vm11, %v8921_v39  ;;  %v604_v47 = vpop.permute.xlu1 %603  ;;  %v601_v48 = vpop.permute.xlu0 %600 }
  0xce   : > { %5349 = vmatpush3.bf16.msra.mxu1 %v6954_v10  ;;  %vm624_vm12 = vcmp.eq.s32.totalorder %v604_v47, %v7065_v34  ;;  %vm623_vm13 = vcmp.eq.s32.totalorder %v601_v48, %v7065_v34  ;;  %v7319_v48 = vld [vmem:[#allocation2 + $0x100] sm:$0xff]  }
  0xcf   : > { %5350 = vmatprep.subr.bf16.mxu1 %v6961_v12  ;;  %vm7113_vm14 = vmpackc.low %vm624_vm12, %vm623_vm13 }
  0xd0   : > { %5360 = vmatprep.mubr.msk.bf16.mxu1 %vm7113_vm14, %v8921_v39 }
  0xd1   : > { %v607_v50 = vpop.permute.xlu1 %606  ;;  %v610_v51 = vpop.permute.xlu0 %609 }
  0xd2   : > { %5351 = vmatpush3.bf16.msra.mxu1 %v6961_v12  ;;  %vm625_vm2 = vcmp.eq.s32.totalorder %v607_v50, %v7065_v34  ;;  %vm626_vm3 = vcmp.eq.s32.totalorder %v610_v51, %v7065_v34 }
  0xd3   : > { %5352 = vmatprep.subr.bf16.mxu1 %v6969_v14  ;;  %vm7143_vm9 = vmpackc.low %vm626_vm3, %vm625_vm2 }
  0xd5   : > { %v613_v52 = vpop.permute.xlu1 %612  ;;  %v616_v53 = vpop.permute.xlu0 %615 }
  0xd6   : > { %5353 = vmatpush3.bf16.msra.mxu1 %v6969_v14  ;;  %vm627_vm6 = vcmp.eq.s32.totalorder %v613_v52, %v7065_v34  ;;  %vm628_vm7 = vcmp.eq.s32.totalorder %v616_v53, %v7065_v34  ;;  %v7336_v53 = vld [vmem:[#allocation2 + $0x108] sm:$0xff]  }
  0xd7   : > { %5354 = vmatprep.subr.bf16.mxu1 %v6979_v17  ;;  %vm7147_vm10 = vmpackc.low %vm628_vm7, %vm627_vm6 }
  0xd9   : > { %v619_v54 = vpop.permute.xlu1 %618  ;;  %v622_v55 = vpop.permute.xlu0 %621 }
  0xda   : > { %5355 = vmatpush3.bf16.msra.mxu1 %v6979_v17 }
  0xdb   : > { %5356 = vmatprep.subr.bf16.mxu1 %v6990_v19 }
  0xde   : > { %5357 = vmatpush3.bf16.msra.mxu1 %v6990_v19  ;;  %v254_v56 = vpop.permute.xlu1 %253  ;;  %v257_v57 = vpop.permute.xlu0 %256 }
  0xdf   : > { %vm276_vm15 = vcmp.eq.s32.totalorder %v254_v56, %v7065_v34  ;;  %5358 = vmatprep.subr.bf16.mxu1 %v7000_v21  ;;  %vm277_vm0 = vcmp.eq.s32.totalorder %v257_v57, %v7065_v34  ;;  %v7359_v56 = vld [vmem:[#allocation2 + $0x110] sm:$0xff]   ;;  %v7371_v57 = vld [vmem:[#allocation2 + $0x118] sm:$0xff]  }
  0xe0   : > { %vm4377_vm1 = vmpackc.low %vm277_vm0, %vm276_vm15  ;;  %vm629_vm15 = vcmp.eq.s32.totalorder %v619_v54, %v7065_v34  ;;  %vm630_vm0 = vcmp.eq.s32.totalorder %v622_v55, %v7065_v34 }
  0xe1   : > { %5264 = vmatprep.mubr.msk.bf16.mxu0 %vm4377_vm1, %v8921_v39  ;;  %vm7169_vm3 = vmpackc.low %vm630_vm0, %vm629_vm15 }
  0xe2   : > { %5359 = vmatpush3.bf16.msra.mxu1 %v7000_v21  ;;  %v260_v58 = vpop.permute.xlu1 %259  ;;  %v266_v60 = vpop.permute.xlu0 %265  ;;  %v8977_v16 = vsel %vm7169_vm3, 4294967295, %v8976_v16 }
  0xe3   : > { %5368 = vmatprep.subr.bf16.mxu1 %v6964_v13  ;;  %vm278_vm12 = vcmp.eq.s32.totalorder %v260_v58, %v7065_v34  ;;  %vm280_vm2 = vcmp.eq.s32.totalorder %v266_v60, %v7065_v34  ;;  %v7380_v60 = vld [vmem:[#allocation2 + $0x120] sm:$0xff]  }
  0xe5   : > { %5361 = vmatmul.mubr.msk.bf16.vlgmr.msra.gmra.mrb[8].mxu1 %vm7143_vm9, %v8921_v39 }
  0xe6   : > { %5364 = vmatprep.mubr.msk.bf16.mxu1 %vm7147_vm10, %v8921_v39  ;;  %5369 = vmatpush3.bf16.msra.mxu1 %v6964_v13  ;;  %v263_v62 = vpop.permute.xlu1 %262  ;;  %v272_v13 = vpop.permute.xlu0 %271 }
  0xe7   : > { %vm279_vm13 = vcmp.eq.s32.totalorder %v263_v62, %v7065_v34  ;;  %5370 = vmatprep.subr.bf16.mxu1 %v6975_v15 }
  0xe8   : > { %vm4379_vm1 = vmpackc.low %vm279_vm13, %vm278_vm12  ;;  %vm282_vm12 = vcmp.eq.s32.totalorder %v272_v13, %v7065_v34  ;;  %v7395_v13 = vld [vmem:[#allocation2 + $0x130] sm:$0xff]  }
  0xe9   : > { %5265 = vmatmul.mubr.msk.bf16.vlgmr.msra.gmra.mrb[0].mxu0 %vm4379_vm1, %v8921_v39 }
  0xea   : > { %5371 = vmatpush3.bf16.msra.mxu1 %v6975_v15  ;;  %5273 = vmatpush3.bf16.msra.mxu0 %v7035_v27  ;;  %v269_v0 = vpop.permute.xlu1 %268 }
  0xeb   : > { %vm281_vm6 = vcmp.eq.s32.totalorder %v269_v0, %v7065_v34  ;;  %5372 = vmatprep.subr.bf16.mxu1 %v6983_v18  ;;  %5274 = vmatprep.subr.bf16.mxu0 %v7161_v63  ;;  %v783_v7 = vpop.permute.xlu0 %782  ;;  %v7389_v0 = vld [vmem:[#allocation2 + $0x128] sm:$0xff]  }
  0xec   : > { %vm4381_vm7 = vmpackc.low %vm281_vm6, %vm280_vm2 }
  0xed   : > { %5365 = vmatmul.mubr.msk.bf16.gmra.mrb[12].mxu1 %vm7169_vm3, %v8921_v39  ;;  %5268 = vmatprep.mubr.msk.bf16.mxu0 %vm4381_vm7, %v8921_v39 }
  0xee   : > { %5373 = vmatpush3.bf16.msra.mxu1 %v6983_v18  ;;  %5384 = vmatprep.mubr.msk.bf16.mxu1 %vm7075_vm5, %v8921_v39  ;;  %v275_v15 = vpop.permute.xlu1 %274 }
  0xef   : > { %5275 = vmatpush3.bf16.msra.mxu0 %v7161_v63  ;;  %vm283_vm13 = vcmp.eq.s32.totalorder %v275_v15, %v7065_v34  ;;  %5374 = vmatprep.subr.bf16.mxu1 %v6993_v20  ;;  %v792_v38 = vpop.permute.xlu0 %791 }
  0xf0   : > { %vm4383_vm15 = vmpackc.low %vm283_vm13, %vm282_vm12  ;;  %5276 = vmatprep.subr.bf16.mxu0 %v7176_v28  ;;  %vm808_vm0 = vcmp.eq.s32.totalorder %v792_v38, %v7065_v34  ;;  %v8042_v38 = vld [vmem:[#allocation2 + $0x90] sm:$0xff]  }
  0xf1   : > { %5269 = vmatmul.mubr.msk.bf16.gmra.mrb[4].mxu0 %vm4383_vm15, %v8921_v39 }
  0xf2   : > { %5375 = vmatpush3.bf16.msra.mxu1 %v6993_v20  ;;  %5288 = vmatprep.mubr.msk.bf16.mxu0 %vm7113_vm14, %v8921_v39 }
  0xf3   : > { %5277 = vmatpush3.bf16.msra.mxu0 %v7176_v28  ;;  %5376 = vmatprep.subr.bf16.mxu1 %v7003_v22  ;;  %v786_v4 = vpop.permute.xlu1 %785  ;;  %v798_v43 = vpop.permute.xlu0 %797 }
  0xf4   : > { %5278 = vmatprep.subr.bf16.mxu0 %v7191_v29  ;;  %vm806_vm5 = vcmp.eq.s32.totalorder %v786_v4, %v7065_v34  ;;  %vm810_vm2 = vcmp.eq.s32.totalorder %v798_v43, %v7065_v34  ;;  %v7401_v4 = vld [vmem:[#allocation2 + $0x138] sm:$0xff]  }
  0xf6   : > { %5377 = vmatpush3.bf16.msra.mxu1 %v7003_v22 }
  0xf7   : > { %5279 = vmatpush3.bf16.msra.mxu0 %v7191_v29  ;;  %5378 = vmatprep.subr.bf16.mxu1 %v7011_v23  ;;  %v789_v37 = vpop.permute.xlu1 %788  ;;  %v804_v46 = vpop.permute.xlu0 %803 }
  0xf8   : > { %5280 = vmatprep.subr.bf16.mxu0 %v7201_v30 }
  0xfa   : > { %5379 = vmatpush3.bf16.msra.mxu1 %v7011_v23 }
  0xfb   : > { %5281 = vmatpush3.bf16.msra.mxu0 %v7201_v30  ;;  %5380 = vmatprep.subr.bf16.mxu1 %v7020_v25  ;;  %v795_v42 = vpop.permute.xlu1 %794 }
  0xfc   : > { %5282 = vmatprep.subr.bf16.mxu0 %v7209_v33  ;;  %vm809_vm1 = vcmp.eq.s32.totalorder %v795_v42, %v7065_v34  ;;  %v968_v52 = vpop.permute.xlu0 %967  ;;  %v6799_v42 = vmov 11  }
  0xfd   : > { %vm7321_vm7 = vmpackc.low %vm810_vm2, %vm809_vm1  ;;  %vm988_vm13 = vcmp.eq.s32.totalorder %v968_v52, %v7065_v34 }
  0xfe   : > { %5381 = vmatpush3.bf16.msra.mxu1 %v7020_v25 }
  0xff   : > { %5283 = vmatpush3.bf16.msra.mxu0 %v7209_v33  ;;  %5382 = vmatprep.subr.bf16.mxu1 %v7029_v26  ;;  %v801_v45 = vpop.permute.xlu1 %800 }
 0x100   : > { %5284 = vmatprep.subr.bf16.mxu0 %v7217_v2  ;;  %vm811_vm15 = vcmp.eq.s32.totalorder %v801_v45, %v7065_v34  ;;  %v977_v32 = vpop.permute.xlu0 %976 }
 0x102   : > { %5383 = vmatpush3.bf16.msra.mxu1 %v7029_v26 }
 0x103   : > { %5285 = vmatpush3.bf16.msra.mxu0 %v7217_v2  ;;  %5392 = vmatprep.subr.bf16.mxu1 %v7035_v27 }
 0x104   : > { %5286 = vmatprep.subr.bf16.mxu0 %v7225_v1  ;;  %v965_v51 = vpop.permute.xlu1 %964 }
 0x105   : > { %5385 = vmatmul.mubr.msk.bf16.vlgmr.msra.gmra.mrb[8].mxu1 %vm7071_vm4, %v8921_v39  ;;  %vm805_vm4 = vcmp.eq.s32.totalorder %v783_v7, %v7065_v34  ;;  %vm987_vm12 = vcmp.eq.s32.totalorder %v965_v51, %v7065_v34  ;;  %v8994_v51 = vmov 0 }
 0x106   : > { %5388 = vmatprep.mubr.msk.bf16.mxu1 %vm7088_vm8, %v8921_v39  ;;  %5393 = vmatpush3.bf16.msra.mxu1 %v7035_v27  ;;  %vm7257_vm8 = vmpackc.low %vm806_vm5, %vm805_vm4  ;;  %vm812_vm5 = vcmp.eq.s32.totalorder %v804_v46, %v7065_v34  ;;  %v8992_v46 = vmov 0 }
 0x107   : > { %5287 = vmatpush3.bf16.msra.mxu0 %v7225_v1  ;;  %5394 = vmatprep.subr.bf16.mxu1 %v7161_v63  ;;  %v8979_v9 = vsel %vm7257_vm8, 4294967295, %v8978_v9  ;;  %vm7349_vm4 = vmpackc.low %vm988_vm13, %vm987_vm12  ;;  %vm991_vm12 = vcmp.eq.s32.totalorder %v977_v32, %v7065_v34  ;;  %v7512_v32 = vld [vmem:[#allocation2] sm:$0xff]  }
 0x108   : > { %5296 = vmatprep.subr.bf16.mxu0 %v7233_v3  ;;  %v971_v58 = vpop.permute.xlu1 %970 }
 0x10a   : > { %5289 = vmatmul.mubr.msk.bf16.vlgmr.msra.gmra.mrb[0].mxu0 %vm7143_vm9, %v8921_v39  ;;  %5395 = vmatpush3.bf16.msra.mxu1 %v7161_v63 }
 0x10b   : > { %5292 = vmatprep.mubr.msk.bf16.mxu0 %vm7147_vm10, %v8921_v39  ;;  %5297 = vmatpush3.bf16.msra.mxu0 %v7233_v3 }
 0x10c   : > { %5396 = vmatprep.subr.bf16.mxu1 %v7176_v28  ;;  %5298 = vmatprep.subr.bf16.mxu0 %v7245_v8  ;;  %v974_v62 = vpop.permute.xlu1 %973 }
 0x10d   : > { %5389 = vmatmul.mubr.msk.bf16.gmra.mrb[12].mxu1 %vm7099_vm11, %v8921_v39  ;;  %vm807_vm11 = vcmp.eq.s32.totalorder %v789_v37, %v7065_v34  ;;  %vm990_vm1 = vcmp.eq.s32.totalorder %v974_v62, %v7065_v34  ;;  %v983_v37 = vpop.permute.xlu0 %982 }
 0x10e   : > { %5397 = vmatpush3.bf16.msra.mxu1 %v7176_v28  ;;  %5408 = vmatprep.mubr.msk.bf16.mxu1 %vm7257_vm8, %v8921_v39  ;;  %vm7314_vm6 = vmpackc.low %vm808_vm0, %vm807_vm11  ;;  %vm989_vm0 = vcmp.eq.s32.totalorder %v971_v58, %v7065_v34  ;;  %v8154_v58 = vld [vmem:[#allocation2 + $0xd0] sm:$0xff]  }
 0x10f   : > { %5299 = vmatpush3.bf16.msra.mxu0 %v7245_v8  ;;  %5398 = vmatprep.subr.bf16.mxu1 %v7191_v29  ;;  %vm7353_vm11 = vmpackc.low %vm812_vm5, %vm811_vm15 }
 0x110   : > { %5300 = vmatprep.subr.bf16.mxu0 %v7263_v11  ;;  %v980_v15 = vpop.permute.xlu1 %979  ;;  %vm7410_vm13 = vmpackc.low %vm990_vm1, %vm989_vm0 }
 0x111   : > { %vm992_vm2 = vcmp.eq.s32.totalorder %v980_v15, %v7065_v34  ;;  %v1423_v45 = vpop.permute.xlu0 %1422 }
 0x112   : > { %5293 = vmatmul.mubr.msk.bf16.gmra.mrb[4].mxu0 %vm7169_vm3, %v8921_v39  ;;  %5399 = vmatpush3.bf16.msra.mxu1 %v7191_v29  ;;  %vm7415_vm15 = vmpackc.low %vm992_vm2, %vm991_vm12  ;;  %vm1445_vm0 = vcmp.eq.s32.totalorder %v1423_v45, %v7065_v34  ;;  %vm993_vm2 = vcmp.eq.s32.totalorder %v983_v37, %v7065_v34  ;;  %v7529_v37 = vld [vmem:[#allocation2 + $0x50] sm:$0xff]   ;;  %v6796_v45 = vmov 8  }
 0x113   : > { %5301 = vmatpush3.bf16.msra.mxu0 %v7263_v11  ;;  %5400 = vmatprep.subr.bf16.mxu1 %v7201_v30 }
 0x114   : > { %5302 = vmatprep.subr.bf16.mxu0 %v7275_v35  ;;  %5312 = vmatprep.mubr.msk.bf16.mxu0 %vm7257_vm8, %v8921_v39  ;;  %v986_v7 = vpop.permute.xlu1 %985 }
 0x115   : > { %vm994_vm1 = vcmp.eq.s32.totalorder %v986_v7, %v7065_v34  ;;  %v1432_v52 = vpop.permute.xlu0 %1431  ;;  %6523 = vset.pattern.permute.xlu1 %v6796_v45  ;;  %6524 = vset.pattern.permute.xlu0 %v6796_v45  ;;  %v7594_v45 = vld [vmem:[%s6920_s7 + $0x30] sm:$0xff]  ;;  %v8166_v7 = vld [vmem:[#allocation2 + $0xd8] sm:$0xff]  }
 0x116   : > { %5401 = vmatpush3.bf16.msra.mxu1 %v7201_v30  ;;  %vm7445_vm3 = vmpackc.low %vm994_vm1, %vm993_vm2 }
 0x117   : > { %5303 = vmatpush3.bf16.msra.mxu0 %v7275_v35  ;;  %5402 = vmatprep.subr.bf16.mxu1 %v7209_v33  ;;  %v8995_v51 = vsel %vm7445_vm3, 4294967295, %v8994_v51 }
 0x118   : > { %5304 = vmatprep.subr.bf16.mxu0 %v7284_v36 }
 0x119   : > { %v1426_v43 = vpop.permute.xlu1 %1425 }
 0x11a   : > { %5403 = vmatpush3.bf16.msra.mxu1 %v7209_v33  ;;  %vm1446_vm5 = vcmp.eq.s32.totalorder %v1426_v43, %v7065_v34  ;;  %v7532_v43 = vld [vmem:[#allocation2 + $0x8] sm:$0xff]  }
 0x11b   : > { %5305 = vmatpush3.bf16.msra.mxu0 %v7284_v36  ;;  %5404 = vmatprep.subr.bf16.mxu1 %v7217_v2  ;;  %vm7441_vm12 = vmpackc.low %vm1446_vm5, %vm1445_vm0  ;;  %vm1448_vm0 = vcmp.eq.s32.totalorder %v1432_v52, %v7065_v34  ;;  %v7548_v52 = vld [vmem:[%s6920_s7] sm:$0xff] }
 0x11c   : > { %5306 = vmatprep.subr.bf16.mxu0 %v7293_v40  ;;  %v8993_v46 = vsel %vm7441_vm12, 4294967295, %v8992_v46  ;;  %2625 = vperm.xlu1 %6523, %v7548_v52  }
 0x11e   : > { %5405 = vmatpush3.bf16.msra.mxu1 %v7217_v2 }
 0x11f   : > { %5307 = vmatpush3.bf16.msra.mxu0 %v7293_v40  ;;  %5406 = vmatprep.subr.bf16.mxu1 %v7225_v1 }
 0x120   : > { %5308 = vmatprep.subr.bf16.mxu0 %v7299_v41 }
 0x122   : > { %5407 = vmatpush3.bf16.msra.mxu1 %v7225_v1 }
 0x123   : > { %5309 = vmatpush3.bf16.msra.mxu0 %v7299_v41  ;;  %5416 = vmatprep.subr.bf16.mxu1 %v7233_v3 }
 0x124   : > { %5310 = vmatprep.subr.bf16.mxu0 %v7305_v44 }
 0x125   : > { %5409 = vmatmul.mubr.msk.bf16.vlgmr.msra.gmra.mrb[8].mxu1 %vm7314_vm6, %v8921_v39 }
 0x126   : > { %5412 = vmatprep.mubr.msk.bf16.mxu1 %vm7321_vm7, %v8921_v39  ;;  %5417 = vmatpush3.bf16.msra.mxu1 %v7233_v3 }
 0x127   : > { %5311 = vmatpush3.bf16.msra.mxu0 %v7305_v44  ;;  %5418 = vmatprep.subr.bf16.mxu1 %v7245_v8 }
 0x128   : > { %5320 = vmatprep.subr.bf16.mxu0 %v7319_v48 }
 0x12a   : > { %5313 = vmatmul.mubr.msk.bf16.vlgmr.msra.gmra.mrb[0].mxu0 %vm7314_vm6, %v8921_v39  ;;  %5419 = vmatpush3.bf16.msra.mxu1 %v7245_v8 }
 0x12b   : > { %5316 = vmatprep.mubr.msk.bf16.mxu0 %vm7321_vm7, %v8921_v39  ;;  %5321 = vmatpush3.bf16.msra.mxu0 %v7319_v48 }
 0x12c   : > { %5420 = vmatprep.subr.bf16.mxu1 %v7263_v11  ;;  %5322 = vmatprep.subr.bf16.mxu0 %v7336_v53 }
 0x12d   : > { %5413 = vmatmul.mubr.msk.bf16.gmra.mrb[12].mxu1 %vm7353_vm11, %v8921_v39 }
 0x12e   : > { %5421 = vmatpush3.bf16.msra.mxu1 %v7263_v11  ;;  %5432 = vmatprep.mubr.msk.bf16.mxu1 %vm7349_vm4, %v8921_v39 }
 0x12f   : > { %5323 = vmatpush3.bf16.msra.mxu0 %v7336_v53  ;;  %5422 = vmatprep.subr.bf16.mxu1 %v7275_v35 }
 0x130   : > { %5324 = vmatprep.subr.bf16.mxu0 %v7359_v56 }
 0x132   : > { %5317 = vmatmul.mubr.msk.bf16.gmra.mrb[4].mxu0 %vm7353_vm11, %v8921_v39  ;;  %5423 = vmatpush3.bf16.msra.mxu1 %v7275_v35 }
 0x133   : > { %5325 = vmatpush3.bf16.msra.mxu0 %v7359_v56  ;;  %5424 = vmatprep.subr.bf16.mxu1 %v7284_v36 }
 0x134   : > { %5326 = vmatprep.subr.bf16.mxu0 %v7371_v57  ;;  %5336 = vmatprep.mubr.msk.bf16.mxu0 %vm7349_vm4, %v8921_v39 }
 0x136   : > { %5425 = vmatpush3.bf16.msra.mxu1 %v7284_v36 }
 0x137   : > { %5327 = vmatpush3.bf16.msra.mxu0 %v7371_v57  ;;  %5426 = vmatprep.subr.bf16.mxu1 %v7293_v40 }
 0x138   : > { %5328 = vmatprep.subr.bf16.mxu0 %v7380_v60 }
 0x13a   : > { %5427 = vmatpush3.bf16.msra.mxu1 %v7293_v40 }
 0x13b   : > { %5329 = vmatpush3.bf16.msra.mxu0 %v7380_v60  ;;  %5428 = vmatprep.subr.bf16.mxu1 %v7299_v41 }
 0x13c   : > { %5330 = vmatprep.subr.bf16.mxu0 %v7389_v0 }
 0x13e   : > { %5429 = vmatpush3.bf16.msra.mxu1 %v7299_v41 }
 0x13f   : > { %5331 = vmatpush3.bf16.msra.mxu0 %v7389_v0  ;;  %5430 = vmatprep.subr.bf16.mxu1 %v7305_v44 }
 0x140   : > { %5332 = vmatprep.subr.bf16.mxu0 %v7395_v13 }
 0x142   : > { %5431 = vmatpush3.bf16.msra.mxu1 %v7305_v44 }
 0x143   : > { %5333 = vmatpush3.bf16.msra.mxu0 %v7395_v13  ;;  %5440 = vmatprep.subr.bf16.mxu1 %v7319_v48 }
 0x144   : > { %5334 = vmatprep.subr.bf16.mxu0 %v7401_v4 }
 0x145   : > { %5433 = vmatmul.mubr.msk.bf16.vlgmr.msra.gmra.mrb[8].mxu1 %vm7410_vm13, %v8921_v39 }
 0x146   : > { %5436 = vmatprep.mubr.msk.bf16.mxu1 %vm7415_vm15, %v8921_v39  ;;  %5441 = vmatpush3.bf16.msra.mxu1 %v7319_v48 }
 0x147   : > { %5335 = vmatpush3.bf16.msra.mxu0 %v7401_v4  ;;  %5442 = vmatprep.subr.bf16.mxu1 %v7336_v53 }
 0x148   : > { %5464 = vmatprep.subr.bf16.mxu0 %v6936_v5 }
 0x14a   : > { %5337 = vmatmul.mubr.msk.bf16.vlgmr.msra.gmra.mrb[0].mxu0 %vm7410_vm13, %v8921_v39  ;;  %5443 = vmatpush3.bf16.msra.mxu1 %v7336_v53 }
 0x14b   : > { %5340 = vmatprep.mubr.msk.bf16.mxu0 %vm7415_vm15, %v8921_v39  ;;  %5465 = vmatpush3.bf16.msra.mxu0 %v6936_v5  ;;  %v7458_v5 = vld [vmem:[#allocation2 + $0x48] sm:$0xff]  }
 0x14c   : > { %5444 = vmatprep.subr.bf16.mxu1 %v7359_v56  ;;  %5466 = vmatprep.subr.bf16.mxu0 %v6938_v6  ;;  %v1429_v6 = vpop.permute.xlu1 %1428 }
 0x14d   : > { %5437 = vmatmul.mubr.msk.bf16.gmra.mrb[12].mxu1 %vm7445_vm3, %v8921_v39  ;;  %vm1447_vm5 = vcmp.eq.s32.totalorder %v1429_v6, %v7065_v34  ;;  %v7543_v6 = vld [vmem:[#allocation2 + $0x58] sm:$0xff]  }
 0x14e   : > { %5445 = vmatpush3.bf16.msra.mxu1 %v7359_v56  ;;  %5456 = vmatprep.mubr.msk.bf16.mxu1 %vm7441_vm12, %v8921_v39  ;;  %vm7494_vm12 = vmpackc.low %vm1448_vm0, %vm1447_vm5 }
 0x14f   : > { %5467 = vmatpush3.bf16.msra.mxu0 %v7458_v5  ;;  %5446 = vmatprep.subr.bf16.mxu1 %v7371_v57 }
 0x150   : > { %5468 = vmatprep.subr.bf16.mxu0 %v6954_v10 }
 0x152   : > { %5341 = vmatmul.mubr.msk.bf16.gmra.mrb[4].mxu0 %vm7445_vm3, %v8921_v39  ;;  %5447 = vmatpush3.bf16.msra.mxu1 %v7371_v57 }
 0x153   : > { %5469 = vmatpush3.bf16.msra.mxu0 %v6954_v10  ;;  %5480 = vmatprep.mubr.msk.bf16.mxu0 %vm7257_vm8, %v8921_v39  ;;  %v1435_v10 = vpop.permute.xlu1 %1434 }
 0x154   : > { %5448 = vmatprep.subr.bf16.mxu1 %v7380_v60  ;;  %5470 = vmatprep.subr.bf16.mxu0 %v6961_v12  ;;  %vm1449_vm1 = vcmp.eq.s32.totalorder %v1435_v10, %v7065_v34  ;;  %v7559_v10 = vld [vmem:[#allocation2 + $0x60] sm:$0xff]  }
 0x156   : > { %5449 = vmatpush3.bf16.msra.mxu1 %v7380_v60 }
 0x157   : > { %5471 = vmatpush3.bf16.msra.mxu0 %v6961_v12  ;;  %5450 = vmatprep.subr.bf16.mxu1 %v7389_v0  ;;  %v1438_v12 = vpop.permute.xlu0 %1437  ;;  %v1441_v62 = vpop.permute.xlu1 %1440 }
 0x158   : > { %5472 = vmatprep.subr.bf16.mxu0 %v6969_v14  ;;  %vm1450_vm2 = vcmp.eq.s32.totalorder %v1438_v12, %v7065_v34  ;;  %vm1451_vm5 = vcmp.eq.s32.totalorder %v1441_v62, %v7065_v34  ;;  %v7564_v12 = vld [vmem:[%s6920_s7 + $0x10] sm:$0xff]  ;;  %v7568_v62 = vld [vmem:[%s6920_s7 + $0x8] sm:$0xff] }
 0x159   : > { %vm7499_vm8 = vmpackc.low %vm1450_vm2, %vm1449_vm1  ;;  %2631 = vperm.xlu1 %6523, %v7564_v12   ;;  %2628 = vperm.xlu0 %6524, %v7568_v62  }
 0x15a   : > { %5451 = vmatpush3.bf16.msra.mxu1 %v7389_v0 }
 0x15b   : > { %5473 = vmatpush3.bf16.msra.mxu0 %v6969_v14  ;;  %5452 = vmatprep.subr.bf16.mxu1 %v7395_v13  ;;  %v7491_v14 = vld [vmem:[#allocation2 + $0x40] sm:$0xff]   ;;  %v1444_v15 = vpop.permute.xlu0 %1443 }
 0x15c   : > { %5474 = vmatprep.subr.bf16.mxu0 %v6979_v17  ;;  %vm1452_vm0 = vcmp.eq.s32.totalorder %v1444_v15, %v7065_v34  ;;  %v7582_v15 = vld [vmem:[%s6920_s7 + $0x20] sm:$0xff] }
 0x15d   : > { %vm7525_vm1 = vmpackc.low %vm1452_vm0, %vm1451_vm5  ;;  %2634 = vperm.xlu1 %6523, %v7578_v49   ;;  %2637 = vperm.xlu0 %6524, %v7582_v15  }
 0x15e   : > { %5453 = vmatpush3.bf16.msra.mxu1 %v7395_v13 }
 0x15f   : > { %5475 = vmatpush3.bf16.msra.mxu0 %v6979_v17  ;;  %5454 = vmatprep.subr.bf16.mxu1 %v7401_v4  ;;  %v8142_v17 = vld [vmem:[#allocation2 + $0xc8] sm:$0xff]  }
 0x160   : > { %5476 = vmatprep.subr.bf16.mxu0 %v6990_v19 }
 0x161   : > { %2643 = vperm.xlu0 %6524, %v7594_v45  }
 0x162   : > { %5455 = vmatpush3.bf16.msra.mxu1 %v7401_v4 }
 0x163   : > { %5477 = vmatpush3.bf16.msra.mxu0 %v6990_v19  ;;  %5584 = vmatprep.subr.bf16.mxu1 %v7491_v14 }
 0x164   : > { %5478 = vmatprep.subr.bf16.mxu0 %v7000_v21 }
 0x165   : > { %5457 = vmatmul.mubr.msk.bf16.vlgmr.msra.gmra.mrb[8].mxu1 %vm7494_vm12, %v8921_v39  ;;  %6525 = vset.pattern.permute.xlu0 %v6797_v61 }
 0x166   : > { %5460 = vmatprep.mubr.msk.bf16.mxu1 %vm7499_vm8, %v8921_v39  ;;  %5585 = vmatpush3.bf16.msra.mxu1 %v7491_v14 }
 0x167   : > { %5479 = vmatpush3.bf16.msra.mxu0 %v7000_v21  ;;  %5586 = vmatprep.subr.bf16.mxu1 %v7458_v5 }
 0x168   : > { %5488 = vmatprep.subr.bf16.mxu0 %v7512_v32  ;;  %3026 = vperm.xlu0 %6525, %v7548_v52  }
 0x16a   : > { %5481 = vmatmul.mubr.msk.bf16.vlgmr.msra.gmra.mrb[8].mxu0 %vm7314_vm6, %v8921_v39  ;;  %5587 = vmatpush3.bf16.msra.mxu1 %v7458_v5 }
 0x16b   : > { %5484 = vmatprep.mubr.msk.bf16.mxu0 %vm7321_vm7, %v8921_v39  ;;  %5489 = vmatpush3.bf16.msra.mxu0 %v7512_v32 }
 0x16c   : > { %5588 = vmatprep.subr.bf16.mxu1 %v7529_v37  ;;  %5490 = vmatprep.subr.bf16.mxu0 %v7532_v43 }
 0x16d   : > { %5461 = vmatmul.mubr.msk.bf16.gmra.mrb[12].mxu1 %vm7525_vm1, %v8921_v39  ;;  %3035 = vperm.xlu0 %6525, %v7578_v49  }
 0x16e   : > { %5589 = vmatpush3.bf16.msra.mxu1 %v7529_v37  ;;  %5600 = vmatprep.mubr.msk.bf16.mxu1 %vm7349_vm4, %v8921_v39 }
 0x16f   : > { %5491 = vmatpush3.bf16.msra.mxu0 %v7532_v43  ;;  %5590 = vmatprep.subr.bf16.mxu1 %v7543_v6 }
 0x170   : > { %5492 = vmatprep.subr.bf16.mxu0 %v6983_v18 }
 0x172   : > { %5485 = vmatmul.mubr.msk.bf16.gmra.mrb[12].mxu0 %vm7353_vm11, %v8921_v39  ;;  %5591 = vmatpush3.bf16.msra.mxu1 %v7543_v6 }
 0x173   : > { %5493 = vmatpush3.bf16.msra.mxu0 %v6983_v18  ;;  %5504 = vmatprep.mubr.msk.bf16.mxu0 %vm7113_vm14, %v8921_v39  ;;  %v7573_v18 = vld [vmem:[#allocation2 + $0x68] sm:$0xff]   ;;  %vm9002_vm14 = vnez %v8979_v9 }
 0x174   : > { %5592 = vmatprep.subr.bf16.mxu1 %v7559_v10  ;;  %5494 = vmatprep.subr.bf16.mxu0 %v6993_v20 }
 0x176   : > { %5593 = vmatpush3.bf16.msra.mxu1 %v7559_v10 }
 0x177   : > { %5495 = vmatpush3.bf16.msra.mxu0 %v6993_v20  ;;  %5594 = vmatprep.subr.bf16.mxu1 %v7573_v18  ;;  %v7590_v20 = vld [vmem:[%s6920_s7 + $0x28] sm:$0xff] }
 0x178   : > { %5496 = vmatprep.subr.bf16.mxu0 %v7003_v22  ;;  %2640 = vperm.xlu1 %6523, %v7590_v20  }
 0x179   : > { %3041 = vperm.xlu0 %6525, %v7590_v20  }
 0x17a   : > { %5595 = vmatpush3.bf16.msra.mxu1 %v7573_v18 }
 0x17b   : > { %5497 = vmatpush3.bf16.msra.mxu0 %v7003_v22  ;;  %5596 = vmatprep.subr.bf16.mxu1 %v6990_v19  ;;  %v7604_v19 = vld [vmem:[%s6920_s7 + $0x38] sm:$0xff]  ;;  %s6722_s7 = scalar_lea.vmem %s6721_s10, 2048 }
 0x17c   : > { %5498 = vmatprep.subr.bf16.mxu0 %v7011_v23  ;;  %2646 = vperm.xlu1 %6523, %v7604_v19   ;;  %v7641_v22 = vld [vmem:[#allocation2 + $0x18] sm:$0xff]   ;;  %p6724_p3 = scmp.lt.s32.totalorder %s6722_s7, %s6716_s8 }
 0x17d   : > { %3047 = vperm.xlu0 %6525, %v7604_v19  }
 0x17e   : > { %5597 = vmatpush3.bf16.msra.mxu1 %v7597_v31  ;;  %p6725_p4 = por %p6724_p3, %p6723_p2 }
 0x17f   : > { %5499 = vmatpush3.bf16.msra.mxu0 %v7011_v23  ;;  %5598 = vmatprep.subr.bf16.mxu1 %v7000_v21 }
 0x180   : > { %5500 = vmatprep.subr.bf16.mxu0 %v7020_v25  ;;  %6526 = vset.pattern.permute.xlu1 %v6797_v61  ;;  %p6726_p7 = pnand %p6725_p4, %p6719_p12 }
 0x181   : > { %3029 = vperm.xlu1 %6526, %v7568_v62  }
 0x182   : > { %5599 = vmatpush3.bf16.msra.mxu1 %v7000_v21  ;;  %v7629_v21 = vld [vmem:[#allocation2 + $0x10] sm:$0xff]  }
 0x183   : > { %5501 = vmatpush3.bf16.msra.mxu0 %v7020_v25  ;;  %5608 = vmatprep.subr.bf16.mxu1 %v7512_v32 }
 0x184   : > { %5502 = vmatprep.subr.bf16.mxu0 %v7029_v26 }
 0x185   : > { %5601 = vmatmul.mubr.msk.bf16.vlgmr.msra.gmra.mrb[16].mxu1 %vm7410_vm13, %v8921_v39  ;;  %3032 = vperm.xlu1 %6526, %v7564_v12  }
 0x186   : > { %5604 = vmatprep.mubr.msk.bf16.mxu1 %vm7415_vm15, %v8921_v39  ;;  %5609 = vmatpush3.bf16.msra.mxu1 %v7512_v32 }
 0x187   : > { %5503 = vmatpush3.bf16.msra.mxu0 %v7029_v26  ;;  %5610 = vmatprep.subr.bf16.mxu1 %v7532_v43 }
 0x188   : > { %5512 = vmatprep.subr.bf16.mxu0 %v7035_v27 }
 0x189   : > { %3038 = vperm.xlu1 %6526, %v7582_v15  }
 0x18a   : > { %5505 = vmatmul.mubr.msk.bf16.vlgmr.msra.gmra.mrb[8].mxu0 %vm7143_vm9, %v8921_v39  ;;  %5611 = vmatpush3.bf16.msra.mxu1 %v7532_v43  ;;  %vm9003_vm9 = vnez %v8977_v16 }
 0x18b   : > { %5508 = vmatprep.mubr.msk.bf16.mxu0 %vm7147_vm10, %v8921_v39  ;;  %5513 = vmatpush3.bf16.msra.mxu0 %v7035_v27  ;;  %vm9008_vm10 = vnez %v8993_v46 }
 0x18c   : > { %5612 = vmatprep.subr.bf16.mxu1 %v7629_v21  ;;  %5514 = vmatprep.subr.bf16.mxu0 %v7161_v63 }
 0x18d   : > { %5605 = vmatmul.mubr.msk.bf16.gmra.mrb[20].mxu1 %vm7445_vm3, %v8921_v39  ;;  %3044 = vperm.xlu1 %6526, %v7594_v45  }
 0x18e   : > { %5613 = vmatpush3.bf16.msra.mxu1 %v7629_v21  ;;  %5624 = vmatprep.mubr.msk.bf16.mxu1 %vm9002_vm14, %v8921_v39 }
 0x18f   : > { %5515 = vmatpush3.bf16.msra.mxu0 %v7161_v63  ;;  %5614 = vmatprep.subr.bf16.mxu1 %v7641_v22 }
 0x190   : > { %5516 = vmatprep.subr.bf16.mxu0 %v7176_v28 }
 0x192   : > { %5509 = vmatmul.mubr.msk.bf16.gmra.mrb[12].mxu0 %vm9003_vm9, %v8921_v39  ;;  %5615 = vmatpush3.bf16.msra.mxu1 %v7641_v22 }
 0x193   : > { %5517 = vmatpush3.bf16.msra.mxu0 %v7176_v28  ;;  %5528 = vmatprep.mubr.msk.bf16.mxu0 %vm7349_vm4, %v8921_v39 }
 0x194   : > { %5616 = vmatprep.subr.bf16.mxu1 %v7653_v59  ;;  %5518 = vmatprep.subr.bf16.mxu0 %v7191_v29 }
 0x196   : > { %5617 = vmatpush3.bf16.msra.mxu1 %v7653_v59 }
 0x197   : > { %5519 = vmatpush3.bf16.msra.mxu0 %v7191_v29  ;;  %5618 = vmatprep.subr.bf16.mxu1 %v7011_v23 }
 0x198   : > { %v7661_v16 = vpop.f32.mrb[0].mxu1  ;;  %5520 = vmatprep.subr.bf16.mxu0 %v7201_v30 }
 0x199   : > { %v7665_v9 = vpop.f32.mrb[1].mxu1 }
 0x19a   : > { %5619 = vmatpush3.bf16.msra.mxu1 %v7667_v24  ;;  %v7670_v61 = vpop.f32.mrb[2].mxu1 }
 0x19b   : > { %9004 = vst [vmem:[#allocation8_spill] sm:$0xff] %v7670_v61  ;;  %5521 = vmatpush3.bf16.msra.mxu0 %v7201_v30  ;;  %v7674_v39 = vpop.f32.mrb[3].mxu1  ;;  %5620 = vmatprep.subr.bf16.mxu1 %v7020_v25 }
 0x19c   : > { %9005 = vst [vmem:[#allocation9_spill] sm:$0xff] %v7674_v39  ;;  %5522 = vmatprep.subr.bf16.mxu0 %v7209_v33 }
 0x19e   : > { %5621 = vmatpush3.bf16.msra.mxu1 %v7020_v25 }
 0x19f   : > { %5523 = vmatpush3.bf16.msra.mxu0 %v7209_v33  ;;  %5622 = vmatprep.subr.bf16.mxu1 %v7029_v26 }
 0x1a0   : > { %v7683_v23 = vpop.f32.mrb[4].mxu1  ;;  %5524 = vmatprep.subr.bf16.mxu0 %v7217_v2 }
 0x1a1   : > { %9006 = vst [vmem:[#allocation10_spill] sm:$0xff] %v7683_v23  ;;  %v7687_v39 = vpop.f32.mrb[5].mxu1  ;;  %v9007_v23 = vmov 1.0|1.0  }
 0x1a2   : > { %5623 = vmatpush3.bf16.msra.mxu1 %v7029_v26  ;;  %v7690_v61 = vpop.f32.mrb[6].mxu1  ;;  %v1824_v26 = vpop.permute.xlu1 %1823 }
 0x1a3   : > { %5525 = vmatpush3.bf16.msra.mxu0 %v7217_v2  ;;  %v7694_v25 = vpop.f32.mrb[7].mxu1  ;;  %5632 = vmatprep.subr.bf16.mxu1 %v7035_v27 }
 0x1a4   : > { %5526 = vmatprep.subr.bf16.mxu0 %v7225_v1 }
 0x1a5   : > { %5625 = vmatmul.mubr.msk.bf16.vlgmr.msra.gmra.mrb[16].mxu1 %vm7314_vm6, %v9007_v23  ;;  %vm1846_vm6 = vcmp.eq.s32.totalorder %v1824_v26, %v7065_v34 }
 0x1a6   : > { %5628 = vmatprep.mubr.msk.bf16.mxu1 %vm7321_vm7, %v9007_v23  ;;  %5633 = vmatpush3.bf16.msra.mxu1 %v7035_v27  ;;  %v1827_v27 = vpop.permute.xlu0 %1826 }
 0x1a7   : > { %5527 = vmatpush3.bf16.msra.mxu0 %v7225_v1  ;;  %5634 = vmatprep.subr.bf16.mxu1 %v7161_v63  ;;  %vm1847_vm7 = vcmp.eq.s32.totalorder %v1827_v27, %v7065_v34  ;;  %v7984_v27 = vld [vmem:[#allocation2 + $0x30] sm:$0xff]  }
 0x1a8   : > { %5536 = vmatprep.subr.bf16.mxu0 %v7233_v3 }
 0x1aa   : > { %5529 = vmatmul.mubr.msk.bf16.vlgmr.msra.gmra.mrb[8].mxu0 %vm7410_vm13, %v9007_v23  ;;  %5635 = vmatpush3.bf16.msra.mxu1 %v7161_v63 }
 0x1ab   : > { %5532 = vmatprep.mubr.msk.bf16.mxu0 %vm7415_vm15, %v9007_v23  ;;  %5537 = vmatpush3.bf16.msra.mxu0 %v7233_v3 }
 0x1ac   : > { %5636 = vmatprep.subr.bf16.mxu1 %v7176_v28  ;;  %5538 = vmatprep.subr.bf16.mxu0 %v7245_v8 }
 0x1ad   : > { %5629 = vmatmul.mubr.msk.bf16.gmra.mrb[20].mxu1 %vm7353_vm11, %v9007_v23  ;;  %vm7775_vm11 = vmpackc.low %vm1847_vm7, %vm1846_vm6 }
 0x1ae   : > { %5637 = vmatpush3.bf16.msra.mxu1 %v7176_v28  ;;  %5648 = vmatprep.mubr.msk.bf16.mxu1 %vm9008_vm10, %v9007_v23  ;;  %v1830_v28 = vpop.permute.xlu1 %1829 }
 0x1af   : > { %5539 = vmatpush3.bf16.msra.mxu0 %v7245_v8  ;;  %5638 = vmatprep.subr.bf16.mxu1 %v7191_v29  ;;  %vm1848_vm2 = vcmp.eq.s32.totalorder %v1830_v28, %v7065_v34 }
 0x1b0   : > { %5540 = vmatprep.subr.bf16.mxu0 %v7263_v11 }
 0x1b2   : > { %5533 = vmatmul.mubr.msk.bf16.gmra.mrb[12].mxu0 %vm7445_vm3, %v9007_v23  ;;  %5639 = vmatpush3.bf16.msra.mxu1 %v7191_v29  ;;  %v1833_v29 = vpop.permute.xlu1 %1832 }
 0x1b3   : > { %5541 = vmatpush3.bf16.msra.mxu0 %v7263_v11  ;;  %5552 = vmatprep.mubr.msk.bf16.mxu0 %vm9008_vm10, %v9007_v23  ;;  %vm1849_vm5 = vcmp.eq.s32.totalorder %v1833_v29, %v7065_v34 }
 0x1b4   : > { %5640 = vmatprep.subr.bf16.mxu1 %v7201_v30  ;;  %5542 = vmatprep.subr.bf16.mxu0 %v7275_v35  ;;  %vm7820_vm9 = vmpackc.low %vm1849_vm5, %vm1848_vm2 }
 0x1b6   : > { %5641 = vmatpush3.bf16.msra.mxu1 %v7201_v30  ;;  %v1839_v30 = vpop.permute.xlu1 %1838 }
 0x1b7   : > { %5543 = vmatpush3.bf16.msra.mxu0 %v7275_v35  ;;  %5642 = vmatprep.subr.bf16.mxu1 %v7209_v33  ;;  %vm1851_vm0 = vcmp.eq.s32.totalorder %v1839_v30, %v7065_v34  ;;  %v9027_v30 = vld [vmem:[#allocation10_spill] sm:$0xff] }
 0x1b8   : > { %5544 = vmatprep.subr.bf16.mxu0 %v7284_v36 }
 0x1ba   : > { %5643 = vmatpush3.bf16.msra.mxu1 %v7209_v33  ;;  %v1836_v33 = vpop.permute.xlu0 %1835 }
 0x1bb   : > { %5545 = vmatpush3.bf16.msra.mxu0 %v7284_v36  ;;  %5644 = vmatprep.subr.bf16.mxu1 %v7217_v2  ;;  %vm1850_vm14 = vcmp.eq.s32.totalorder %v1836_v33, %v7065_v34 }
 0x1bc   : > { %5546 = vmatprep.subr.bf16.mxu0 %v7293_v40  ;;  %vm7825_vm6 = vmpackc.low %vm1851_vm0, %vm1850_vm14 }
 0x1be   : > { %5645 = vmatpush3.bf16.msra.mxu1 %v7217_v2  ;;  %v1845_v2 = vpop.permute.xlu1 %1844 }
 0x1bf   : > { %5547 = vmatpush3.bf16.msra.mxu0 %v7293_v40  ;;  %5646 = vmatprep.subr.bf16.mxu1 %v7225_v1  ;;  %vm1853_vm5 = vcmp.eq.s32.totalorder %v1845_v2, %v7065_v34 }
 0x1c0   : > { %5548 = vmatprep.subr.bf16.mxu0 %v7299_v41 }
 0x1c2   : > { %5647 = vmatpush3.bf16.msra.mxu1 %v7225_v1  ;;  %v1842_v1 = vpop.permute.xlu0 %1841 }
 0x1c3   : > { %5549 = vmatpush3.bf16.msra.mxu0 %v7299_v41  ;;  %5656 = vmatprep.subr.bf16.mxu1 %v7233_v3  ;;  %vm1852_vm0 = vcmp.eq.s32.totalorder %v1842_v1, %v7065_v34 }
 0x1c4   : > { %5550 = vmatprep.subr.bf16.mxu0 %v7305_v44  ;;  %vm7855_vm3 = vmpackc.low %vm1853_vm5, %vm1852_vm0 }
 0x1c5   : > { %5649 = vmatmul.mubr.msk.bf16.vlgmr.msra.gmra.mrb[16].mxu1 %vm7494_vm12, %v9007_v23 }
 0x1c6   : > { %5652 = vmatprep.mubr.msk.bf16.mxu1 %vm7499_vm8, %v9007_v23  ;;  %5657 = vmatpush3.bf16.msra.mxu1 %v7233_v3 }
 0x1c7   : > { %5551 = vmatpush3.bf16.msra.mxu0 %v7305_v44  ;;  %5658 = vmatprep.subr.bf16.mxu1 %v7245_v8 }
 0x1c8   : > { %5560 = vmatprep.subr.bf16.mxu0 %v7319_v48 }
 0x1ca   : > { %5553 = vmatmul.mubr.msk.bf16.vlgmr.msra.gmra.mrb[8].mxu0 %vm7494_vm12, %v9007_v23  ;;  %5659 = vmatpush3.bf16.msra.mxu1 %v7245_v8 }
 0x1cb   : > { %5556 = vmatprep.mubr.msk.bf16.mxu0 %vm7499_vm8, %v9007_v23  ;;  %5561 = vmatpush3.bf16.msra.mxu0 %v7319_v48 }
 0x1cc   : > { %5660 = vmatprep.subr.bf16.mxu1 %v7263_v11  ;;  %5562 = vmatprep.subr.bf16.mxu0 %v7336_v53 }
 0x1cd   : > { %5653 = vmatmul.mubr.msk.bf16.gmra.mrb[20].mxu1 %vm7525_vm1, %v9007_v23 }
 0x1ce   : > { %5661 = vmatpush3.bf16.msra.mxu1 %v7263_v11  ;;  %5672 = vmatprep.mubr.msk.bf16.mxu1 %vm7775_vm11, %v9007_v23  ;;  %v2228_v11 = vpop.permute.xlu1 %2227 }
 0x1cf   : > { %5563 = vmatpush3.bf16.msra.mxu0 %v7336_v53  ;;  %5662 = vmatprep.subr.bf16.mxu1 %v7275_v35  ;;  %vm2248_vm7 = vcmp.eq.s32.totalorder %v2228_v11, %v7065_v34 }
 0x1d0   : > { %5564 = vmatprep.subr.bf16.mxu0 %v7359_v56 }
 0x1d2   : > { %5557 = vmatmul.mubr.msk.bf16.gmra.mrb[12].mxu0 %vm7525_vm1, %v9007_v23  ;;  %5663 = vmatpush3.bf16.msra.mxu1 %v7275_v35  ;;  %v2225_v35 = vpop.permute.xlu0 %2224 }
 0x1d3   : > { %5565 = vmatpush3.bf16.msra.mxu0 %v7359_v56  ;;  %5664 = vmatprep.subr.bf16.mxu1 %v7284_v36  ;;  %vm2247_vm2 = vcmp.eq.s32.totalorder %v2225_v35, %v7065_v34 }
 0x1d4   : > { %5566 = vmatprep.subr.bf16.mxu0 %v7371_v57  ;;  %5576 = vmatprep.mubr.msk.bf16.mxu0 %vm7775_vm11, %v9007_v23  ;;  %vm7851_vm14 = vmpackc.low %vm2248_vm7, %vm2247_vm2 }
 0x1d6   : > { %5665 = vmatpush3.bf16.msra.mxu1 %v7284_v36  ;;  %v9015_v36 = vmov 0 }
 0x1d7   : > { %5567 = vmatpush3.bf16.msra.mxu0 %v7371_v57  ;;  %5666 = vmatprep.subr.bf16.mxu1 %v7293_v40  ;;  %v9016_v36 = vsel %vm7851_vm14, 4294967295, %v9015_v36 }
 0x1d8   : > { %5568 = vmatprep.subr.bf16.mxu0 %v7380_v60 }
 0x1da   : > { %5667 = vmatpush3.bf16.msra.mxu1 %v7293_v40  ;;  %v9017_v40 = vmov 0 }
 0x1db   : > { %5569 = vmatpush3.bf16.msra.mxu0 %v7380_v60  ;;  %5668 = vmatprep.subr.bf16.mxu1 %v7299_v41  ;;  %v9018_v40 = vsel %vm7855_vm3, 4294967295, %v9017_v40 }
 0x1dc   : > { %5570 = vmatprep.subr.bf16.mxu0 %v7389_v0 }
 0x1de   : > { %5669 = vmatpush3.bf16.msra.mxu1 %v7299_v41  ;;  %v2231_v41 = vpop.permute.xlu1 %2230 }
 0x1df   : > { %5571 = vmatpush3.bf16.msra.mxu0 %v7389_v0  ;;  %5670 = vmatprep.subr.bf16.mxu1 %v7305_v44  ;;  %vm2249_vm7 = vcmp.eq.s32.totalorder %v2231_v41, %v7065_v34 }
 0x1e0   : > { %5572 = vmatprep.subr.bf16.mxu0 %v7395_v13 }
 0x1e2   : > { %5671 = vmatpush3.bf16.msra.mxu1 %v7305_v44  ;;  %v2234_v44 = vpop.permute.xlu0 %2233  ;;  %v2237_v47 = vpop.permute.xlu1 %2236 }
 0x1e3   : > { %5573 = vmatpush3.bf16.msra.mxu0 %v7395_v13  ;;  %5680 = vmatprep.subr.bf16.mxu1 %v7319_v48  ;;  %vm2250_vm2 = vcmp.eq.s32.totalorder %v2234_v44, %v7065_v34  ;;  %vm2251_vm5 = vcmp.eq.s32.totalorder %v2237_v47, %v7065_v34  ;;  %v8015_v44 = vld [vmem:[#allocation2 + $0x80] sm:$0xff]  }
 0x1e4   : > { %5574 = vmatprep.subr.bf16.mxu0 %v7401_v4 }
 0x1e5   : > { %5673 = vmatmul.mubr.msk.bf16.vlgmr.msra.gmra.mrb[16].mxu1 %vm7820_vm9, %v9007_v23 }
 0x1e6   : > { %5676 = vmatprep.mubr.msk.bf16.mxu1 %vm7825_vm6, %v9007_v23  ;;  %5681 = vmatpush3.bf16.msra.mxu1 %v7319_v48  ;;  %v2240_v48 = vpop.permute.xlu0 %2239 }
 0x1e7   : > { %5575 = vmatpush3.bf16.msra.mxu0 %v7401_v4  ;;  %5682 = vmatprep.subr.bf16.mxu1 %v7336_v53  ;;  %vm2252_vm0 = vcmp.eq.s32.totalorder %v2240_v48, %v7065_v34 }
 0x1e8   : > { %5704 = vmatprep.subr.bf16.mxu0 %v7491_v14 }
 0x1ea   : > { %5577 = vmatmul.mubr.msk.bf16.vlgmr.msra.gmra.mrb[8].mxu0 %vm7820_vm9, %v9007_v23  ;;  %5683 = vmatpush3.bf16.msra.mxu1 %v7336_v53  ;;  %v7904_v53 = vld [vmem:[#allocation2 + $0x78] sm:$0xff]  }
 0x1eb   : > { %5580 = vmatprep.mubr.msk.bf16.mxu0 %vm7825_vm6, %v9007_v23  ;;  %5705 = vmatpush3.bf16.msra.mxu0 %v7491_v14 }
 0x1ec   : > { %5684 = vmatprep.subr.bf16.mxu1 %v7359_v56  ;;  %5706 = vmatprep.subr.bf16.mxu0 %v7458_v5 }
 0x1ed   : > { %5677 = vmatmul.mubr.msk.bf16.gmra.mrb[20].mxu1 %vm7855_vm3, %v9007_v23 }
 0x1ee   : > { %5685 = vmatpush3.bf16.msra.mxu1 %v7359_v56  ;;  %5696 = vmatprep.mubr.msk.bf16.mxu1 %vm7851_vm14, %v9007_v23  ;;  %vm7900_vm14 = vmpackc.low %vm2250_vm2, %vm2249_vm7  ;;  %v2243_v56 = vpop.permute.xlu1 %2242 }
 0x1ef   : > { %5707 = vmatpush3.bf16.msra.mxu0 %v7458_v5  ;;  %5686 = vmatprep.subr.bf16.mxu1 %v7371_v57  ;;  %vm2253_vm7 = vcmp.eq.s32.totalorder %v2243_v56, %v7065_v34  ;;  %v8256_v56 = vld [vmem:[#allocation2 + $0x128] sm:$0xff]  }
 0x1f0   : > { %5708 = vmatprep.subr.bf16.mxu0 %v7529_v37  ;;  %9041 = vst [vmem:[#allocation16_spill] sm:$0xff] %v8256_v56 }
 0x1f2   : > { %5581 = vmatmul.mubr.msk.bf16.gmra.mrb[12].mxu0 %vm7855_vm3, %v9007_v23  ;;  %5687 = vmatpush3.bf16.msra.mxu1 %v7371_v57  ;;  %v2246_v57 = vpop.permute.xlu0 %2245 }
 0x1f3   : > { %5709 = vmatpush3.bf16.msra.mxu0 %v7529_v37  ;;  %5720 = vmatprep.mubr.msk.bf16.mxu0 %vm9008_vm10, %v9007_v23  ;;  %vm7907_vm10 = vmpackc.low %vm2252_vm0, %vm2251_vm5  ;;  %vm2254_vm2 = vcmp.eq.s32.totalorder %v2246_v57, %v7065_v34 }
 0x1f4   : > { %5688 = vmatprep.subr.bf16.mxu1 %v7380_v60  ;;  %5710 = vmatprep.subr.bf16.mxu0 %v7543_v6  ;;  %vm7931_vm5 = vmpackc.low %vm2254_vm2, %vm2253_vm7 }
 0x1f6   : > { %5689 = vmatpush3.bf16.msra.mxu1 %v7380_v60 }
 0x1f7   : > { %5711 = vmatpush3.bf16.msra.mxu0 %v7543_v6  ;;  %5690 = vmatprep.subr.bf16.mxu1 %v7389_v0 }
 0x1f8   : > { %5712 = vmatprep.subr.bf16.mxu0 %v7559_v10 }
 0x1fa   : > { %5691 = vmatpush3.bf16.msra.mxu1 %v7389_v0  ;;  %v6798_v0 = vmov 10  }
 0x1fb   : > { %5713 = vmatpush3.bf16.msra.mxu0 %v7559_v10  ;;  %5692 = vmatprep.subr.bf16.mxu1 %v7395_v13 }
 0x1fc   : > { %5714 = vmatprep.subr.bf16.mxu0 %v7573_v18  ;;  %6527 = vset.pattern.permute.xlu1 %v6798_v0 }
 0x1fd   : > { %3427 = vperm.xlu1 %6527, %v7548_v52   ;;  %6528 = vset.pattern.permute.xlu0 %v6798_v0  ;;  %v8250_v0 = vld [vmem:[#allocation2 + $0x120] sm:$0xff]  }
 0x1fe   : > { %5693 = vmatpush3.bf16.msra.mxu1 %v7395_v13  ;;  %3430 = vperm.xlu0 %6528, %v7568_v62   ;;  %9040 = vst [vmem:[#allocation15_spill] sm:$0xff] %v8250_v0 }
 0x1ff   : > { %5715 = vmatpush3.bf16.msra.mxu0 %v7573_v18  ;;  %5694 = vmatprep.subr.bf16.mxu1 %v7401_v4 }
 0x200   : > { %5716 = vmatprep.subr.bf16.mxu0 %v7597_v31 }
 0x201   : > { %3433 = vperm.xlu1 %6527, %v7564_v12  }
 0x202   : > { %5695 = vmatpush3.bf16.msra.mxu1 %v7401_v4  ;;  %3439 = vperm.xlu0 %6528, %v7582_v15  }
 0x203   : > { %5717 = vmatpush3.bf16.msra.mxu0 %v7597_v31  ;;  %5824 = vmatprep.subr.bf16.mxu1 %v7491_v14 }
 0x204   : > { %5718 = vmatprep.subr.bf16.mxu0 %v7904_v53 }
 0x205   : > { %5697 = vmatmul.mubr.msk.bf16.vlgmr.msra.gmra.mrb[16].mxu1 %vm7900_vm14, %v9007_v23  ;;  %3436 = vperm.xlu1 %6527, %v7578_v49  }
 0x206   : > { %5700 = vmatprep.mubr.msk.bf16.mxu1 %vm7907_vm10, %v9007_v23  ;;  %5825 = vmatpush3.bf16.msra.mxu1 %v7491_v14 }
 0x207   : > { %5719 = vmatpush3.bf16.msra.mxu0 %v7904_v53  ;;  %5826 = vmatprep.subr.bf16.mxu1 %v7458_v5 }
 0x208   : > { %5728 = vmatprep.subr.bf16.mxu0 %v7512_v32  ;;  %3445 = vperm.xlu0 %6528, %v7594_v45  }
 0x209   : > { %3442 = vperm.xlu1 %6527, %v7590_v20  }
 0x20a   : > { %5721 = vmatmul.mubr.msk.bf16.vlgmr.msra.gmra.mrb[16].mxu0 %vm7494_vm12, %v9007_v23  ;;  %5827 = vmatpush3.bf16.msra.mxu1 %v7458_v5 }
 0x20b   : > { %5724 = vmatprep.mubr.msk.bf16.mxu0 %vm7499_vm8, %v9007_v23  ;;  %5729 = vmatpush3.bf16.msra.mxu0 %v7512_v32 }
 0x20c   : > { %5828 = vmatprep.subr.bf16.mxu1 %v7529_v37  ;;  %5730 = vmatprep.subr.bf16.mxu0 %v7532_v43 }
 0x20d   : > { %5701 = vmatmul.mubr.msk.bf16.gmra.mrb[20].mxu1 %vm7931_vm5, %v9007_v23  ;;  %3448 = vperm.xlu1 %6527, %v7604_v19  }
 0x20e   : > { %5829 = vmatpush3.bf16.msra.mxu1 %v7529_v37  ;;  %5840 = vmatprep.mubr.msk.bf16.mxu1 %vm7775_vm11, %v9007_v23  ;;  %v9025_v37 = vld [vmem:[#allocation8_spill] sm:$0xff] }
 0x20f   : > { %5731 = vmatpush3.bf16.msra.mxu0 %v7532_v43  ;;  %5830 = vmatprep.subr.bf16.mxu1 %v7543_v6 }
 0x210   : > { %5732 = vmatprep.subr.bf16.mxu0 %v7629_v21  ;;  %6529 = vset.pattern.permute.xlu0 %v6799_v42 }
 0x211   : > { %6530 = vset.pattern.permute.xlu1 %v6799_v42  ;;  %3828 = vperm.xlu0 %6529, %v7548_v52  }
 0x212   : > { %5725 = vmatmul.mubr.msk.bf16.gmra.mrb[20].mxu0 %vm7525_vm1, %v9007_v23  ;;  %5831 = vmatpush3.bf16.msra.mxu1 %v7543_v6 }
 0x213   : > { %5733 = vmatpush3.bf16.msra.mxu0 %v7629_v21  ;;  %5744 = vmatprep.mubr.msk.bf16.mxu0 %vm7349_vm4, %v9007_v23  ;;  %vm9028_vm4 = vnez %v8993_v46  ;;  %v8055_v46 = vld [vmem:[#allocation2 + $0x98] sm:$0xff]  }
 0x214   : > { %5832 = vmatprep.subr.bf16.mxu1 %v7559_v10  ;;  %5734 = vmatprep.subr.bf16.mxu0 %v7641_v22 }
 0x215   : > { %3831 = vperm.xlu1 %6530, %v7568_v62   ;;  %3837 = vperm.xlu0 %6529, %v7578_v49   ;;  %v8262_v49 = vld [vmem:[#allocation2 + $0x130] sm:$0xff]  }
 0x216   : > { %5833 = vmatpush3.bf16.msra.mxu1 %v7559_v10  ;;  %9042 = vst [vmem:[#allocation17_spill] sm:$0xff] %v8262_v49 }
 0x217   : > { %5735 = vmatpush3.bf16.msra.mxu0 %v7641_v22  ;;  %5834 = vmatprep.subr.bf16.mxu1 %v7573_v18 }
 0x218   : > { %5736 = vmatprep.subr.bf16.mxu0 %v7653_v59 }
 0x219   : > { %3834 = vperm.xlu1 %6530, %v7564_v12   ;;  %3843 = vperm.xlu0 %6529, %v7590_v20  }
 0x21a   : > { %5835 = vmatpush3.bf16.msra.mxu1 %v7573_v18 }
 0x21b   : > { %5737 = vmatpush3.bf16.msra.mxu0 %v7653_v59  ;;  %5836 = vmatprep.subr.bf16.mxu1 %v7597_v31 }
 0x21c   : > { %5738 = vmatprep.subr.bf16.mxu0 %v7667_v24 }
 0x21d   : > { %v5338_v54 = vpop.f32.mrb[0].mxu0  ;;  %3840 = vperm.xlu1 %6530, %v7582_v15   ;;  %v8087_v15 = vld [vmem:[#allocation2 + $0xa8] sm:$0xff]   ;;  %3849 = vperm.xlu0 %6529, %v7604_v19   ;;  %v8118_v19 = vld [vmem:[#allocation2 + $0xb8] sm:$0xff]  }
 0x21e   : > { %v7973_v13 = vadd.f32 %v5338_v54, %v7661_v16  ;;  %v1106_v4 = vpop.f32.mrb[1].mxu0  ;;  %5837 = vmatpush3.bf16.msra.mxu1 %v7597_v31  ;;  %v9026_v16 = vld [vmem:[#allocation9_spill] sm:$0xff]  ;;  %v8130_v54 = vld [vmem:[#allocation2 + $0xc0] sm:$0xff]  }
 0x21f   : > { %v7977_v5 = vadd.f32 %v1106_v4, %v7665_v9  ;;  %v5339_v14 = vpop.f32.mrb[2].mxu0  ;;  %5739 = vmatpush3.bf16.msra.mxu0 %v7667_v24  ;;  %5838 = vmatprep.subr.bf16.mxu1 %v7904_v53  ;;  %v7994_v9 = vld [vmem:[#allocation2 + $0x38] sm:$0xff]   ;;  %v8172_v4 = vld [vmem:[#allocation2 + $0xe0] sm:$0xff]  }
 0x220   : > { %v7982_v6 = vadd.f32 %v5339_v14, %v9025_v37  ;;  %v1109_v26 = vpop.f32.mrb[3].mxu0  ;;  %5740 = vmatprep.subr.bf16.mxu0 %v7984_v27  ;;  %v8178_v14 = vld [vmem:[#allocation2 + $0xe8] sm:$0xff]   ;;  %v8184_v37 = vld [vmem:[#allocation2 + $0xf0] sm:$0xff]  }
 0x221   : > { %v7988_v28 = vadd.f32 %v1109_v26, %v9026_v16  ;;  %3846 = vperm.xlu1 %6530, %v7594_v45   ;;  %9031 = vst [vmem:[#allocation8_spill] sm:$0xff] %v8178_v14  ;;  %9032 = vst [vmem:[#allocation9_spill] sm:$0xff] %v8184_v37  ;;  %v8190_v26 = vld [vmem:[#allocation2 + $0xf8] sm:$0xff]   ;;  %v2626_v16 = vpop.permute.xlu1 %2625 }
 0x222   : > { %5839 = vmatpush3.bf16.msra.mxu1 %v7904_v53  ;;  %9033 = vst [vmem:[#allocation10_spill] sm:$0xff] %v8190_v26 }
 0x223   : > { %5741 = vmatpush3.bf16.msra.mxu0 %v7984_v27  ;;  %5848 = vmatprep.subr.bf16.mxu1 %v7512_v32 }
 0x224   : > { %5742 = vmatprep.subr.bf16.mxu0 %v7994_v9 }
 0x225   : > { %v5342_v29 = vpop.f32.mrb[4].mxu0  ;;  %5841 = vmatmul.mubr.msk.bf16.vlgmr.msra.gmra.mrb[24].mxu1 %vm7820_vm9, %v9007_v23  ;;  %v2632_v42 = vpop.permute.xlu1 %2631 }
 0x226   : > { %v8001_v33 = vadd.f32 %v5342_v29, %v9027_v30  ;;  %v1122_v2 = vpop.f32.mrb[5].mxu0  ;;  %5844 = vmatprep.mubr.msk.bf16.mxu1 %vm7825_vm6, %v9007_v23  ;;  %5849 = vmatpush3.bf16.msra.mxu1 %v7512_v32  ;;  %v8065_v32 = vld [vmem:[#allocation2 + $0xa0] sm:$0xff]   ;;  %v2629_v29 = vpop.permute.xlu0 %2628  ;;  %vm2650_vm0 = vcmp.eq.s32.totalorder %v2632_v42, %v7065_v34 }
 0x227   : > { %v8008_v1 = vadd.f32 %v1122_v2, %v7687_v39  ;;  %v5343_v11 = vpop.f32.mrb[6].mxu0  ;;  %5743 = vmatpush3.bf16.msra.mxu0 %v7994_v9  ;;  %5850 = vmatprep.subr.bf16.mxu1 %v7532_v43  ;;  %v8030_v39 = vld [vmem:[#allocation2 + $0x88] sm:$0xff]   ;;  %v8202_v30 = vld [vmem:[#allocation2 + $0x100] sm:$0xff]  }
 0x228   : > { %v8013_v35 = vadd.f32 %v5343_v11, %v7690_v61  ;;  %v1125_v41 = vpop.f32.mrb[7].mxu0  ;;  %5752 = vmatprep.subr.bf16.mxu0 %v8015_v44  ;;  %v8097_v61 = vld [vmem:[#allocation2 + $0xb0] sm:$0xff]   ;;  %9034 = vst [vmem:[#allocation11_spill] sm:$0xff] %v8202_v30  ;;  %v8220_v11 = vld [vmem:[#allocation2 + $0x108] sm:$0xff]   ;;  %v9070_v50 = vld [vmem:[#allocation8_spill] sm:$0xff] }
 0x229   : > { %v8019_v47 = vadd.f32 %v1125_v41, %v7694_v25  ;;  %9037 = vst [vmem:[#allocation12_spill] sm:$0xff] %v8220_v11  ;;  %v8232_v41 = vld [vmem:[#allocation2 + $0x110] sm:$0xff]   ;;  %v9071_v55 = vld [vmem:[#allocation9_spill] sm:$0xff] }
 0x22a   : > { %5745 = vmatmul.mubr.msk.bf16.vlgmr.msra.gmra.mrb[16].mxu0 %vm7410_vm13, %v9007_v23  ;;  %5851 = vmatpush3.bf16.msra.mxu1 %v7532_v43  ;;  %vm9029_vm13 = vnez %v8995_v51  ;;  %9038 = vst [vmem:[#allocation13_spill] sm:$0xff] %v8232_v41  ;;  %v2638_v25 = vpop.permute.xlu0 %2637  ;;  %v9072_v60 = vld [vmem:[#allocation10_spill] sm:$0xff] }
 0x22b   : > { %5748 = vmatprep.mubr.msk.bf16.mxu0 %vm7415_vm15, %v9007_v23  ;;  %5753 = vmatpush3.bf16.msra.mxu0 %v8015_v44  ;;  %vm2648_vm15 = vcmp.eq.s32.totalorder %v2626_v16, %v7065_v34  ;;  %v8241_v16 = vld [vmem:[#allocation2 + $0x118] sm:$0xff]  }
 0x22c   : > { %5852 = vmatprep.subr.bf16.mxu1 %v7629_v21  ;;  %5754 = vmatprep.subr.bf16.mxu0 %v8030_v39  ;;  %9039 = vst [vmem:[#allocation14_spill] sm:$0xff] %v8241_v16 }
 0x22d   : > { %5845 = vmatmul.mubr.msk.bf16.gmra.mrb[28].mxu1 %vm7855_vm3, %v9007_v23 }
 0x22e   : > { %5853 = vmatpush3.bf16.msra.mxu1 %v7629_v21  ;;  %5864 = vmatprep.mubr.msk.bf16.mxu1 %vm9028_vm4, %v9007_v23  ;;  %vm2652_vm4 = vcmp.eq.s32.totalorder %v2638_v25, %v7065_v34  ;;  %v2644_v52 = vpop.permute.xlu0 %2643 }
 0x22f   : > { %5755 = vmatpush3.bf16.msra.mxu0 %v8030_v39  ;;  %5854 = vmatprep.subr.bf16.mxu1 %v7641_v22 }
 0x230   : > { %5756 = vmatprep.subr.bf16.mxu0 %v8042_v38 }
 0x232   : > { %5749 = vmatmul.mubr.msk.bf16.gmra.mrb[20].mxu0 %vm9029_vm13, %v9007_v23  ;;  %5855 = vmatpush3.bf16.msra.mxu1 %v7641_v22  ;;  %v3027_v42 = vpop.permute.xlu0 %3026 }
 0x233   : > { %5757 = vmatpush3.bf16.msra.mxu0 %v8042_v38  ;;  %5768 = vmatprep.mubr.msk.bf16.mxu0 %vm7775_vm11, %v9007_v23 }
 0x234   : > { %5856 = vmatprep.subr.bf16.mxu1 %v7653_v59  ;;  %5758 = vmatprep.subr.bf16.mxu0 %v8055_v46 }
 0x236   : > { %5857 = vmatpush3.bf16.msra.mxu1 %v7653_v59 }
 0x237   : > { %5759 = vmatpush3.bf16.msra.mxu0 %v8055_v46  ;;  %5858 = vmatprep.subr.bf16.mxu1 %v7667_v24 }
 0x238   : > { %v8063_v51 = vpop.f32.mrb[8].mxu1  ;;  %5760 = vmatprep.subr.bf16.mxu0 %v8065_v32 }
 0x239   : > { %v8070_v62 = vpop.f32.mrb[9].mxu1 }
 0x23a   : > { %v8076_v12 = vpop.f32.mrb[10].mxu1  ;;  %5859 = vmatpush3.bf16.msra.mxu1 %v7667_v24 }
 0x23b   : > { %v8081_v22 = vpop.f32.mrb[11].mxu1  ;;  %5761 = vmatpush3.bf16.msra.mxu0 %v8065_v32  ;;  %5860 = vmatprep.subr.bf16.mxu1 %v7984_v27 }
 0x23c   : > { %5762 = vmatprep.subr.bf16.mxu0 %v8087_v15 }
 0x23e   : > { %5861 = vmatpush3.bf16.msra.mxu1 %v7984_v27 }
 0x23f   : > { %5763 = vmatpush3.bf16.msra.mxu0 %v8087_v15  ;;  %5862 = vmatprep.subr.bf16.mxu1 %v7994_v9 }
 0x240   : > { %v8095_v59 = vpop.f32.mrb[12].mxu1  ;;  %5764 = vmatprep.subr.bf16.mxu0 %v8097_v61 }
 0x241   : > { %v8102_v48 = vpop.f32.mrb[13].mxu1 }
 0x242   : > { %v8107_v45 = vpop.f32.mrb[14].mxu1  ;;  %5863 = vmatpush3.bf16.msra.mxu1 %v7994_v9 }
 0x243   : > { %v8112_v57 = vpop.f32.mrb[15].mxu1  ;;  %5765 = vmatpush3.bf16.msra.mxu0 %v8097_v61  ;;  %5872 = vmatprep.subr.bf16.mxu1 %v8015_v44 }
 0x244   : > { %5766 = vmatprep.subr.bf16.mxu0 %v8118_v19 }
 0x245   : > { %5865 = vmatmul.mubr.msk.bf16.vlgmr.msra.gmra.mrb[24].mxu1 %vm7494_vm12, %v9007_v23  ;;  %vm2649_vm12 = vcmp.eq.s32.totalorder %v2629_v29, %v7065_v34  ;;  %v2635_v29 = vpop.permute.xlu1 %2634 }
 0x246   : > { %5868 = vmatprep.mubr.msk.bf16.mxu1 %vm7499_vm8, %v9007_v23  ;;  %5873 = vmatpush3.bf16.msra.mxu1 %v8015_v44  ;;  %vm9030_vm8 = vnez %v9016_v36  ;;  %vm2651_vm7 = vcmp.eq.s32.totalorder %v2635_v29, %v7065_v34  ;;  %v6675_v29 = vld [vmem:[#allocation2 + $0x40] sm:$0xff]  }
 0x247   : > { %5767 = vmatpush3.bf16.msra.mxu0 %v8118_v19  ;;  %5874 = vmatprep.subr.bf16.mxu1 %v8030_v39  ;;  %vm8272_vm13 = vmpackc.low %vm2651_vm7, %vm2650_vm0  ;;  %vm3049_vm0 = vcmp.eq.s32.totalorder %v3027_v42, %v7065_v34  ;;  %v6678_v42 = vld [vmem:[#allocation2 + $0x58] sm:$0xff]  }
 0x248   : > { %5776 = vmatprep.subr.bf16.mxu0 %v8130_v54 }
 0x249   : > { %v2641_v20 = vpop.permute.xlu1 %2640 }
 0x24a   : > { %5769 = vmatmul.mubr.msk.bf16.vlgmr.msra.gmra.mrb[16].mxu0 %vm7820_vm9, %v9007_v23  ;;  %5875 = vmatpush3.bf16.msra.mxu1 %v8030_v39  ;;  %vm2653_vm2 = vcmp.eq.s32.totalorder %v2641_v20, %v7065_v34 }
 0x24b   : > { %5772 = vmatprep.mubr.msk.bf16.mxu0 %vm7825_vm6, %v9007_v23  ;;  %5777 = vmatpush3.bf16.msra.mxu0 %v8130_v54 }
 0x24c   : > { %5876 = vmatprep.subr.bf16.mxu1 %v8042_v38  ;;  %5778 = vmatprep.subr.bf16.mxu0 %v8142_v17 }
 0x24d   : > { %5869 = vmatmul.mubr.msk.bf16.gmra.mrb[28].mxu1 %vm7525_vm1, %v9007_v23  ;;  %vm8215_vm1 = vmpackc.low %vm2649_vm12, %vm2648_vm15  ;;  %v2647_v21 = vpop.permute.xlu1 %2646 }
 0x24e   : > { %5877 = vmatpush3.bf16.msra.mxu1 %v8042_v38  ;;  %5888 = vmatprep.mubr.msk.bf16.mxu1 %vm9030_vm8, %v9007_v23  ;;  %vm8279_vm15 = vmpackc.low %vm2653_vm2, %vm2652_vm4  ;;  %vm2655_vm7 = vcmp.eq.s32.totalorder %v2647_v21, %v7065_v34  ;;  %vm2654_vm2 = vcmp.eq.s32.totalorder %v2644_v52, %v7065_v34  ;;  %v6676_v52 = vld [vmem:[#allocation2 + $0x48] sm:$0xff]   ;;  %v6677_v21 = vld [vmem:[#allocation2 + $0x50] sm:$0xff]  }
 0x24f   : > { %5779 = vmatpush3.bf16.msra.mxu0 %v8142_v17  ;;  %5878 = vmatprep.subr.bf16.mxu1 %v8055_v46 }
 0x250   : > { %5780 = vmatprep.subr.bf16.mxu0 %v8154_v58 }
 0x251   : > { %v3030_v25 = vpop.permute.xlu1 %3029 }
 0x252   : > { %5773 = vmatmul.mubr.msk.bf16.gmra.mrb[20].mxu0 %vm7855_vm3, %v9007_v23  ;;  %5879 = vmatpush3.bf16.msra.mxu1 %v8055_v46  ;;  %vm3050_vm12 = vcmp.eq.s32.totalorder %v3030_v25, %v7065_v34  ;;  %vm8307_vm3 = vmpackc.low %vm2655_vm7, %vm2654_vm2 }
 0x253   : > { %5781 = vmatpush3.bf16.msra.mxu0 %v8154_v58  ;;  %5792 = vmatprep.mubr.msk.bf16.mxu0 %vm9030_vm8, %v9007_v23  ;;  %vm8303_vm4 = vmpackc.low %vm3050_vm12, %vm3049_vm0 }
 0x254   : > { %5880 = vmatprep.subr.bf16.mxu1 %v8065_v32  ;;  %5782 = vmatprep.subr.bf16.mxu0 %v8166_v7 }
 0x256   : > { %5881 = vmatpush3.bf16.msra.mxu1 %v8065_v32 }
 0x257   : > { %5783 = vmatpush3.bf16.msra.mxu0 %v8166_v7  ;;  %5882 = vmatprep.subr.bf16.mxu1 %v8087_v15 }
 0x258   : > { %5784 = vmatprep.subr.bf16.mxu0 %v8172_v4 }
 0x25a   : > { %5883 = vmatpush3.bf16.msra.mxu1 %v8087_v15 }
 0x25b   : > { %5785 = vmatpush3.bf16.msra.mxu0 %v8172_v4  ;;  %5884 = vmatprep.subr.bf16.mxu1 %v8097_v61 }
 0x25c   : > { %5786 = vmatprep.subr.bf16.mxu0 %v8178_v14 }
 0x25e   : > { %5885 = vmatpush3.bf16.msra.mxu1 %v8097_v61 }
 0x25f   : > { %5787 = vmatpush3.bf16.msra.mxu0 %v8178_v14  ;;  %5886 = vmatprep.subr.bf16.mxu1 %v8118_v19 }
 0x260   : > { %5788 = vmatprep.subr.bf16.mxu0 %v8184_v37 }
 0x262   : > { %5887 = vmatpush3.bf16.msra.mxu1 %v8118_v19 }
 0x263   : > { %5789 = vmatpush3.bf16.msra.mxu0 %v8184_v37  ;;  %5896 = vmatprep.subr.bf16.mxu1 %v8130_v54 }
 0x264   : > { %5790 = vmatprep.subr.bf16.mxu0 %v8190_v26 }
 0x265   : > { %5889 = vmatmul.mubr.msk.bf16.vlgmr.msra.gmra.mrb[24].mxu1 %vm7900_vm14, %v9007_v23 }
 0x266   : > { %5892 = vmatprep.mubr.msk.bf16.mxu1 %vm7907_vm10, %v9007_v23  ;;  %5897 = vmatpush3.bf16.msra.mxu1 %v8130_v54 }
 0x267   : > { %5791 = vmatpush3.bf16.msra.mxu0 %v8190_v26  ;;  %5898 = vmatprep.subr.bf16.mxu1 %v8142_v17 }
 0x268   : > { %5800 = vmatprep.subr.bf16.mxu0 %v8202_v30 }
 0x26a   : > { %5793 = vmatmul.mubr.msk.bf16.vlgmr.msra.gmra.mrb[16].mxu0 %vm7900_vm14, %v9007_v23  ;;  %5899 = vmatpush3.bf16.msra.mxu1 %v8142_v17 }
 0x26b   : > { %5796 = vmatprep.mubr.msk.bf16.mxu0 %vm7907_vm10, %v9007_v23  ;;  %5801 = vmatpush3.bf16.msra.mxu0 %v8202_v30 }
 0x26c   : > { %5900 = vmatprep.subr.bf16.mxu1 %v8154_v58  ;;  %5802 = vmatprep.subr.bf16.mxu0 %v8220_v11 }
 0x26d   : > { %5893 = vmatmul.mubr.msk.bf16.gmra.mrb[28].mxu1 %vm7931_vm5, %v9007_v23 }
 0x26e   : > { %5901 = vmatpush3.bf16.msra.mxu1 %v8154_v58  ;;  %5912 = vmatprep.mubr.msk.bf16.mxu1 %vm8215_vm1, %v9007_v23 }
 0x26f   : > { %5803 = vmatpush3.bf16.msra.mxu0 %v8220_v11  ;;  %5902 = vmatprep.subr.bf16.mxu1 %v8166_v7 }
 0x270   : > { %5804 = vmatprep.subr.bf16.mxu0 %v8232_v41 }
 0x272   : > { %5797 = vmatmul.mubr.msk.bf16.gmra.mrb[20].mxu0 %vm7931_vm5, %v9007_v23  ;;  %5903 = vmatpush3.bf16.msra.mxu1 %v8166_v7 }
 0x273   : > { %5805 = vmatpush3.bf16.msra.mxu0 %v8232_v41  ;;  %5904 = vmatprep.subr.bf16.mxu1 %v8172_v4 }
 0x274   : > { %5806 = vmatprep.subr.bf16.mxu0 %v8241_v16  ;;  %5816 = vmatprep.mubr.msk.bf16.mxu0 %vm8215_vm1, %v9007_v23 }
 0x276   : > { %5905 = vmatpush3.bf16.msra.mxu1 %v8172_v4 }
 0x277   : > { %5807 = vmatpush3.bf16.msra.mxu0 %v8241_v16  ;;  %5906 = vmatprep.subr.bf16.mxu1 %v8178_v14 }
 0x278   : > { %5808 = vmatprep.subr.bf16.mxu0 %v8250_v0 }
 0x27a   : > { %5907 = vmatpush3.bf16.msra.mxu1 %v8178_v14 }
 0x27b   : > { %5809 = vmatpush3.bf16.msra.mxu0 %v8250_v0  ;;  %5908 = vmatprep.subr.bf16.mxu1 %v8184_v37 }
 0x27c   : > { %5810 = vmatprep.subr.bf16.mxu0 %v8256_v56 }
 0x27e   : > { %5909 = vmatpush3.bf16.msra.mxu1 %v8184_v37  ;;  %v8276_v37 = vld [vmem:[#allocation2 + $0x138] sm:$0xff]  }
 0x27f   : > { %5811 = vmatpush3.bf16.msra.mxu0 %v8256_v56  ;;  %5910 = vmatprep.subr.bf16.mxu1 %v8190_v26  ;;  %9045 = vst [vmem:[#allocation18_spill] sm:$0xff] %v8276_v37 }
 0x280   : > { %5812 = vmatprep.subr.bf16.mxu0 %v8262_v49 }
 0x282   : > { %5911 = vmatpush3.bf16.msra.mxu1 %v8190_v26  ;;  %v6680_v26 = vld [vmem:[#allocation2 + $0x68] sm:$0xff]  }
 0x283   : > { %5813 = vmatpush3.bf16.msra.mxu0 %v8262_v49  ;;  %5920 = vmatprep.subr.bf16.mxu1 %v8202_v30 }
 0x284   : > { %5814 = vmatprep.subr.bf16.mxu0 %v8276_v37 }
 0x285   : > { %5913 = vmatmul.mubr.msk.bf16.vlgmr.msra.gmra.mrb[24].mxu1 %vm8272_vm13, %v9007_v23 }
 0x286   : > { %5916 = vmatprep.mubr.msk.bf16.mxu1 %vm8279_vm15, %v9007_v23  ;;  %5921 = vmatpush3.bf16.msra.mxu1 %v8202_v30  ;;  %v9048_v30 = vmov 0  ;;  %v9081_v20 = vld [vmem:[#allocation18_spill] sm:$0xff] }
 0x287   : > { %5815 = vmatpush3.bf16.msra.mxu0 %v8276_v37  ;;  %5922 = vmatprep.subr.bf16.mxu1 %v8220_v11  ;;  %v9049_v30 = vsel %vm8303_vm4, 4294967295, %v9048_v30 }
 0x288   : > { %5944 = vmatprep.subr.bf16.mxu0 %v6675_v29 }
 0x28a   : > { %5817 = vmatmul.mubr.msk.bf16.vlgmr.msra.gmra.mrb[16].mxu0 %vm8272_vm13, %v9007_v23  ;;  %5923 = vmatpush3.bf16.msra.mxu1 %v8220_v11  ;;  %v3036_v11 = vpop.permute.xlu0 %3035 }
 0x28b   : > { %5820 = vmatprep.mubr.msk.bf16.mxu0 %vm8279_vm15, %v9007_v23  ;;  %5945 = vmatpush3.bf16.msra.mxu0 %v6675_v29  ;;  %vm3052_vm0 = vcmp.eq.s32.totalorder %v3036_v11, %v7065_v34  ;;  %v6682_v11 = vld [vmem:[#allocation2] sm:$0xff]  }
 0x28c   : > { %5924 = vmatprep.subr.bf16.mxu1 %v8232_v41  ;;  %5946 = vmatprep.subr.bf16.mxu0 %v6676_v52 }
 0x28d   : > { %5917 = vmatmul.mubr.msk.bf16.gmra.mrb[28].mxu1 %vm8307_vm3, %v9007_v23 }
 0x28e   : > { %5925 = vmatpush3.bf16.msra.mxu1 %v8232_v41  ;;  %5936 = vmatprep.mubr.msk.bf16.mxu1 %vm8303_vm4, %v9007_v23  ;;  %v3033_v41 = vpop.permute.xlu1 %3032  ;;  %v3042_v14 = vpop.permute.xlu0 %3041 }
 0x28f   : > { %5947 = vmatpush3.bf16.msra.mxu0 %v6676_v52  ;;  %5926 = vmatprep.subr.bf16.mxu1 %v8241_v16  ;;  %vm3051_vm12 = vcmp.eq.s32.totalorder %v3033_v41, %v7065_v34  ;;  %vm3054_vm2 = vcmp.eq.s32.totalorder %v3042_v14, %v7065_v34  ;;  %v9056_v41 = vmov 0 }
 0x290   : > { %5948 = vmatprep.subr.bf16.mxu0 %v6677_v21  ;;  %vm8342_vm4 = vmpackc.low %vm3052_vm0, %vm3051_vm12 }
 0x292   : > { %5821 = vmatmul.mubr.msk.bf16.gmra.mrb[20].mxu0 %vm8307_vm3, %v9007_v23  ;;  %5927 = vmatpush3.bf16.msra.mxu1 %v8241_v16  ;;  %v6679_v16 = vld [vmem:[#allocation2 + $0x60] sm:$0xff]   ;;  %v3048_v14 = vpop.permute.xlu0 %3047 }
 0x293   : > { %5949 = vmatpush3.bf16.msra.mxu0 %v6677_v21  ;;  %5960 = vmatprep.mubr.msk.bf16.mxu0 %vm9030_vm8, %v9007_v23  ;;  %vm3056_vm0 = vcmp.eq.s32.totalorder %v3048_v14, %v7065_v34 }
 0x294   : > { %5928 = vmatprep.subr.bf16.mxu1 %v8250_v0  ;;  %5950 = vmatprep.subr.bf16.mxu0 %v6678_v42 }
 0x296   : > { %5929 = vmatpush3.bf16.msra.mxu1 %v8250_v0  ;;  %v3039_v0 = vpop.permute.xlu1 %3038 }
 0x297   : > { %5951 = vmatpush3.bf16.msra.mxu0 %v6678_v42  ;;  %5930 = vmatprep.subr.bf16.mxu1 %v8256_v56  ;;  %vm3053_vm7 = vcmp.eq.s32.totalorder %v3039_v0, %v7065_v34 }
 0x298   : > { %5952 = vmatprep.subr.bf16.mxu0 %v7559_v10  ;;  %v6681_v10 = vld [vmem:[#allocation2 + $0x70] sm:$0xff]   ;;  %vm8347_vm8 = vmpackc.low %vm3054_vm2, %vm3053_vm7 }
 0x29a   : > { %5931 = vmatpush3.bf16.msra.mxu1 %v8256_v56  ;;  %v3045_v0 = vpop.permute.xlu1 %3044 }
 0x29b   : > { %5953 = vmatpush3.bf16.msra.mxu0 %v6679_v16  ;;  %5932 = vmatprep.subr.bf16.mxu1 %v8262_v49  ;;  %vm3055_vm12 = vcmp.eq.s32.totalorder %v3045_v0, %v7065_v34  ;;  %v6686_v0 = vld [vmem:[#allocation2 + $0x20] sm:$0xff]  }
 0x29c   : > { %5954 = vmatprep.subr.bf16.mxu0 %v7573_v18  ;;  %vm8366_vm7 = vmpackc.low %vm3056_vm0, %vm3055_vm12 }
 0x29d   : > { %v9057_v41 = vsel %vm8366_vm7, 4294967295, %v9056_v41 }
 0x29e   : > { %5933 = vmatpush3.bf16.msra.mxu1 %v8262_v49  ;;  %9058 = vst [vmem:[#allocation19_spill] sm:$0xff] %v9057_v41  ;;  %v6687_v41 = vld [vmem:[#allocation2 + $0x28] sm:$0xff]  }
 0x29f   : > { %5955 = vmatpush3.bf16.msra.mxu0 %v6680_v26  ;;  %5934 = vmatprep.subr.bf16.mxu1 %v8276_v37 }
 0x2a0   : > { %5956 = vmatprep.subr.bf16.mxu0 %v7597_v31  ;;  %v9082_v31 = vmov 0  }
 0x2a2   : > { %5935 = vmatpush3.bf16.msra.mxu1 %v8276_v37 }
 0x2a3   : > { %5957 = vmatpush3.bf16.msra.mxu0 %v6681_v10  ;;  %6064 = vmatprep.subr.bf16.mxu1 %v6675_v29 }
 0x2a4   : > { %5958 = vmatprep.subr.bf16.mxu0 %v7904_v53 }
 0x2a5   : > { %5937 = vmatmul.mubr.msk.bf16.vlgmr.msra.gmra.mrb[24].mxu1 %vm8342_vm4, %v9007_v23 }
 0x2a6   : > { %5940 = vmatprep.mubr.msk.bf16.mxu1 %vm8347_vm8, %v9007_v23  ;;  %6065 = vmatpush3.bf16.msra.mxu1 %v6675_v29  ;;  %v6683_v29 = vld [vmem:[#allocation2 + $0x8] sm:$0xff]  }
 0x2a7   : > { %5959 = vmatpush3.bf16.msra.mxu0 %v7904_v53  ;;  %6066 = vmatprep.subr.bf16.mxu1 %v6676_v52 }
 0x2a8   : > { %5968 = vmatprep.subr.bf16.mxu0 %v6682_v11 }
 0x2aa   : > { %5961 = vmatmul.mubr.msk.bf16.vlgmr.msra.gmra.mrb[24].mxu0 %vm7900_vm14, %v9007_v23  ;;  %6067 = vmatpush3.bf16.msra.mxu1 %v6676_v52  ;;  %v6684_v52 = vld [vmem:[#allocation2 + $0x10] sm:$0xff]  }
 0x2ab   : > { %5964 = vmatprep.mubr.msk.bf16.mxu0 %vm7907_vm10, %v9007_v23  ;;  %5969 = vmatpush3.bf16.msra.mxu0 %v6682_v11 }
 0x2ac   : > { %6068 = vmatprep.subr.bf16.mxu1 %v6677_v21  ;;  %5970 = vmatprep.subr.bf16.mxu0 %v6683_v29 }
 0x2ad   : > { %5941 = vmatmul.mubr.msk.bf16.gmra.mrb[28].mxu1 %vm8366_vm7, %v9007_v23 }
 0x2ae   : > { %6069 = vmatpush3.bf16.msra.mxu1 %v6677_v21  ;;  %6080 = vmatprep.mubr.msk.bf16.mxu1 %vm8215_vm1, %v9007_v23  ;;  %v6685_v21 = vld [vmem:[#allocation2 + $0x18] sm:$0xff]  }
 0x2af   : > { %5971 = vmatpush3.bf16.msra.mxu0 %v6683_v29  ;;  %6070 = vmatprep.subr.bf16.mxu1 %v6678_v42 }
 0x2b0   : > { %5972 = vmatprep.subr.bf16.mxu0 %v6684_v52 }
 0x2b2   : > { %5965 = vmatmul.mubr.msk.bf16.gmra.mrb[28].mxu0 %vm7931_vm5, %v9007_v23  ;;  %6071 = vmatpush3.bf16.msra.mxu1 %v6678_v42  ;;  %v9059_v42 = vmax.f32 %v7973_v13, %v8063_v51  ;;  %v9062_v51 = vmax.f32 %v7988_v28, %v8081_v22 }
 0x2b3   : > { %5973 = vmatpush3.bf16.msra.mxu0 %v6684_v52  ;;  %5984 = vmatprep.mubr.msk.bf16.mxu0 %vm7775_vm11, %v9007_v23  ;;  %vm9067_vm11 = vnez %v9016_v36 }
 0x2b4   : > { %6072 = vmatprep.subr.bf16.mxu1 %v6679_v16  ;;  %5974 = vmatprep.subr.bf16.mxu0 %v6685_v21 }
 0x2b6   : > { %6073 = vmatpush3.bf16.msra.mxu1 %v6679_v16  ;;  %v9060_v16 = vmax.f32 %v7977_v5, %v8070_v62 }
 0x2b7   : > { %5975 = vmatpush3.bf16.msra.mxu0 %v6685_v21  ;;  %6074 = vmatprep.subr.bf16.mxu1 %v6680_v26 }
 0x2b8   : > { %5976 = vmatprep.subr.bf16.mxu0 %v6686_v0 }
 0x2ba   : > { %6075 = vmatpush3.bf16.msra.mxu1 %v6680_v26 }
 0x2bb   : > { %5977 = vmatpush3.bf16.msra.mxu0 %v6686_v0  ;;  %6076 = vmatprep.subr.bf16.mxu1 %v6681_v10 }
 0x2bc   : > { %5978 = vmatprep.subr.bf16.mxu0 %v7667_v24  ;;  %v9061_v24 = vmax.f32 %v7982_v6, %v8076_v12  ;;  %v9063_v6 = vmax.f32 %v8001_v33, %v8095_v59  ;;  %v9065_v33 = vmax.f32 %v8013_v35, %v8107_v45 }
 0x2bd   : > { %v5578_v14 = vpop.f32.mrb[8].mxu0 }
 0x2be   : > { %v8386_v37 = vmax.f32 %v9059_v42, %v5578_v14  ;;  %v1900_v63 = vpop.f32.mrb[9].mxu0  ;;  %6077 = vmatpush3.bf16.msra.mxu1 %v6681_v10 }
 0x2bf   : > { %v8391_v49 = vmax.f32 %v9060_v16, %v1900_v63  ;;  %v5579_v56 = vpop.f32.mrb[10].mxu0  ;;  %5979 = vmatpush3.bf16.msra.mxu0 %v6687_v41  ;;  %6078 = vmatprep.subr.bf16.mxu1 %v7904_v53 }
 0x2c0   : > { %v8397_v26 = vmax.f32 %v9061_v24, %v5579_v56  ;;  %v1903_v13 = vpop.f32.mrb[11].mxu0  ;;  %5980 = vmatprep.subr.bf16.mxu0 %v7984_v27 }
 0x2c1   : > { %v8403_v10 = vmax.f32 %v9062_v51, %v1903_v13 }
 0x2c2   : > { %6079 = vmatpush3.bf16.msra.mxu1 %v7904_v53  ;;  %v9064_v53 = vmax.f32 %v8008_v1, %v8102_v48 }
 0x2c3   : > { %5981 = vmatpush3.bf16.msra.mxu0 %v7984_v27  ;;  %6088 = vmatprep.subr.bf16.mxu1 %v6682_v11 }
 0x2c4   : > { %5982 = vmatprep.subr.bf16.mxu0 %v7994_v9 }
 0x2c5   : > { %v5582_v5 = vpop.f32.mrb[12].mxu0  ;;  %6081 = vmatmul.mubr.msk.bf16.vlgmr.msra.gmra.mrb[32].mxu1 %vm8272_vm13, %v9007_v23 }
 0x2c6   : > { %v8414_v62 = vmax.f32 %v9063_v6, %v5582_v5  ;;  %v1916_v28 = vpop.f32.mrb[13].mxu0  ;;  %6084 = vmatprep.mubr.msk.bf16.mxu1 %vm8279_vm15, %v9007_v23  ;;  %6089 = vmatpush3.bf16.msra.mxu1 %v6682_v11  ;;  %v9066_v11 = vmax.f32 %v8019_v47, %v8112_v57 }
 0x2c7   : > { %v8422_v12 = vmax.f32 %v9064_v53, %v1916_v28  ;;  %v5583_v22 = vpop.f32.mrb[14].mxu0  ;;  %5983 = vmatpush3.bf16.msra.mxu0 %v7994_v9  ;;  %6090 = vmatprep.subr.bf16.mxu1 %v6683_v29 }
 0x2c8   : > { %v8428_v59 = vmax.f32 %v9065_v33, %v5583_v22  ;;  %v1919_v56 = vpop.f32.mrb[15].mxu0  ;;  %5992 = vmatprep.subr.bf16.mxu0 %v8015_v44 }
 0x2c9   : > { %v8434_v14 = vmax.f32 %v9066_v11, %v1919_v56 }
 0x2ca   : > { %5985 = vmatmul.mubr.msk.bf16.vlgmr.msra.gmra.mrb[24].mxu0 %vm7820_vm9, %v9007_v23  ;;  %6091 = vmatpush3.bf16.msra.mxu1 %v6683_v29  ;;  %vm9068_vm9 = vnez %v9018_v40 }
 0x2cb   : > { %5988 = vmatprep.mubr.msk.bf16.mxu0 %vm7825_vm6, %v9007_v23  ;;  %5993 = vmatpush3.bf16.msra.mxu0 %v8015_v44 }
 0x2cc   : > { %6092 = vmatprep.subr.bf16.mxu1 %v6684_v52  ;;  %5994 = vmatprep.subr.bf16.mxu0 %v8030_v39 }
 0x2cd   : > { %6085 = vmatmul.mubr.msk.bf16.gmra.mrb[36].mxu1 %vm8307_vm3, %v9007_v23 }
 0x2ce   : > { %6093 = vmatpush3.bf16.msra.mxu1 %v6684_v52  ;;  %6104 = vmatprep.mubr.msk.bf16.mxu1 %vm9067_vm11, %v9007_v23 }
 0x2cf   : > { %5995 = vmatpush3.bf16.msra.mxu0 %v8030_v39  ;;  %6094 = vmatprep.subr.bf16.mxu1 %v6685_v21 }
 0x2d0   : > { %5996 = vmatprep.subr.bf16.mxu0 %v8042_v38 }
 0x2d2   : > { %5989 = vmatmul.mubr.msk.bf16.gmra.mrb[28].mxu0 %vm9068_vm9, %v9007_v23  ;;  %6095 = vmatpush3.bf16.msra.mxu1 %v6685_v21 }
 0x2d3   : > { %5997 = vmatpush3.bf16.msra.mxu0 %v8042_v38  ;;  %6008 = vmatprep.mubr.msk.bf16.mxu0 %vm8215_vm1, %v9007_v23 }
 0x2d4   : > { %6096 = vmatprep.subr.bf16.mxu1 %v6686_v0  ;;  %5998 = vmatprep.subr.bf16.mxu0 %v8055_v46 }
 0x2d6   : > { %6097 = vmatpush3.bf16.msra.mxu1 %v6686_v0 }
 0x2d7   : > { %5999 = vmatpush3.bf16.msra.mxu0 %v8055_v46  ;;  %6098 = vmatprep.subr.bf16.mxu1 %v6687_v41 }
 0x2d8   : > { %v8461_v3 = vpop.f32.mrb[16].mxu1  ;;  %6000 = vmatprep.subr.bf16.mxu0 %v8065_v32 }
 0x2d9   : > { %v2342_v8 = vmax.f32 %v8386_v37, %v8461_v3  ;;  %v8466_v36 = vpop.f32.mrb[17].mxu1 }
 0x2da   : > { %v2340_v40 = vmax.f32 %v8391_v49, %v8466_v36  ;;  %v8470_v1 = vpop.f32.mrb[18].mxu1  ;;  %6099 = vmatpush3.bf16.msra.mxu1 %v6687_v41 }
 0x2db   : > { %v2343_v35 = vmax.f32 %v8397_v26, %v8470_v1  ;;  %v8474_v47 = vpop.f32.mrb[19].mxu1  ;;  %6001 = vmatpush3.bf16.msra.mxu0 %v8065_v32  ;;  %6100 = vmatprep.subr.bf16.mxu1 %v7984_v27 }
 0x2dc   : > { %v2341_v48 = vmax.f32 %v8403_v10, %v8474_v47  ;;  %6002 = vmatprep.subr.bf16.mxu0 %v8087_v15 }
 0x2de   : > { %6101 = vmatpush3.bf16.msra.mxu1 %v7984_v27 }
 0x2df   : > { %6003 = vmatpush3.bf16.msra.mxu0 %v8087_v15  ;;  %6102 = vmatprep.subr.bf16.mxu1 %v7994_v9 }
 0x2e0   : > { %v8484_v45 = vpop.f32.mrb[20].mxu1  ;;  %6004 = vmatprep.subr.bf16.mxu0 %v8097_v61 }
 0x2e1   : > { %v2346_v57 = vmax.f32 %v8414_v62, %v8484_v45  ;;  %v8489_v2 = vpop.f32.mrb[21].mxu1 }
 0x2e2   : > { %v2344_v41 = vmax.f32 %v8422_v12, %v8489_v2  ;;  %v8493_v29 = vpop.f32.mrb[22].mxu1  ;;  %6103 = vmatpush3.bf16.msra.mxu1 %v7994_v9  ;;  %v3428_v9 = vpop.permute.xlu1 %3427 }
 0x2e3   : > { %v2347_v27 = vmax.f32 %v8428_v59, %v8493_v29  ;;  %v8498_v52 = vpop.f32.mrb[23].mxu1  ;;  %6005 = vmatpush3.bf16.msra.mxu0 %v8097_v61  ;;  %6112 = vmatprep.subr.bf16.mxu1 %v8015_v44 }
 0x2e4   : > { %v2345_v21 = vmax.f32 %v8434_v14, %v8498_v52  ;;  %6006 = vmatprep.subr.bf16.mxu0 %v8118_v19  ;;  %v6571_v14 = vld [vmem:[%s8908_s3] ss:$8 sps:$4 sm:$0xff]  }
 0x2e5   : > { %6105 = vmatmul.mubr.msk.bf16.vlgmr.msra.gmra.mrb[32].mxu1 %vm7900_vm14, %v9007_v23 }
 0x2e6   : > { %6108 = vmatprep.mubr.msk.bf16.mxu1 %vm7907_vm10, %v9007_v23  ;;  %6113 = vmatpush3.bf16.msra.mxu1 %v8015_v44  ;;  %vm9069_vm10 = vnez %v9049_v30  ;;  %v3431_v44 = vpop.permute.xlu0 %3430  ;;  %v3434_v43 = vpop.permute.xlu1 %3433 }
 0x2e7   : > { %6007 = vmatpush3.bf16.msra.mxu0 %v8118_v19  ;;  %6114 = vmatprep.subr.bf16.mxu1 %v8030_v39  ;;  %vm3451_vm6 = vcmp.eq.s32.totalorder %v3431_v44, %v7065_v34  ;;  %v6580_v44 = vld [vmem:[%s8908_s3 + $0x30] ss:$8 sps:$4 sm:$0xff]  }
 0x2e8   : > { %6016 = vmatprep.subr.bf16.mxu0 %v8130_v54 }
 0x2ea   : > { %6009 = vmatmul.mubr.msk.bf16.vlgmr.msra.gmra.mrb[24].mxu0 %vm8272_vm13, %v9007_v23  ;;  %6115 = vmatpush3.bf16.msra.mxu1 %v8030_v39  ;;  %v9073_v39 = vld [vmem:[#allocation11_spill] sm:$0xff] }
 0x2eb   : > { %6012 = vmatprep.mubr.msk.bf16.mxu0 %vm8279_vm15, %v9007_v23  ;;  %6017 = vmatpush3.bf16.msra.mxu0 %v8130_v54 }
 0x2ec   : > { %6116 = vmatprep.subr.bf16.mxu1 %v8042_v38  ;;  %6018 = vmatprep.subr.bf16.mxu0 %v8142_v17 }
 0x2ed   : > { %6109 = vmatmul.mubr.msk.bf16.gmra.mrb[36].mxu1 %vm7931_vm5, %v9007_v23  ;;  %vm3452_vm5 = vcmp.eq.s32.totalorder %v3434_v43, %v7065_v34  ;;  %v6591_v43 = vld [vmem:[%s8908_s3 + $0x64] ss:$8 sps:$4 sm:$0xff]  }
 0x2ee   : > { %6117 = vmatpush3.bf16.msra.mxu1 %v8042_v38  ;;  %6128 = vmatprep.mubr.msk.bf16.mxu1 %vm9069_vm10, %v9007_v23  ;;  %v9074_v38 = vld [vmem:[#allocation12_spill] sm:$0xff] }
 0x2ef   : > { %6019 = vmatpush3.bf16.msra.mxu0 %v8142_v17  ;;  %6118 = vmatprep.subr.bf16.mxu1 %v8055_v46 }
 0x2f0   : > { %6020 = vmatprep.subr.bf16.mxu0 %v8154_v58 }
 0x2f2   : > { %6013 = vmatmul.mubr.msk.bf16.gmra.mrb[28].mxu0 %vm8307_vm3, %v9007_v23  ;;  %6119 = vmatpush3.bf16.msra.mxu1 %v8055_v46  ;;  %vm3450_vm3 = vcmp.eq.s32.totalorder %v3428_v9, %v7065_v34  ;;  %v6582_v9 = vld [vmem:[%s8908_s3 + $0x34] ss:$8 sps:$4 sm:$0xff]  }
 0x2f3   : > { %6021 = vmatpush3.bf16.msra.mxu0 %v8154_v58  ;;  %6032 = vmatprep.mubr.msk.bf16.mxu0 %vm9069_vm10, %v9007_v23  ;;  %vm4665_vm14 = vmpackc.low %vm3451_vm6, %vm3450_vm3  ;;  %v6588_v46 = vld [vmem:[%s8908_s3 + $0x54] ss:$8 sps:$4 sm:$0xff]  }
 0x2f4   : > { %6120 = vmatprep.subr.bf16.mxu1 %v8065_v32  ;;  %6022 = vmatprep.subr.bf16.mxu0 %v8166_v7 }
 0x2f6   : > { %6121 = vmatpush3.bf16.msra.mxu1 %v8065_v32  ;;  %v9076_v32 = vld [vmem:[#allocation13_spill] sm:$0xff] }
 0x2f7   : > { %6023 = vmatpush3.bf16.msra.mxu0 %v8166_v7  ;;  %6122 = vmatprep.subr.bf16.mxu1 %v8087_v15 }
 0x2f8   : > { %6024 = vmatprep.subr.bf16.mxu0 %v8172_v4 }
 0x2fa   : > { %6123 = vmatpush3.bf16.msra.mxu1 %v8087_v15  ;;  %v9077_v15 = vld [vmem:[#allocation14_spill] sm:$0xff] }
 0x2fb   : > { %6025 = vmatpush3.bf16.msra.mxu0 %v8172_v4  ;;  %6124 = vmatprep.subr.bf16.mxu1 %v8097_v61 }
 0x2fc   : > { %6026 = vmatprep.subr.bf16.mxu0 %v9070_v50 }
 0x2fe   : > { %6125 = vmatpush3.bf16.msra.mxu1 %v8097_v61  ;;  %v3437_v61 = vpop.permute.xlu1 %3436 }
 0x2ff   : > { %6027 = vmatpush3.bf16.msra.mxu0 %v9070_v50  ;;  %6126 = vmatprep.subr.bf16.mxu1 %v8118_v19 }
 0x300   : > { %6028 = vmatprep.subr.bf16.mxu0 %v9071_v55 }
 0x302   : > { %6127 = vmatpush3.bf16.msra.mxu1 %v8118_v19  ;;  %v9078_v19 = vld [vmem:[#allocation15_spill] sm:$0xff] }
 0x303   : > { %6029 = vmatpush3.bf16.msra.mxu0 %v9071_v55  ;;  %6136 = vmatprep.subr.bf16.mxu1 %v8130_v54 }
 0x304   : > { %6030 = vmatprep.subr.bf16.mxu0 %v9072_v60 }
 0x305   : > { %6129 = vmatmul.mubr.msk.bf16.vlgmr.msra.gmra.mrb[32].mxu1 %vm8342_vm4, %v9007_v23 }
 0x306   : > { %6132 = vmatprep.mubr.msk.bf16.mxu1 %vm8347_vm8, %v9007_v23  ;;  %6137 = vmatpush3.bf16.msra.mxu1 %v8130_v54  ;;  %v9079_v54 = vld [vmem:[#allocation16_spill] sm:$0xff] }
 0x307   : > { %6031 = vmatpush3.bf16.msra.mxu0 %v9072_v60  ;;  %6138 = vmatprep.subr.bf16.mxu1 %v8142_v17 }
 0x308   : > { %6040 = vmatprep.subr.bf16.mxu0 %v9073_v39 }
 0x30a   : > { %6033 = vmatmul.mubr.msk.bf16.vlgmr.msra.gmra.mrb[24].mxu0 %vm8342_vm4, %v9007_v23  ;;  %6139 = vmatpush3.bf16.msra.mxu1 %v8142_v17  ;;  %v3443_v17 = vpop.permute.xlu1 %3442 }
 0x30b   : > { %6036 = vmatprep.mubr.msk.bf16.mxu0 %vm8347_vm8, %v9007_v23  ;;  %6041 = vmatpush3.bf16.msra.mxu0 %v9073_v39  ;;  %vm3453_vm8 = vcmp.eq.s32.totalorder %v3437_v61, %v7065_v34  ;;  %vm3455_vm1 = vcmp.eq.s32.totalorder %v3443_v17, %v7065_v34  ;;  %v6594_v61 = vld [vmem:[%s8908_s3 + $0x74] ss:$8 sps:$4 sm:$0xff]  }
 0x30c   : > { %6140 = vmatprep.subr.bf16.mxu1 %v8154_v58  ;;  %6042 = vmatprep.subr.bf16.mxu0 %v9074_v38  ;;  %vm4667_vm15 = vmpackc.low %vm3453_vm8, %vm3452_vm5 }
 0x30d   : > { %6133 = vmatmul.mubr.msk.bf16.gmra.mrb[36].mxu1 %vm8366_vm7, %v9007_v23 }
 0x30e   : > { %6141 = vmatpush3.bf16.msra.mxu1 %v8154_v58  ;;  %6152 = vmatprep.mubr.msk.bf16.mxu1 %vm4665_vm14, %v9007_v23  ;;  %v3440_v58 = vpop.permute.xlu0 %3439 }
 0x30f   : > { %6043 = vmatpush3.bf16.msra.mxu0 %v9074_v38  ;;  %6142 = vmatprep.subr.bf16.mxu1 %v8166_v7  ;;  %vm3454_vm13 = vcmp.eq.s32.totalorder %v3440_v58, %v7065_v34 }
 0x310   : > { %6044 = vmatprep.subr.bf16.mxu0 %v9076_v32  ;;  %vm4669_vm4 = vmpackc.low %vm3455_vm1, %vm3454_vm13 }
 0x312   : > { %6037 = vmatmul.mubr.msk.bf16.gmra.mrb[28].mxu0 %vm8366_vm7, %v9007_v23  ;;  %6143 = vmatpush3.bf16.msra.mxu1 %v8166_v7  ;;  %v9080_v7 = vld [vmem:[#allocation17_spill] sm:$0xff]  ;;  %v3446_v30 = vpop.permute.xlu0 %3445 }
 0x313   : > { %6045 = vmatpush3.bf16.msra.mxu0 %v9076_v32  ;;  %6144 = vmatprep.subr.bf16.mxu1 %v8172_v4  ;;  %vm3456_vm7 = vcmp.eq.s32.totalorder %v3446_v30, %v7065_v34 }
 0x314   : > { %6046 = vmatprep.subr.bf16.mxu0 %v9077_v15  ;;  %6056 = vmatprep.mubr.msk.bf16.mxu0 %vm4665_vm14, %v9007_v23 }
 0x316   : > { %6145 = vmatpush3.bf16.msra.mxu1 %v8172_v4  ;;  %v3449_v4 = vpop.permute.xlu1 %3448  ;;  %v3829_v18 = vpop.permute.xlu0 %3828 }
 0x317   : > { %6047 = vmatpush3.bf16.msra.mxu0 %v9077_v15  ;;  %6146 = vmatprep.subr.bf16.mxu1 %v9070_v50  ;;  %vm3851_vm12 = vcmp.eq.s32.totalorder %v3829_v18, %v7065_v34  ;;  %vm3457_vm0 = vcmp.eq.s32.totalorder %v3449_v4, %v7065_v34 }
 0x318   : > { %6048 = vmatprep.subr.bf16.mxu0 %v9078_v19  ;;  %vm4671_vm9 = vmpackc.low %vm3457_vm0, %vm3456_vm7 }
 0x31a   : > { %6147 = vmatpush3.bf16.msra.mxu1 %v9070_v50  ;;  %v3832_v25 = vpop.permute.xlu1 %3831  ;;  %v3838_v42 = vpop.permute.xlu0 %3837  ;;  %v6574_v50 = vld [vmem:[%s8908_s3 + $0x10] ss:$8 sps:$4 sm:$0xff]  }
 0x31b   : > { %6049 = vmatpush3.bf16.msra.mxu0 %v9078_v19  ;;  %6148 = vmatprep.subr.bf16.mxu1 %v9071_v55  ;;  %vm3852_vm2 = vcmp.eq.s32.totalorder %v3832_v25, %v7065_v34  ;;  %vm3854_vm3 = vcmp.eq.s32.totalorder %v3838_v42, %v7065_v34 }
 0x31c   : > { %6050 = vmatprep.subr.bf16.mxu0 %v9079_v54  ;;  %vm4705_vm11 = vmpackc.low %vm3852_vm2, %vm3851_vm12 }
 0x31e   : > { %6149 = vmatpush3.bf16.msra.mxu1 %v9071_v55  ;;  %v3835_v0 = vpop.permute.xlu1 %3834  ;;  %v3844_v16 = vpop.permute.xlu0 %3843  ;;  %v6577_v55 = vld [vmem:[%s8908_s3 + $0x20] ss:$8 sps:$4 sm:$0xff]  }
 0x31f   : > { %6051 = vmatpush3.bf16.msra.mxu0 %v9079_v54  ;;  %6150 = vmatprep.subr.bf16.mxu1 %v9072_v60  ;;  %vm3853_vm10 = vcmp.eq.s32.totalorder %v3835_v0, %v7065_v34  ;;  %vm3856_vm14 = vcmp.eq.s32.totalorder %v3844_v16, %v7065_v34 }
 0x320   : > { %6052 = vmatprep.subr.bf16.mxu0 %v9080_v7  ;;  %vm4707_vm5 = vmpackc.low %vm3854_vm3, %vm3853_vm10 }
 0x322   : > { %6151 = vmatpush3.bf16.msra.mxu1 %v9072_v60  ;;  %v3841_v63 = vpop.permute.xlu1 %3840  ;;  %v3850_v13 = vpop.permute.xlu0 %3849  ;;  %v6579_v60 = vld [vmem:[%s8908_s3 + $0x24] ss:$8 sps:$4 sm:$0xff]  }
 0x323   : > { %6053 = vmatpush3.bf16.msra.mxu0 %v9080_v7  ;;  %6160 = vmatprep.subr.bf16.mxu1 %v9073_v39  ;;  %vm3855_vm6 = vcmp.eq.s32.totalorder %v3841_v63, %v7065_v34  ;;  %vm3858_vm13 = vcmp.eq.s32.totalorder %v3850_v13, %v7065_v34 }
 0x324   : > { %6054 = vmatprep.subr.bf16.mxu0 %v9081_v20  ;;  %vm4709_vm8 = vmpackc.low %vm3856_vm14, %vm3855_vm6 }
 0x325   : > { %6153 = vmatmul.mubr.msk.bf16.vlgmr.msra.gmra.mrb[32].mxu1 %vm4667_vm15, %v9007_v23 }
 0x326   : > { %6156 = vmatprep.mubr.msk.bf16.mxu1 %vm4669_vm4, %v9007_v23  ;;  %6161 = vmatpush3.bf16.msra.mxu1 %v9073_v39  ;;  %v3847_v24 = vpop.permute.xlu1 %3846  ;;  %v6585_v39 = vld [vmem:[%s8908_s3 + $0x44] ss:$8 sps:$4 sm:$0xff]  }
 0x327   : > { %6055 = vmatpush3.bf16.msra.mxu0 %v9081_v20  ;;  %6162 = vmatprep.subr.bf16.mxu1 %v9074_v38  ;;  %vm3857_vm1 = vcmp.eq.s32.totalorder %v3847_v24, %v7065_v34 }
 0x32a   : > { %6057 = vmatmul.mubr.msk.bf16.vlgmr.msra.gmra.mrb[24].mxu0 %vm4667_vm15, %v9007_v23  ;;  %6163 = vmatpush3.bf16.msra.mxu1 %v9074_v38  ;;  %vm4711_vm15 = vmpackc.low %vm3858_vm13, %vm3857_vm1  ;;  %v6583_v38 = vld [vmem:[%s8908_s3 + $0x40] ss:$8 sps:$4 sm:$0xff]  }
 0x32b   : > { %6060 = vmatprep.mubr.msk.bf16.mxu0 %vm4669_vm4, %v9007_v23  ;;  %6164 = vmatprep.subr.bf16.mxu1 %v9076_v32 }
 0x32d   : > { %6157 = vmatmul.mubr.msk.bf16.gmra.mrb[36].mxu1 %vm4671_vm9, %v9007_v23 }
 0x32e   : > { %6165 = vmatpush3.bf16.msra.mxu1 %v9076_v32  ;;  %6176 = vmatprep.mubr.msk.bf16.mxu1 %vm4705_vm11, %v9007_v23  ;;  %v6586_v32 = vld [vmem:[%s8908_s3 + $0x50] ss:$8 sps:$4 sm:$0xff]  }
 0x32f   : > { %6166 = vmatprep.subr.bf16.mxu1 %v9077_v15 }
 0x332   : > { %6061 = vmatmul.mubr.msk.bf16.gmra.mrb[28].mxu0 %vm4671_vm9, %v9007_v23  ;;  %6167 = vmatpush3.bf16.msra.mxu1 %v9077_v15  ;;  %v6589_v15 = vld [vmem:[%s8908_s3 + $0x60] ss:$8 sps:$4 sm:$0xff]  }
 0x333   : > { %6168 = vmatprep.subr.bf16.mxu1 %v9078_v19  ;;  %4119 = vmatprep.mubr.bf16.mxu0 %v9082_v31 }
 0x336   : > { %6169 = vmatpush3.bf16.msra.mxu1 %v9078_v19  ;;  %v6592_v19 = vld [vmem:[%s8908_s3 + $0x70] ss:$8 sps:$4 sm:$0xff]  }
 0x337   : > { %6170 = vmatprep.subr.bf16.mxu1 %v9079_v54 }
 0x33a   : > { %6171 = vmatpush3.bf16.msra.mxu1 %v9079_v54 }
 0x33b   : > { %6172 = vmatprep.subr.bf16.mxu1 %v9080_v7 }
 0x33e   : > { %6173 = vmatpush3.bf16.msra.mxu1 %v9080_v7 }
 0x33f   : > { %6174 = vmatprep.subr.bf16.mxu1 %v9081_v20 }
 0x342   : > { %6175 = vmatpush3.bf16.msra.mxu1 %v9081_v20 }
 0x345   : > { %6177 = vmatmul.mubr.msk.bf16.vlgmr.msra.gmra.mrb[32].mxu1 %vm4707_vm5, %v9007_v23 }
 0x346   : > { %6180 = vmatprep.mubr.msk.bf16.mxu1 %vm4709_vm8, %v9007_v23 }
 0x34d   : > { %6181 = vmatmul.mubr.msk.bf16.gmra.mrb[36].mxu1 %vm4711_vm15, %v9007_v23 }
 0x35d   : > { %v5818_v51 = vpop.f32.mrb[16].mxu0 }
 0x35e   : > { %v8659_v5 = vmax.f32 %v2342_v8, %v5818_v51  ;;  %v2702_v6 = vpop.f32.mrb[17].mxu0 }
 0x35f   : > { %v8664_v28 = vmax.f32 %v2340_v40, %v2702_v6  ;;  %v5819_v53 = vpop.f32.mrb[18].mxu0 }
 0x360   : > { %v8669_v34 = vmax.f32 %v2343_v35, %v5819_v53  ;;  %v2705_v22 = vpop.f32.mrb[19].mxu0 }
 0x361   : > { %v8674_v23 = vmax.f32 %v2341_v48, %v2705_v22 }
 0x365   : > { %v5822_v37 = vpop.f32.mrb[20].mxu0 }
 0x366   : > { %v8679_v33 = vmax.f32 %v2346_v57, %v5822_v37  ;;  %v2718_v49 = vpop.f32.mrb[21].mxu0  ;;  %v6573_v57 = vld [vmem:[%s8908_s3 + $0x4] ss:$8 sps:$4 sm:$0xff]  }
 0x367   : > { %v8684_v56 = vmax.f32 %v2344_v41, %v2718_v49  ;;  %v5823_v26 = vpop.f32.mrb[22].mxu0  ;;  %4087 = vmatprep.subr.bf16.mxu0 %v6573_v57 }
 0x368   : > { %v8689_v11 = vmax.f32 %v2347_v27, %v5823_v26  ;;  %v2721_v10 = vpop.f32.mrb[23].mxu0  ;;  %4088 = vmatpush1.bf16.msra.mxu0 %v6571_v14 }
 0x369   : > { %v8694_v3 = vmax.f32 %v2345_v21, %v2721_v10  ;;  %v6576_v21 = vld [vmem:[%s8908_s3 + $0x14] ss:$8 sps:$4 sm:$0xff]  }
 0x36a   : > { %4089 = vmatprep.subr.bf16.mxu0 %v6576_v21 }
 0x36c   : > { %4090 = vmatpush1.bf16.msra.mxu0 %v6574_v50 }
 0x36d   : > { %4091 = vmatprep.subr.bf16.mxu0 %v6579_v60 }
 0x370   : > { %4092 = vmatpush1.bf16.msra.mxu0 %v6577_v55 }
 0x371   : > { %4093 = vmatprep.subr.bf16.mxu0 %v6582_v9  ;;  %v9083_v9 = vlaneseq }
 0x374   : > { %4094 = vmatpush1.bf16.msra.mxu0 %v6580_v44  ;;  %v3998_v44 = vshrl.u32 %v9083_v9, 7 }
 0x375   : > { %4095 = vmatprep.subr.bf16.mxu0 %v6585_v39 }
 0x376   : > { %v4003_v39 = vsub.s32 1, %v3998_v44 }
 0x378   : > { %v5938_v62 = vpop.f32.mrb[24].mxu1  ;;  %4096 = vmatpush1.bf16.msra.mxu0 %v6583_v38  ;;  %v3995_v38 = vld [vmem:[%s8909_s4] sm:$0x3] }
 0x379   : > { %v3144_v8 = vmax.f32 %v8659_v5, %v5938_v62  ;;  %v3103_v36 = vpop.f32.mrb[25].mxu1  ;;  %4097 = vmatprep.subr.bf16.mxu0 %v6588_v46  ;;  %v4004_v46 = vrot.slane %v3995_v38, %v4003_v39 }
 0x37a   : > { %v3142_v12 = vmax.f32 %v8664_v28, %v3103_v36  ;;  %v5939_v40 = vpop.f32.mrb[26].mxu1  ;;  %v4713_v28 = vld [vmem:[%s8907_s2] ss:$0 sm:$0xff] }
 0x37b   : > { %v3145_v1 = vmax.f32 %v8669_v34, %v5939_v40  ;;  %v3106_v35 = vpop.f32.mrb[27].mxu1 }
 0x37c   : > { %v3143_v59 = vmax.f32 %v8674_v23, %v3106_v35  ;;  %4098 = vmatpush1.bf16.msra.mxu0 %v6586_v32 }
 0x37d   : > { %4099 = vmatprep.subr.bf16.mxu0 %v6591_v43 }
 0x380   : > { %v5942_v47 = vpop.f32.mrb[28].mxu1  ;;  %4100 = vmatpush1.bf16.msra.mxu0 %v6589_v15 }
 0x381   : > { %v3148_v48 = vmax.f32 %v8679_v33, %v5942_v47  ;;  %v3119_v45 = vpop.f32.mrb[29].mxu1  ;;  %4101 = vmatprep.subr.bf16.mxu0 %v6594_v61 }
 0x382   : > { %v3146_v2 = vmax.f32 %v8684_v56, %v3119_v45  ;;  %v5943_v41 = vpop.f32.mrb[30].mxu1 }
 0x383   : > { %v3149_v29 = vmax.f32 %v8689_v11, %v5943_v41  ;;  %v3122_v27 = vpop.f32.mrb[31].mxu1 }
 0x384   : > { %v3147_v52 = vmax.f32 %v8694_v3, %v3122_v27  ;;  %4102 = vmatpush1.bf16.msra.mxu0 %v6592_v19 }
 0x3fd   : > { %v6058_v54 = vpop.f32.mrb[24].mxu0 }
 0x3fe   : > { %v3545_v17 = vmax.f32 %v3144_v8, %v6058_v54  ;;  %v3504_v58 = vpop.f32.mrb[25].mxu0 }
 0x3ff   : > { %v3543_v7 = vmax.f32 %v3142_v12, %v3504_v58  ;;  %v6059_v4 = vpop.f32.mrb[26].mxu0 }
 0x400   : > { %v3546_v30 = vmax.f32 %v3145_v1, %v6059_v4  ;;  %v3507_v20 = vpop.f32.mrb[27].mxu0 }
 0x401   : > { %v3544_v25 = vmax.f32 %v3143_v59, %v3507_v20 }
 0x405   : > { %v6062_v18 = vpop.f32.mrb[28].mxu0 }
 0x406   : > { %v3549_v0 = vmax.f32 %v3148_v48, %v6062_v18  ;;  %v3520_v42 = vpop.f32.mrb[29].mxu0 }
 0x407   : > { %v3547_v63 = vmax.f32 %v3146_v2, %v3520_v42  ;;  %v6063_v16 = vpop.f32.mrb[30].mxu0 }
 0x408   : > { %v3550_v24 = vmax.f32 %v3149_v29, %v6063_v16  ;;  %v3523_v13 = vpop.f32.mrb[31].mxu0 }
 0x409   : > { %v3548_v51 = vmax.f32 %v3147_v52, %v3523_v13 }
 0x418   : > { %v6178_v5 = vpop.f32.mrb[32].mxu1 }
 0x419   : > { %v3946_v6 = vmax.f32 %v3545_v17, %v6178_v5  ;;  %v3905_v53 = vpop.f32.mrb[33].mxu1 }
 0x41a   : > { %v3944_v34 = vmax.f32 %v3543_v7, %v3905_v53  ;;  %v6179_v22 = vpop.f32.mrb[34].mxu1 }
 0x41b   : > { %v3947_v23 = vmax.f32 %v3546_v30, %v6179_v22  ;;  %v3908_v37 = vpop.f32.mrb[35].mxu1  ;;  %v8767_v59 = vadd.f32 %v4713_v28, %v3946_v6 }
 0x41c   : > { %v8755_v33 = vadd.f32 %v4713_v28, %v3944_v34  ;;  %v3945_v49 = vmax.f32 %v3544_v25, %v3908_v37 }
 0x41d   : > { %v8761_v8 = vadd.f32 %v4713_v28, %v3947_v23  ;;  %v3969_v45 = vmax.f32 %v8767_v59, 0.0 }
 0x41e   : > { %v8757_v56 = vadd.f32 %v4713_v28, %v3945_v49  ;;  %v3967_v26 = vmax.f32 %v8755_v33, 0.0 }
 0x41f   : > { %v3970_v48 = vmax.f32 %v8761_v8, 0.0 }
 0x420   : > { %v3968_v11 = vmax.f32 %v8757_v56, 0.0  ;;  %v6182_v10 = vpop.f32.mrb[36].mxu1 }
 0x421   : > { %v3950_v3 = vmax.f32 %v3549_v0, %v6182_v10  ;;  %v3921_v62 = vpop.f32.mrb[37].mxu1  ;;  %v3976_v57 = vpack.c.bf16 %v3970_v48, %v3969_v45 }
 0x422   : > { %v3975_v36 = vpack.c.bf16 %v3968_v11, %v3967_v26  ;;  %v3948_v12 = vmax.f32 %v3547_v63, %v3921_v62  ;;  %v6183_v40 = vpop.f32.mrb[38].mxu1  ;;  %v3999_v63 = vsub.s32 0, %v3998_v44 }
 0x423   : > { %v3951_v1 = vmax.f32 %v3550_v24, %v6183_v40  ;;  %v3924_v35 = vpop.f32.mrb[39].mxu1  ;;  %v8789_v21 = vadd.f32 %v4713_v28, %v3950_v3 }
 0x424   : > { %v3949_v47 = vmax.f32 %v3548_v51, %v3924_v35  ;;  %4120 = vmatmul.mubr.bf16.vlgmr.msra.gmra.mrb[32].mxu0 %v3975_v36  ;;  %v8778_v2 = vadd.f32 %v4713_v28, %v3948_v12  ;;  %v8806_v34 = vrot.slane %v3995_v38, %v3999_v63 }
 0x425   : > { %4129 = vmatprep.mubr.bf16.mxu0 %v9082_v31  ;;  %v8783_v27 = vadd.f32 %v4713_v28, %v3951_v1  ;;  %v3973_v55 = vmax.f32 %v8789_v21, 0.0 }
 0x426   : > { %v8772_v14 = vadd.f32 %v4713_v28, %v3949_v47  ;;  %v3971_v29 = vmax.f32 %v8778_v2, 0.0 }
 0x427   : > { %v3974_v50 = vmax.f32 %v8783_v27, 0.0 }
 0x428   : > { %v3972_v41 = vmax.f32 %v8772_v14, 0.0 }
 0x429   : > { %v3978_v60 = vpack.c.bf16 %v3974_v50, %v3973_v55 }
 0x42a   : > { %v3977_v52 = vpack.c.bf16 %v3972_v41, %v3971_v29 }
 0x42c   : > { %4130 = vmatmul.mubr.bf16.gmra.mrb[36].mxu0 %v3976_v57 }
 0x42d   : > { %4139 = vmatprep.mubr.bf16.mxu0 %v9082_v31 }
 0x434   : > { %4140 = vmatmul.mubr.bf16.gmra.mrb[40].mxu0 %v3977_v52 }
 0x435   : > { %4149 = vmatprep.mubr.bf16.mxu0 %v9082_v31 }
 0x43c   : > { %4150 = vmatmul.mubr.bf16.gmra.mrb[44].mxu0 %v3978_v60 }
 0x4f7   : > { %v4121_v32 = vpop.f32.mrb[32].mxu0 }
 0x4f8   : > { %v4123_v31 = vpop.f32.mrb[33].mxu0  ;;  %v4122_v10 = vadd.f32 %v4121_v32, %v8806_v34 }
 0x4f9   : > { %v4124_v43 = vadd.f32 %v4123_v31, %v4004_v46  ;;  %v4125_v15 = vpop.f32.mrb[34].mxu0 }
 0x4fa   : > { %v4127_v61 = vpop.f32.mrb[35].mxu0  ;;  %v4126_v62 = vadd.f32 %v4125_v15, %v8806_v34  ;;  %v4160_v52 = vmax.f32 %v4122_v10, 0.0 }
 0x4fb   : > { %v4730_v19 = vmul.f32 -1.442695, %v4124_v43  ;;  %v4128_v54 = vadd.f32 %v4127_v61, %v4004_v46 }
 0x4fc   : > { %v4161_v39 = vmax.f32 %v4126_v62, 0.0 }
 0x4fd   : > { %6595 = vpow2.f32 %v4730_v19  ;;  %v4731_v17 = vmul.f32 -1.442695, %v4128_v54 }
 0x4ff   : > { %6597 = vpow2.f32 %v4731_v17  ;;  %v4131_v58 = vpop.f32.mrb[36].mxu0 }
 0x500   : > { %v4133_v7 = vpop.f32.mrb[37].mxu0  ;;  %v4132_v15 = vadd.f32 %v4131_v58, %v8806_v34 }
 0x501   : > { %v4134_v4 = vadd.f32 %v4133_v7, %v4004_v46  ;;  %v4135_v30 = vpop.f32.mrb[38].mxu0 }
 0x502   : > { %v4137_v20 = vpop.f32.mrb[39].mxu0 }
 0x503   : > { %v4732_v25 = vmul.f32 -1.442695, %v4134_v4  ;;  %v4138_v18 = vadd.f32 %v4137_v20, %v4004_v46 }
 0x505   : > { %6599 = vpow2.f32 %v4732_v25  ;;  %v4733_v0 = vmul.f32 -1.442695, %v4138_v18  ;;  %v4136_v25 = vadd.f32 %v4135_v30, %v8806_v34 }
 0x507   : > { %v6596_v42 = vpop.eup %6595  ;;  %6601 = vpow2.f32 %v4733_v0  ;;  %v8802_v16 = vpop.f32.mrb[40].mxu0  ;;  %v4163_v63 = vmax.f32 %v4136_v25, 0.0 }
 0x508   : > { %v4192_v24 = vadd.f32 1.0, %v6596_v42  ;;  %v4143_v13 = vpop.f32.mrb[41].mxu0 }
 0x509   : > { %v6598_v51 = vpop.eup %6597  ;;  %v4144_v5 = vadd.f32 %v4143_v13, %v4004_v46  ;;  %v8804_v6 = vpop.f32.mrb[42].mxu0 }
 0x50a   : > { %6603 = vrcp.f32 %v4192_v24  ;;  %v4193_v28 = vadd.f32 1.0, %v6598_v51  ;;  %v4147_v53 = vpop.f32.mrb[43].mxu0  ;;  %v4142_v51 = vadd.f32 %v8802_v16, %v8806_v34 }
 0x50b   : > { %v4734_v22 = vmul.f32 -1.442695, %v4144_v5  ;;  %v4148_v23 = vadd.f32 %v4147_v53, %v4004_v46 }
 0x50c   : > { %6605 = vrcp.f32 %v4193_v28 }
 0x50d   : > { %6607 = vpow2.f32 %v4734_v22  ;;  %v4735_v37 = vmul.f32 -1.442695, %v4148_v23  ;;  %v4146_v23 = vadd.f32 %v8804_v6, %v8806_v34 }
 0x50f   : > { %v6600_v49 = vpop.eup %6599  ;;  %6609 = vpow2.f32 %v4735_v37  ;;  %v8809_v3 = vpop.f32.mrb[44].mxu0  ;;  %v4165_v62 = vmax.f32 %v4146_v23, 0.0 }
 0x510   : > { %v4194_v36 = vadd.f32 1.0, %v6600_v49  ;;  %v4153_v12 = vpop.f32.mrb[45].mxu0  ;;  %v4152_v6 = vadd.f32 %v8809_v3, %v8806_v34 }
 0x511   : > { %v6602_v40 = vpop.eup %6601  ;;  %v4154_v1 = vadd.f32 %v4153_v12, %v4004_v46  ;;  %v8812_v35 = vpop.f32.mrb[46].mxu0 }
 0x512   : > { %6611 = vrcp.f32 %v4194_v36  ;;  %v4195_v47 = vadd.f32 1.0, %v6602_v40  ;;  %v4157_v57 = vpop.f32.mrb[47].mxu0 }
 0x513   : > { %v4736_v60 = vmul.f32 -1.442695, %v4154_v1  ;;  %v4158_v9 = vadd.f32 %v4157_v57, %v4004_v46 }
 0x514   : > { %v6604_v44 = vpop.eup %6603  ;;  %6613 = vrcp.f32 %v4195_v47  ;;  %v4156_v47 = vadd.f32 %v8812_v35, %v8806_v34 }
 0x515   : > { %v4216_v38 = vmul.f32 %v6604_v44, %v4160_v52  ;;  %v4224_v32 = vsub.f32 1.0, %v6604_v44  ;;  %6615 = vpow2.f32 %v4736_v60  ;;  %v4737_v31 = vmul.f32 -1.442695, %v4158_v9 }
 0x516   : > { %v6606_v43 = vpop.eup %6605  ;;  %v4166_v52 = vmax.f32 %v4152_v6, 0.0  ;;  %v4167_v3 = vmax.f32 %v4156_v47, 0.0 }
 0x517   : > { %v6608_v61 = vpop.eup %6607  ;;  %v4232_v19 = vmul.f32 %v4224_v32, %v3967_v26  ;;  %v4217_v54 = vmul.f32 %v6606_v43, %v4161_v39  ;;  %v4225_v17 = vsub.f32 1.0, %v6606_v43  ;;  %6617 = vpow2.f32 %v4737_v31 }
 0x518   : > { %v4196_v46 = vadd.f32 1.0, %v6608_v61  ;;  %v4162_v26 = vmax.f32 %v4132_v15, 0.0 }
 0x519   : > { %v6610_v7 = vpop.eup %6609  ;;  %v4240_v4 = vadd.f32 %v4232_v19, %v4216_v38  ;;  %v4233_v20 = vmul.f32 %v4225_v17, %v3968_v11 }
 0x51a   : > { %6619 = vrcp.f32 %v4196_v46  ;;  %v4197_v18 = vadd.f32 1.0, %v6610_v7 }
 0x51b   : > { %4248 = vst [vmem:[%s8823_s16] sm:$0xff] %v4240_v4  ;;  %v4241_v33 = vadd.f32 %v4233_v20, %v4217_v54 }
 0x51c   : > { %v6612_v58 = vpop.eup %6611  ;;  %6621 = vrcp.f32 %v4197_v18 }
 0x51d   : > { %4249 = vst [vmem:[%s8823_s16 + $0x8] sm:$0xff] %v4241_v33  ;;  %v4218_v0 = vmul.f32 %v6612_v58, %v4162_v26  ;;  %v4226_v42 = vsub.f32 1.0, %v6612_v58 }
 0x51e   : > { %v6614_v56 = vpop.eup %6613 }
 0x51f   : > { %v6616_v11 = vpop.eup %6615  ;;  %v4234_v30 = vmul.f32 %v4226_v42, %v3969_v45  ;;  %v4219_v24 = vmul.f32 %v6614_v56, %v4163_v63  ;;  %v4227_v13 = vsub.f32 1.0, %v6614_v56  ;;  %v4164_v45 = vmax.f32 %v4142_v51, 0.0 }
 0x520   : > { %v4198_v5 = vadd.f32 1.0, %v6616_v11 }
 0x521   : > { %v6618_v28 = vpop.eup %6617  ;;  %v4242_v53 = vadd.f32 %v4234_v30, %v4218_v0  ;;  %v4235_v22 = vmul.f32 %v4227_v13, %v3970_v48 }
 0x522   : > { %6623 = vrcp.f32 %v4198_v5  ;;  %v4199_v37 = vadd.f32 1.0, %v6618_v28 }
 0x523   : > { %4250 = vst [vmem:[%s8823_s16 + $0x10] sm:$0xff] %v4242_v53  ;;  %v4243_v59 = vadd.f32 %v4235_v22, %v4219_v24 }
 0x524   : > { %v6620_v49 = vpop.eup %6619  ;;  %6625 = vrcp.f32 %v4199_v37 }
 0x525   : > { %4251 = vst [vmem:[%s8823_s16 + $0x18] sm:$0xff] %v4243_v59  ;;  %v4220_v16 = vmul.f32 %v6620_v49, %v4164_v45  ;;  %v4228_v10 = vsub.f32 1.0, %v6620_v49 }
 0x526   : > { %v6622_v36 = vpop.eup %6621 }
 0x527   : > { %v4236_v8 = vmul.f32 %v4228_v10, %v3971_v29  ;;  %v4221_v48 = vmul.f32 %v6622_v36, %v4165_v62  ;;  %v4229_v12 = vsub.f32 1.0, %v6622_v36 }
 0x529   : > { %v4244_v40 = vadd.f32 %v4236_v8, %v4220_v16  ;;  %v4237_v1 = vmul.f32 %v4229_v12, %v3972_v41 }
 0x52b   : > { %4252 = vst [vmem:[%s8823_s16 + $0x20] sm:$0xff] %v4244_v40  ;;  %v4245_v57 = vadd.f32 %v4237_v1, %v4221_v48 }
 0x52c   : > { %v6624_v2 = vpop.eup %6623 }
 0x52d   : > { %4253 = vst [vmem:[%s8823_s16 + $0x28] sm:$0xff] %v4245_v57  ;;  %v4222_v29 = vmul.f32 %v6624_v2, %v4166_v52  ;;  %v4230_v60 = vsub.f32 1.0, %v6624_v2 }
 0x52e   : > { %v6626_v9 = vpop.eup %6625 }
 0x52f   : > { %v4238_v14 = vmul.f32 %v4230_v60, %v3973_v55  ;;  %v4223_v41 = vmul.f32 %v6626_v9, %v4167_v3  ;;  %v4231_v44 = vsub.f32 1.0, %v6626_v9 }
 0x531   : > { %v4246_v34 = vadd.f32 %v4238_v14, %v4222_v29  ;;  %v4239_v35 = vmul.f32 %v4231_v44, %v3974_v50 }
 0x533   : > { %4254 = vst [vmem:[%s8823_s16 + $0x30] sm:$0xff] %v4246_v34  ;;  %v4247_v21 = vadd.f32 %v4239_v35, %v4223_v41 }
 0x535   : > { %4255 = vst [vmem:[%s8823_s16 + $0x38] sm:$0xff] %v4247_v21 }
 0x536   : > { %6729 = shalt.err (!%p6726_p7)
}
 0x537   : > { %s6730_s30 = scalar_lea.hbm %s8856_s6, 1024  ;;  %s6734_s13 = scalar_lea.hbm %s8910_s5, 2048 }
 0x538   : > { %p6731_p8 = scmp.ne.s32.totalorder %s8856_s6, %s6730_s30  ;;  %p6735_p1 = scmp.lt.u32.totalorder %s8856_s6, %s8910_s5 }
 0x539   : > { %p6736_p0 = scmp.lt.u32.totalorder %s6734_s13, %s6730_s30  ;;  %p6738_p6 = scmp.lt.u32.totalorder %s6730_s30, %s8856_s6 }
 0x53a   : > { %p6732_p11 = pnand %p6731_p8, %p9084_p9 }
 0x53b   : > { %p6737_p5 = por %p6736_p0, %p6735_p1 }
 0x53c   : > { %p6733_p13 = pneg %p6732_p11 }
 0x53d   : > { %p6739_p10 = por %p6738_p6, %p6737_p5 }
 0x53f   : > { %p6740_p12 = pnand %p6739_p10, %p6733_p13 }
 0x541   : > { %6743 = shalt.err (!%p6740_p12)
}
 0x542   : > { %s6801_s16 = smov 128   ;;  %s6802_s17 = smov 8  }
 0x543   : > { %6444 = dma.vmem_to_hbm [thread:$0]  (%p9084_p9), %s8858_s23, 1024, %s8856_s6, %s8864_s22, %s6801_s16, %s6801_s16, %s6802_s17  }
 0x544 PF: > { %p6456_p2 = scmp.ge.s32.totalorder %s6782_s21, 2  ;;  %s4285_s25 = sand.u32 1, %s6770_s18  }
 0x545   : > { %p9085_p3 = scmp.ne.s32.totalorder %s8956_s29, 0  ;;  %s4286_s26 = scalar_lea.sflag [#allocation4], %s4285_s25 }
 0x547   : > { %p6451_p4 = pnand %p6456_p2, %p9085_p3 }
 0x549   : > { %6765 = dma.done.wait (!%p6451_p4), %s4286_s26, 1024  }
 0x54a   : > { %6767 = vsyncadd (!%p6451_p4), %s4286_s26, 4294966272  ;;  %p16_p7 = scmp.ge.s32.totalorder %s6858_s24, 4   ;;  %s9086_s18 = smov %s6774_s19 }
 0x54b   : > { %s9087_s19 = smov %s6778_s20  ;;  %s9088_s20 = smov %s6869_s27 }
 0x54c   : > { %s9089_s21 = smov %s6858_s24  ;;  %18 = sbr.rel (!%p16_p7) target bundleno = 4 (0x4), region = 84 }
 0x553   :  { %4291 = vsyncpa [#allocation3], 1 }
 0x554   :  { %4293 = vsyncpa [#allocation3 + $0x1], 1 }
 0x555   :  { %4294 = vsyncpa [#allocation4], 1 }
 0x556   :  { %4296 = vsyncpa [#allocation4 + $0x1], 1 }

</bundles_post_ra>
